<compile_context>
chip_gen: v7x
topology: tpu7x:2x2x1
jax: 0.10.0
libtpu: 0.0.40
codegen_flags: <defaults>
</compile_context>

<pallas_src>
import jax
import jax.numpy as jnp
from jax import lax
from jax.experimental import pallas as pl
from jax.experimental.pallas import tpu as pltpu


GATE_PAD = 128   # lanes per gate slab (i, f, g, o each padded from H -> 128)
BATCH_PAD = 8    # batch rows padded to one f32 sublane tile


def lstm_fc_kernel(x_ref,      # (T*Bp, Ip)      bf16  time-major, flattened input
                   wih0_ref,   # (Ip, 4*Hp)      bf16  layer-0 input weights (packed)
                   b0_ref,     # (1, 4*Hp)       f32   b_ih0 + b_hh0 (packed)
                   whh0_ref,   # (Hp, 4*Hp)      bf16  layer-0 recurrent weights
                   w1_ref,     # (2*Hp, 4*Hp)    bf16  stacked [W_ih1; W_hh1]
                   b1_ref,     # (1, 4*Hp)       f32   b_ih1 + b_hh1 (packed)
                   fcw_ref,    # (Hp, O)         f32
                   fcb_ref,    # (1, O)          f32
                   out_ref,    # (Bp, O)         f32
                   g0_ref):    # (T*Bp, 4*Hp)    f32   scratch: hoisted input projection
    Bp = out_ref.shape[0]
    four_hp = b1_ref.shape[1]
    Hp = four_hp // 4
    T = g0_ref.shape[0] // Bp

    # ---- hoisted layer-0 input projection: one bf16 MXU pass covers all timesteps,
    # bias folded in.  Only the recurrent matmul remains per step.
    g0_ref[...] = (
        jnp.dot(x_ref[...], wih0_ref[...], preferred_element_type=jnp.float32)
        + b0_ref[...])

    # Hoist loop-invariant VMEM loads / broadcasts out of the unrolled serial loop.
    whh0 = whh0_ref[...]
    w1 = w1_ref[...]
    b1 = jnp.broadcast_to(b1_ref[...], (Bp, four_hp))

    def gates_to_hc(g, c):
        # lane-aligned 128-wide gate slabs -> static slices are free re-views.
        # sigmoid(x) = 0.5*tanh(0.5*x) + 0.5 : a single native EUP tanh per gate.
        i = 0.5 * jnp.tanh(0.5 * g[:, 0 * Hp:1 * Hp]) + 0.5
        f = 0.5 * jnp.tanh(0.5 * g[:, 1 * Hp:2 * Hp]) + 0.5
        gg = jnp.tanh(g[:, 2 * Hp:3 * Hp])
        o = 0.5 * jnp.tanh(0.5 * g[:, 3 * Hp:4 * Hp]) + 0.5
        c_new = f * c + i * gg
        h_new = o * jnp.tanh(c_new)
        # Padded lanes stay exactly 0: g=0 -> i=f=o=0.5, gg=0 -> c=0 -> h=0, so the
        # padded state never leaks into the real H=50 lanes.
        # h carried in bf16 (feeds the next MXU op directly); c stays f32.
        return h_new.astype(jnp.bfloat16), c_new

    def step(t, carry):
        h1, c1, h2, c2 = carry
        # layer 0: sublane-aligned slab load (Bp == 8) + the recurrent matmul
        row = pl.multiple_of(t * Bp, Bp)
        g0 = (g0_ref[pl.ds(row, Bp), :]
              + jnp.dot(h1, whh0, preferred_element_type=jnp.float32))
        h1, c1 = gates_to_hc(g0, c1)
        # layer 1: single fused matmul of [h1_t | h2_{t-1}] vs stacked [W_ih1; W_hh1]
        hcat = jnp.concatenate([h1, h2], axis=1)
        g1 = jnp.dot(hcat, w1, preferred_element_type=jnp.float32) + b1
        h2, c2 = gates_to_hc(g1, c2)
        return (h1, c1, h2, c2)

    zeros_h = jnp.zeros((Bp, Hp), jnp.bfloat16)
    zeros_c = jnp.zeros((Bp, Hp), jnp.float32)
    _, _, h2, _ = lax.fori_loop(0, T, step,
                                (zeros_h, zeros_c, zeros_h, zeros_c),
                                unroll=True)

    # final Linear on the last timestep's top-layer hidden state
    out_ref[...] = (jnp.dot(h2.astype(jnp.float32), fcw_ref[...],
                            preferred_element_type=jnp.float32)
                    + fcb_ref[...])


def _pack_gate_weight(w, hp, in_pad):
    """(4H, in_dim) PyTorch gate-major weight -> (in_pad, 4*hp): transposed, each gate
    (i, f, g, o) placed in its own lane-aligned 128-wide slab, zero-padded."""
    four_h, in_dim = w.shape
    h = four_h // 4
    out = jnp.zeros((in_pad, 4 * hp), jnp.float32)
    for k in range(4):
        out = out.at[:in_dim, k * hp:k * hp + h].set(
            jnp.transpose(w[k * h:(k + 1) * h, :]))
    return out


def _pack_gate_bias(b, hp):
    four_h = b.shape[0]
    h = four_h // 4
    out = jnp.zeros((1, 4 * hp), jnp.float32)
    for k in range(4):
        out = out.at[0, k * hp:k * hp + h].set(b[k * h:(k + 1) * h])
    return out


def pack_lstm_params(params):
    """One-time weight packing (keep OUT of the per-call path)."""
    H = params["whh0"].shape[1]
    I = params["wih0"].shape[1]
    O = params["fcw"].shape[0]
    Hp = GATE_PAD
    Ip = ((max(I, 1) + 127) // 128) * 128   # K rounded up to a multiple of 128

    wih0_p = _pack_gate_weight(params["wih0"], Hp, in_pad=Ip).astype(jnp.bfloat16)
    b0_p = _pack_gate_bias(params["b0"], Hp)                                # f32
    whh0_p = _pack_gate_weight(params["whh0"], Hp, in_pad=Hp).astype(jnp.bfloat16)
    w1_p = jnp.concatenate(
        [_pack_gate_weight(params["wih1"], Hp, in_pad=Hp),
         _pack_gate_weight(params["whh1"], Hp, in_pad=Hp)],
        axis=0).astype(jnp.bfloat16)                                        # (2Hp, 4Hp)
    b1_p = _pack_gate_bias(params["b1"], Hp)                                # f32
    fcw_p = jnp.zeros((Hp, O), jnp.float32).at[:H, :].set(jnp.transpose(params["fcw"]))
    fcb_p = params["fcb"].reshape(1, O).astype(jnp.float32)
    return dict(wih0=wih0_p, b0=b0_p, whh0=whh0_p, w1=w1_p, b1=b1_p,
                fcw=fcw_p, fcb=fcb_p)


def lstm_model_forward(x, packed):
    """x: (B, T, I) float32 (batch_first, like the PyTorch module). Returns (B, O)."""
    B, T, I = x.shape
    Hp = GATE_PAD
    Bp = BATCH_PAD
    Ip = packed["wih0"].shape[0]
    O = packed["fcw"].shape[1]

    # time-major, batch padded to one sublane tile, contraction dim padded to Ip
    x_tm = jnp.transpose(x, (1, 0, 2)).astype(jnp.bfloat16)         # (T, B, I)
    x_p = jnp.zeros((T, Bp, Ip), jnp.bfloat16).at[:, :B, :I].set(x_tm)
    x_p = x_p.reshape(T * Bp, Ip)

    vmem = pl.BlockSpec(memory_space=pltpu.MemorySpace.VMEM)
    out = pl.pallas_call(
        lstm_fc_kernel,
        out_shape=jax.ShapeDtypeStruct((Bp, O), jnp.float32),
        in_specs=[vmem] * 8,
        out_specs=vmem,
        scratch_shapes=[pltpu.VMEM((T * Bp, 4 * Hp), jnp.float32)],
    )(x_p, packed["wih0"], packed["b0"], packed["whh0"], packed["w1"],
      packed["b1"], packed["fcw"], packed["fcb"])
    return out[:B]


def make_lstm_params(key, input_size, hidden_size, output_size):
    """Deterministic synthetic params, PyTorch-style uniform(-1/sqrt(H), 1/sqrt(H))."""
    H = hidden_size
    k = 1.0 / jnp.sqrt(jnp.float32(H))
    keys = jax.random.split(key, 12)

    def u(kk, shape):
        return jax.random.uniform(kk, shape, jnp.float32, -k, k)

    w_ih0 = u(keys[0], (4 * H, input_size))
    w_hh0 = u(keys[1], (4 * H, H))
    b_ih0 = u(keys[2], (4 * H,))
    b_hh0 = u(keys[3], (4 * H,))
    w_ih1 = u(keys[4], (4 * H, H))
    w_hh1 = u(keys[5], (4 * H, H))
    b_ih1 = u(keys[6], (4 * H,))
    b_hh1 = u(keys[7], (4 * H,))
    fc_w = jax.random.uniform(keys[8], (output_size, H), jnp.float32, -k, k)
    fc_b = jax.random.uniform(keys[9], (output_size,), jnp.float32, -k, k)

    return dict(
        wih0=w_ih0, whh0=w_hh0, b0=b_ih0 + b_hh0,
        wih1=w_ih1, whh1=w_hh1, b1=b_ih1 + b_hh1,
        fcw=fc_w, fcb=fc_b,
    )


def lstm_model_ref(x, params):
    """Pure-JAX f32 reference reproducing nn.LSTM(batch_first, 2 layers) + fc(out[:, -1, :])."""
    H = params["whh0"].shape[1]

    def cell(x_t, h, c, wih, whh, b):
        g = x_t @ wih.T + h @ whh.T + b
        i = jax.nn.sigmoid(g[:, 0 * H:1 * H])
        f = jax.nn.sigmoid(g[:, 1 * H:2 * H])
        gg = jnp.tanh(g[:, 2 * H:3 * H])
        o = jax.nn.sigmoid(g[:, 3 * H:4 * H])
        c = f * c + i * gg
        h = o * jnp.tanh(c)
        return h, c

    B, T, I = x.shape
    h1 = c1 = h2 = c2 = jnp.zeros((B, H), jnp.float32)
    for t in range(T):
        h1, c1 = cell(x[:, t, :], h1, c1, params["wih0"], params["whh0"], params["b0"])
        h2, c2 = cell(h1, h2, c2, params["wih1"], params["whh1"], params["b1"])
    return h2 @ params["fcw"].T + params["fcb"]


if __name__ == "__main__":
    # Module defaults: input_size=1, hidden_size=50, num_layers=2, output_size=1
    B, T, I, H, O = 2, 8, 1, 50, 1

    key = jax.random.PRNGKey(0)
    kx, kp = jax.random.split(key)
    x = jax.random.normal(kx, (B, T, I), jnp.float32)
    params = make_lstm_params(kp, I, H, O)

    packed = pack_lstm_params(params)          # one-time packing, outside the hot path
    fwd = jax.jit(lstm_model_forward)

    out = jax.block_until_ready(fwd(x, packed))

    ref = lstm_model_ref(x, params)
    assert out.shape == (B, O), out.shape
    # bf16 MXU operands (and bf16 input projection / h carries) vs. the pure-f32
    # reference: observed error ~1e-3 at T=8; allow a relaxed tolerance.
    assert jnp.allclose(out, ref, atol=2e-2, rtol=2e-2), (out, ref)

    print("KERNEL_OK")
</pallas_src>

<mosaic_0001>
module attributes {stable_mosaic.version = 11 : i64} {
  func.func @lstm_fc_kernel(%arg0: memref<64x128xbf16, #tpu.memory_space<vmem>>, %arg1: memref<128x512xbf16, #tpu.memory_space<vmem>>, %arg2: memref<1x512xf32, #tpu.memory_space<vmem>>, %arg3: memref<128x512xbf16, #tpu.memory_space<vmem>>, %arg4: memref<256x512xbf16, #tpu.memory_space<vmem>>, %arg5: memref<1x512xf32, #tpu.memory_space<vmem>>, %arg6: memref<128x1xf32, #tpu.memory_space<vmem>>, %arg7: memref<1x1xf32, #tpu.memory_space<vmem>>, %arg8: memref<8x1xf32, #tpu.memory_space<vmem>>, %arg9: memref<64x512xf32, #tpu.memory_space<vmem>>) attributes {dimension_semantics = [], scalar_prefetch = 0 : i64, scratch_operands = 1 : i64, tpu.core_type = #tpu.core_type<tc>} {
    %c0 = arith.constant 0 : index
    %c0_0 = arith.constant 0 : index
    %0 = vector.load %arg0[%c0, %c0_0] : memref<64x128xbf16, #tpu.memory_space<vmem>>, vector<64x128xbf16>
    %c0_1 = arith.constant 0 : index
    %c0_2 = arith.constant 0 : index
    %1 = vector.load %arg1[%c0_1, %c0_2] : memref<128x512xbf16, #tpu.memory_space<vmem>>, vector<128x512xbf16>
    %cst = arith.constant dense<0.000000e+00> : vector<64x512xf32>
    %2 = tpu.matmul %0, %1, %cst {dimension_numbers = #tpu.dot_dimension_numbers<[1], [0], [0], [1], [0, 0, 1, 1], [], []>} : vector<64x128xbf16>, vector<128x512xbf16>, vector<64x512xf32> -> vector<64x512xf32>
    %c0_3 = arith.constant 0 : index
    %c0_4 = arith.constant 0 : index
    %3 = vector.load %arg2[%c0_3, %c0_4] : memref<1x512xf32, #tpu.memory_space<vmem>>, vector<1x512xf32>
    %4 = vector.broadcast %3 : vector<1x512xf32> to vector<64x512xf32>
    %5 = arith.addf %2, %4 : vector<64x512xf32>
    %c0_5 = arith.constant 0 : index
    %c0_6 = arith.constant 0 : index
    %6 = vector.load %arg9[%c0_5, %c0_6] : memref<64x512xf32, #tpu.memory_space<vmem>>, vector<64x512xf32>
    tpu.vector_store %arg9[%c0_5, %c0_6], %5 {strides = array<i32>} : memref<64x512xf32, #tpu.memory_space<vmem>>, vector<64x512xf32>,
    %c0_7 = arith.constant 0 : index
    %c0_8 = arith.constant 0 : index
    %7 = vector.load %arg3[%c0_7, %c0_8] : memref<128x512xbf16, #tpu.memory_space<vmem>>, vector<128x512xbf16>
    %c0_9 = arith.constant 0 : index
    %c0_10 = arith.constant 0 : index
    %8 = vector.load %arg4[%c0_9, %c0_10] : memref<256x512xbf16, #tpu.memory_space<vmem>>, vector<256x512xbf16>
    %c0_11 = arith.constant 0 : index
    %c0_12 = arith.constant 0 : index
    %9 = vector.load %arg5[%c0_11, %c0_12] : memref<1x512xf32, #tpu.memory_space<vmem>>, vector<1x512xf32>
    %10 = vector.shape_cast %9 : vector<1x512xf32> to vector<1x512xf32>
    %11 = vector.broadcast %10 : vector<1x512xf32> to vector<8x512xf32>
    %cst_13 = arith.constant 0.000000e+00 : bf16
    %12 = vector.broadcast %cst_13 : bf16 to vector<8x128xbf16>
    %cst_14 = arith.constant 0.000000e+00 : f32
    %13 = vector.broadcast %cst_14 : f32 to vector<8x128xf32>
    %c0_i32 = arith.constant 0 : i32
    %c8_i32 = arith.constant 8 : i32
    %14 = arith.muli %c0_i32, %c8_i32 : i32
    %15 = tpu.assume_multiple %14, 8 : i32
    %16 = arith.index_cast %15 : i32 to index
    %c0_15 = arith.constant 0 : index
    %17 = vector.load %arg9[%16, %c0_15] : memref<64x512xf32, #tpu.memory_space<vmem>>, vector<8x512xf32>
    %cst_16 = arith.constant dense<0.000000e+00> : vector<8x512xf32>
    %18 = tpu.matmul %12, %7, %cst_16 {dimension_numbers = #tpu.dot_dimension_numbers<[1], [0], [0], [1], [0, 0, 1, 1], [], []>} : vector<8x128xbf16>, vector<128x512xbf16>, vector<8x512xf32> -> vector<8x512xf32>
    %19 = arith.addf %17, %18 : vector<8x512xf32>
    %20 = vector.extract_strided_slice %19 {offsets = [0, 0], sizes = [8, 128], strides = [1, 1]} : vector<8x512xf32> to vector<8x128xf32>
    %cst_17 = arith.constant 5.000000e-01 : f32
    %21 = vector.broadcast %cst_17 : f32 to vector<8x128xf32>
    %22 = arith.mulf %21, %20 : vector<8x128xf32>
    %23 = math.tanh %22 : vector<8x128xf32>
    %cst_18 = arith.constant 5.000000e-01 : f32
    %24 = vector.broadcast %cst_18 : f32 to vector<8x128xf32>
    %25 = arith.mulf %24, %23 : vector<8x128xf32>
    %cst_19 = arith.constant 5.000000e-01 : f32
    %26 = vector.broadcast %cst_19 : f32 to vector<8x128xf32>
    %27 = arith.addf %25, %26 : vector<8x128xf32>
    %28 = vector.extract_strided_slice %19 {offsets = [0, 128], sizes = [8, 128], strides = [1, 1]} : vector<8x512xf32> to vector<8x128xf32>
    %cst_20 = arith.constant 5.000000e-01 : f32
    %29 = vector.broadcast %cst_20 : f32 to vector<8x128xf32>
    %30 = arith.mulf %29, %28 : vector<8x128xf32>
    %31 = math.tanh %30 : vector<8x128xf32>
    %cst_21 = arith.constant 5.000000e-01 : f32
    %32 = vector.broadcast %cst_21 : f32 to vector<8x128xf32>
    %33 = arith.mulf %32, %31 : vector<8x128xf32>
    %cst_22 = arith.constant 5.000000e-01 : f32
    %34 = vector.broadcast %cst_22 : f32 to vector<8x128xf32>
    %35 = arith.addf %33, %34 : vector<8x128xf32>
    %36 = vector.extract_strided_slice %19 {offsets = [0, 256], sizes = [8, 128], strides = [1, 1]} : vector<8x512xf32> to vector<8x128xf32>
    %37 = math.tanh %36 : vector<8x128xf32>
    %38 = vector.extract_strided_slice %19 {offsets = [0, 384], sizes = [8, 128], strides = [1, 1]} : vector<8x512xf32> to vector<8x128xf32>
    %cst_23 = arith.constant 5.000000e-01 : f32
    %39 = vector.broadcast %cst_23 : f32 to vector<8x128xf32>
    %40 = arith.mulf %39, %38 : vector<8x128xf32>
    %41 = math.tanh %40 : vector<8x128xf32>
    %cst_24 = arith.constant 5.000000e-01 : f32
    %42 = vector.broadcast %cst_24 : f32 to vector<8x128xf32>
    %43 = arith.mulf %42, %41 : vector<8x128xf32>
    %cst_25 = arith.constant 5.000000e-01 : f32
    %44 = vector.broadcast %cst_25 : f32 to vector<8x128xf32>
    %45 = arith.addf %43, %44 : vector<8x128xf32>
    %46 = arith.mulf %35, %13 : vector<8x128xf32>
    %47 = arith.mulf %27, %37 : vector<8x128xf32>
    %48 = arith.addf %46, %47 : vector<8x128xf32>
    %49 = math.tanh %48 : vector<8x128xf32>
    %50 = arith.mulf %45, %49 : vector<8x128xf32>
    %51 = arith.truncf %50 : vector<8x128xf32> to vector<8x128xbf16>
    %52 = tpu.concatenate %51, %12 in 1 : vector<8x128xbf16>, vector<8x128xbf16> -> vector<8x256xbf16>
    %cst_26 = arith.constant dense<0.000000e+00> : vector<8x512xf32>
    %53 = tpu.matmul %52, %8, %cst_26 {dimension_numbers = #tpu.dot_dimension_numbers<[1], [0], [0], [1], [0, 0, 1, 1], [], []>} : vector<8x256xbf16>, vector<256x512xbf16>, vector<8x512xf32> -> vector<8x512xf32>
    %54 = arith.addf %53, %11 : vector<8x512xf32>
    %55 = vector.extract_strided_slice %54 {offsets = [0, 0], sizes = [8, 128], strides = [1, 1]} : vector<8x512xf32> to vector<8x128xf32>
    %cst_27 = arith.constant 5.000000e-01 : f32
    %56 = vector.broadcast %cst_27 : f32 to vector<8x128xf32>
    %57 = arith.mulf %56, %55 : vector<8x128xf32>
    %58 = math.tanh %57 : vector<8x128xf32>
    %cst_28 = arith.constant 5.000000e-01 : f32
    %59 = vector.broadcast %cst_28 : f32 to vector<8x128xf32>
    %60 = arith.mulf %59, %58 : vector<8x128xf32>
    %cst_29 = arith.constant 5.000000e-01 : f32
    %61 = vector.broadcast %cst_29 : f32 to vector<8x128xf32>
    %62 = arith.addf %60, %61 : vector<8x128xf32>
    %63 = vector.extract_strided_slice %54 {offsets = [0, 128], sizes = [8, 128], strides = [1, 1]} : vector<8x512xf32> to vector<8x128xf32>
    %cst_30 = arith.constant 5.000000e-01 : f32
    %64 = vector.broadcast %cst_30 : f32 to vector<8x128xf32>
    %65 = arith.mulf %64, %63 : vector<8x128xf32>
    %66 = math.tanh %65 : vector<8x128xf32>
    %cst_31 = arith.constant 5.000000e-01 : f32
    %67 = vector.broadcast %cst_31 : f32 to vector<8x128xf32>
    %68 = arith.mulf %67, %66 : vector<8x128xf32>
    %cst_32 = arith.constant 5.000000e-01 : f32
    %69 = vector.broadcast %cst_32 : f32 to vector<8x128xf32>
    %70 = arith.addf %68, %69 : vector<8x128xf32>
    %71 = vector.extract_strided_slice %54 {offsets = [0, 256], sizes = [8, 128], strides = [1, 1]} : vector<8x512xf32> to vector<8x128xf32>
    %72 = math.tanh %71 : vector<8x128xf32>
    %73 = vector.extract_strided_slice %54 {offsets = [0, 384], sizes = [8, 128], strides = [1, 1]} : vector<8x512xf32> to vector<8x128xf32>
    %cst_33 = arith.constant 5.000000e-01 : f32
    %74 = vector.broadcast %cst_33 : f32 to vector<8x128xf32>
    %75 = arith.mulf %74, %73 : vector<8x128xf32>
    %76 = math.tanh %75 : vector<8x128xf32>
    %cst_34 = arith.constant 5.000000e-01 : f32
    %77 = vector.broadcast %cst_34 : f32 to vector<8x128xf32>
    %78 = arith.mulf %77, %76 : vector<8x128xf32>
    %cst_35 = arith.constant 5.000000e-01 : f32
    %79 = vector.broadcast %cst_35 : f32 to vector<8x128xf32>
    %80 = arith.addf %78, %79 : vector<8x128xf32>
    %81 = arith.mulf %70, %13 : vector<8x128xf32>
    %82 = arith.mulf %62, %72 : vector<8x128xf32>
    %83 = arith.addf %81, %82 : vector<8x128xf32>
    %84 = math.tanh %83 : vector<8x128xf32>
    %85 = arith.mulf %80, %84 : vector<8x128xf32>
    %86 = arith.truncf %85 : vector<8x128xf32> to vector<8x128xbf16>
    %c1_i32 = arith.constant 1 : i32
    %c8_i32_36 = arith.constant 8 : i32
    %87 = arith.muli %c1_i32, %c8_i32_36 : i32
    %88 = tpu.assume_multiple %87, 8 : i32
    %89 = arith.index_cast %88 : i32 to index
    %c0_37 = arith.constant 0 : index
    %90 = vector.load %arg9[%89, %c0_37] : memref<64x512xf32, #tpu.memory_space<vmem>>, vector<8x512xf32>
    %cst_38 = arith.constant dense<0.000000e+00> : vector<8x512xf32>
    %91 = tpu.matmul %51, %7, %cst_38 {dimension_numbers = #tpu.dot_dimension_numbers<[1], [0], [0], [1], [0, 0, 1, 1], [], []>} : vector<8x128xbf16>, vector<128x512xbf16>, vector<8x512xf32> -> vector<8x512xf32>
    %92 = arith.addf %90, %91 : vector<8x512xf32>
    %93 = vector.extract_strided_slice %92 {offsets = [0, 0], sizes = [8, 128], strides = [1, 1]} : vector<8x512xf32> to vector<8x128xf32>
    %cst_39 = arith.constant 5.000000e-01 : f32
    %94 = vector.broadcast %cst_39 : f32 to vector<8x128xf32>
    %95 = arith.mulf %94, %93 : vector<8x128xf32>
    %96 = math.tanh %95 : vector<8x128xf32>
    %cst_40 = arith.constant 5.000000e-01 : f32
    %97 = vector.broadcast %cst_40 : f32 to vector<8x128xf32>
    %98 = arith.mulf %97, %96 : vector<8x128xf32>
    %cst_41 = arith.constant 5.000000e-01 : f32
    %99 = vector.broadcast %cst_41 : f32 to vector<8x128xf32>
    %100 = arith.addf %98, %99 : vector<8x128xf32>
    %101 = vector.extract_strided_slice %92 {offsets = [0, 128], sizes = [8, 128], strides = [1, 1]} : vector<8x512xf32> to vector<8x128xf32>
    %cst_42 = arith.constant 5.000000e-01 : f32
    %102 = vector.broadcast %cst_42 : f32 to vector<8x128xf32>
    %103 = arith.mulf %102, %101 : vector<8x128xf32>
    %104 = math.tanh %103 : vector<8x128xf32>
    %cst_43 = arith.constant 5.000000e-01 : f32
    %105 = vector.broadcast %cst_43 : f32 to vector<8x128xf32>
    %106 = arith.mulf %105, %104 : vector<8x128xf32>
    %cst_44 = arith.constant 5.000000e-01 : f32
    %107 = vector.broadcast %cst_44 : f32 to vector<8x128xf32>
    %108 = arith.addf %106, %107 : vector<8x128xf32>
    %109 = vector.extract_strided_slice %92 {offsets = [0, 256], sizes = [8, 128], strides = [1, 1]} : vector<8x512xf32> to vector<8x128xf32>
    %110 = math.tanh %109 : vector<8x128xf32>
    %111 = vector.extract_strided_slice %92 {offsets = [0, 384], sizes = [8, 128], strides = [1, 1]} : vector<8x512xf32> to vector<8x128xf32>
    %cst_45 = arith.constant 5.000000e-01 : f32
    %112 = vector.broadcast %cst_45 : f32 to vector<8x128xf32>
    %113 = arith.mulf %112, %111 : vector<8x128xf32>
    %114 = math.tanh %113 : vector<8x128xf32>
    %cst_46 = arith.constant 5.000000e-01 : f32
    %115 = vector.broadcast %cst_46 : f32 to vector<8x128xf32>
    %116 = arith.mulf %115, %114 : vector<8x128xf32>
    %cst_47 = arith.constant 5.000000e-01 : f32
    %117 = vector.broadcast %cst_47 : f32 to vector<8x128xf32>
    %118 = arith.addf %116, %117 : vector<8x128xf32>
    %119 = arith.mulf %108, %48 : vector<8x128xf32>
    %120 = arith.mulf %100, %110 : vector<8x128xf32>
    %121 = arith.addf %119, %120 : vector<8x128xf32>
    %122 = math.tanh %121 : vector<8x128xf32>
    %123 = arith.mulf %118, %122 : vector<8x128xf32>
    %124 = arith.truncf %123 : vector<8x128xf32> to vector<8x128xbf16>
    %125 = tpu.concatenate %124, %86 in 1 : vector<8x128xbf16>, vector<8x128xbf16> -> vector<8x256xbf16>
    %cst_48 = arith.constant dense<0.000000e+00> : vector<8x512xf32>
    %126 = tpu.matmul %125, %8, %cst_48 {dimension_numbers = #tpu.dot_dimension_numbers<[1], [0], [0], [1], [0, 0, 1, 1], [], []>} : vector<8x256xbf16>, vector<256x512xbf16>, vector<8x512xf32> -> vector<8x512xf32>
    %127 = arith.addf %126, %11 : vector<8x512xf32>
    %128 = vector.extract_strided_slice %127 {offsets = [0, 0], sizes = [8, 128], strides = [1, 1]} : vector<8x512xf32> to vector<8x128xf32>
    %cst_49 = arith.constant 5.000000e-01 : f32
    %129 = vector.broadcast %cst_49 : f32 to vector<8x128xf32>
    %130 = arith.mulf %129, %128 : vector<8x128xf32>
    %131 = math.tanh %130 : vector<8x128xf32>
    %cst_50 = arith.constant 5.000000e-01 : f32
    %132 = vector.broadcast %cst_50 : f32 to vector<8x128xf32>
    %133 = arith.mulf %132, %131 : vector<8x128xf32>
    %cst_51 = arith.constant 5.000000e-01 : f32
    %134 = vector.broadcast %cst_51 : f32 to vector<8x128xf32>
    %135 = arith.addf %133, %134 : vector<8x128xf32>
    %136 = vector.extract_strided_slice %127 {offsets = [0, 128], sizes = [8, 128], strides = [1, 1]} : vector<8x512xf32> to vector<8x128xf32>
    %cst_52 = arith.constant 5.000000e-01 : f32
    %137 = vector.broadcast %cst_52 : f32 to vector<8x128xf32>
    %138 = arith.mulf %137, %136 : vector<8x128xf32>
    %139 = math.tanh %138 : vector<8x128xf32>
    %cst_53 = arith.constant 5.000000e-01 : f32
    %140 = vector.broadcast %cst_53 : f32 to vector<8x128xf32>
    %141 = arith.mulf %140, %139 : vector<8x128xf32>
    %cst_54 = arith.constant 5.000000e-01 : f32
    %142 = vector.broadcast %cst_54 : f32 to vector<8x128xf32>
    %143 = arith.addf %141, %142 : vector<8x128xf32>
    %144 = vector.extract_strided_slice %127 {offsets = [0, 256], sizes = [8, 128], strides = [1, 1]} : vector<8x512xf32> to vector<8x128xf32>
    %145 = math.tanh %144 : vector<8x128xf32>
    %146 = vector.extract_strided_slice %127 {offsets = [0, 384], sizes = [8, 128], strides = [1, 1]} : vector<8x512xf32> to vector<8x128xf32>
    %cst_55 = arith.constant 5.000000e-01 : f32
    %147 = vector.broadcast %cst_55 : f32 to vector<8x128xf32>
    %148 = arith.mulf %147, %146 : vector<8x128xf32>
    %149 = math.tanh %148 : vector<8x128xf32>
    %cst_56 = arith.constant 5.000000e-01 : f32
    %150 = vector.broadcast %cst_56 : f32 to vector<8x128xf32>
    %151 = arith.mulf %150, %149 : vector<8x128xf32>
    %cst_57 = arith.constant 5.000000e-01 : f32
    %152 = vector.broadcast %cst_57 : f32 to vector<8x128xf32>
    %153 = arith.addf %151, %152 : vector<8x128xf32>
    %154 = arith.mulf %143, %83 : vector<8x128xf32>
    %155 = arith.mulf %135, %145 : vector<8x128xf32>
    %156 = arith.addf %154, %155 : vector<8x128xf32>
    %157 = math.tanh %156 : vector<8x128xf32>
    %158 = arith.mulf %153, %157 : vector<8x128xf32>
    %159 = arith.truncf %158 : vector<8x128xf32> to vector<8x128xbf16>
    %c2_i32 = arith.constant 2 : i32
    %c8_i32_58 = arith.constant 8 : i32
    %160 = arith.muli %c2_i32, %c8_i32_58 : i32
    %161 = tpu.assume_multiple %160, 8 : i32
    %162 = arith.index_cast %161 : i32 to index
    %c0_59 = arith.constant 0 : index
    %163 = vector.load %arg9[%162, %c0_59] : memref<64x512xf32, #tpu.memory_space<vmem>>, vector<8x512xf32>
    %cst_60 = arith.constant dense<0.000000e+00> : vector<8x512xf32>
    %164 = tpu.matmul %124, %7, %cst_60 {dimension_numbers = #tpu.dot_dimension_numbers<[1], [0], [0], [1], [0, 0, 1, 1], [], []>} : vector<8x128xbf16>, vector<128x512xbf16>, vector<8x512xf32> -> vector<8x512xf32>
    %165 = arith.addf %163, %164 : vector<8x512xf32>
    %166 = vector.extract_strided_slice %165 {offsets = [0, 0], sizes = [8, 128], strides = [1, 1]} : vector<8x512xf32> to vector<8x128xf32>
    %cst_61 = arith.constant 5.000000e-01 : f32
    %167 = vector.broadcast %cst_61 : f32 to vector<8x128xf32>
    %168 = arith.mulf %167, %166 : vector<8x128xf32>
    %169 = math.tanh %168 : vector<8x128xf32>
    %cst_62 = arith.constant 5.000000e-01 : f32
    %170 = vector.broadcast %cst_62 : f32 to vector<8x128xf32>
    %171 = arith.mulf %170, %169 : vector<8x128xf32>
    %cst_63 = arith.constant 5.000000e-01 : f32
    %172 = vector.broadcast %cst_63 : f32 to vector<8x128xf32>
    %173 = arith.addf %171, %172 : vector<8x128xf32>
    %174 = vector.extract_strided_slice %165 {offsets = [0, 128], sizes = [8, 128], strides = [1, 1]} : vector<8x512xf32> to vector<8x128xf32>
    %cst_64 = arith.constant 5.000000e-01 : f32
    %175 = vector.broadcast %cst_64 : f32 to vector<8x128xf32>
    %176 = arith.mulf %175, %174 : vector<8x128xf32>
    %177 = math.tanh %176 : vector<8x128xf32>
    %cst_65 = arith.constant 5.000000e-01 : f32
    %178 = vector.broadcast %cst_65 : f32 to vector<8x128xf32>
    %179 = arith.mulf %178, %177 : vector<8x128xf32>
    %cst_66 = arith.constant 5.000000e-01 : f32
    %180 = vector.broadcast %cst_66 : f32 to vector<8x128xf32>
    %181 = arith.addf %179, %180 : vector<8x128xf32>
    %182 = vector.extract_strided_slice %165 {offsets = [0, 256], sizes = [8, 128], strides = [1, 1]} : vector<8x512xf32> to vector<8x128xf32>
    %183 = math.tanh %182 : vector<8x128xf32>
    %184 = vector.extract_strided_slice %165 {offsets = [0, 384], sizes = [8, 128], strides = [1, 1]} : vector<8x512xf32> to vector<8x128xf32>
    %cst_67 = arith.constant 5.000000e-01 : f32
    %185 = vector.broadcast %cst_67 : f32 to vector<8x128xf32>
    %186 = arith.mulf %185, %184 : vector<8x128xf32>
    %187 = math.tanh %186 : vector<8x128xf32>
    %cst_68 = arith.constant 5.000000e-01 : f32
    %188 = vector.broadcast %cst_68 : f32 to vector<8x128xf32>
    %189 = arith.mulf %188, %187 : vector<8x128xf32>
    %cst_69 = arith.constant 5.000000e-01 : f32
    %190 = vector.broadcast %cst_69 : f32 to vector<8x128xf32>
    %191 = arith.addf %189, %190 : vector<8x128xf32>
    %192 = arith.mulf %181, %121 : vector<8x128xf32>
    %193 = arith.mulf %173, %183 : vector<8x128xf32>
    %194 = arith.addf %192, %193 : vector<8x128xf32>
    %195 = math.tanh %194 : vector<8x128xf32>
    %196 = arith.mulf %191, %195 : vector<8x128xf32>
    %197 = arith.truncf %196 : vector<8x128xf32> to vector<8x128xbf16>
    %198 = tpu.concatenate %197, %159 in 1 : vector<8x128xbf16>, vector<8x128xbf16> -> vector<8x256xbf16>
    %cst_70 = arith.constant dense<0.000000e+00> : vector<8x512xf32>
    %199 = tpu.matmul %198, %8, %cst_70 {dimension_numbers = #tpu.dot_dimension_numbers<[1], [0], [0], [1], [0, 0, 1, 1], [], []>} : vector<8x256xbf16>, vector<256x512xbf16>, vector<8x512xf32> -> vector<8x512xf32>
    %200 = arith.addf %199, %11 : vector<8x512xf32>
    %201 = vector.extract_strided_slice %200 {offsets = [0, 0], sizes = [8, 128], strides = [1, 1]} : vector<8x512xf32> to vector<8x128xf32>
    %cst_71 = arith.constant 5.000000e-01 : f32
    %202 = vector.broadcast %cst_71 : f32 to vector<8x128xf32>
    %203 = arith.mulf %202, %201 : vector<8x128xf32>
    %204 = math.tanh %203 : vector<8x128xf32>
    %cst_72 = arith.constant 5.000000e-01 : f32
    %205 = vector.broadcast %cst_72 : f32 to vector<8x128xf32>
    %206 = arith.mulf %205, %204 : vector<8x128xf32>
    %cst_73 = arith.constant 5.000000e-01 : f32
    %207 = vector.broadcast %cst_73 : f32 to vector<8x128xf32>
    %208 = arith.addf %206, %207 : vector<8x128xf32>
    %209 = vector.extract_strided_slice %200 {offsets = [0, 128], sizes = [8, 128], strides = [1, 1]} : vector<8x512xf32> to vector<8x128xf32>
    %cst_74 = arith.constant 5.000000e-01 : f32
    %210 = vector.broadcast %cst_74 : f32 to vector<8x128xf32>
    %211 = arith.mulf %210, %209 : vector<8x128xf32>
    %212 = math.tanh %211 : vector<8x128xf32>
    %cst_75 = arith.constant 5.000000e-01 : f32
    %213 = vector.broadcast %cst_75 : f32 to vector<8x128xf32>
    %214 = arith.mulf %213, %212 : vector<8x128xf32>
    %cst_76 = arith.constant 5.000000e-01 : f32
    %215 = vector.broadcast %cst_76 : f32 to vector<8x128xf32>
    %216 = arith.addf %214, %215 : vector<8x128xf32>
    %217 = vector.extract_strided_slice %200 {offsets = [0, 256], sizes = [8, 128], strides = [1, 1]} : vector<8x512xf32> to vector<8x128xf32>
    %218 = math.tanh %217 : vector<8x128xf32>
    %219 = vector.extract_strided_slice %200 {offsets = [0, 384], sizes = [8, 128], strides = [1, 1]} : vector<8x512xf32> to vector<8x128xf32>
    %cst_77 = arith.constant 5.000000e-01 : f32
    %220 = vector.broadcast %cst_77 : f32 to vector<8x128xf32>
    %221 = arith.mulf %220, %219 : vector<8x128xf32>
    %222 = math.tanh %221 : vector<8x128xf32>
    %cst_78 = arith.constant 5.000000e-01 : f32
    %223 = vector.broadcast %cst_78 : f32 to vector<8x128xf32>
    %224 = arith.mulf %223, %222 : vector<8x128xf32>
    %cst_79 = arith.constant 5.000000e-01 : f32
    %225 = vector.broadcast %cst_79 : f32 to vector<8x128xf32>
    %226 = arith.addf %224, %225 : vector<8x128xf32>
    %227 = arith.mulf %216, %156 : vector<8x128xf32>
    %228 = arith.mulf %208, %218 : vector<8x128xf32>
    %229 = arith.addf %227, %228 : vector<8x128xf32>
    %230 = math.tanh %229 : vector<8x128xf32>
    %231 = arith.mulf %226, %230 : vector<8x128xf32>
    %232 = arith.truncf %231 : vector<8x128xf32> to vector<8x128xbf16>
    %c3_i32 = arith.constant 3 : i32
    %c8_i32_80 = arith.constant 8 : i32
    %233 = arith.muli %c3_i32, %c8_i32_80 : i32
    %234 = tpu.assume_multiple %233, 8 : i32
    %235 = arith.index_cast %234 : i32 to index
    %c0_81 = arith.constant 0 : index
    %236 = vector.load %arg9[%235, %c0_81] : memref<64x512xf32, #tpu.memory_space<vmem>>, vector<8x512xf32>
    %cst_82 = arith.constant dense<0.000000e+00> : vector<8x512xf32>
    %237 = tpu.matmul %197, %7, %cst_82 {dimension_numbers = #tpu.dot_dimension_numbers<[1], [0], [0], [1], [0, 0, 1, 1], [], []>} : vector<8x128xbf16>, vector<128x512xbf16>, vector<8x512xf32> -> vector<8x512xf32>
    %238 = arith.addf %236, %237 : vector<8x512xf32>
    %239 = vector.extract_strided_slice %238 {offsets = [0, 0], sizes = [8, 128], strides = [1, 1]} : vector<8x512xf32> to vector<8x128xf32>
    %cst_83 = arith.constant 5.000000e-01 : f32
    %240 = vector.broadcast %cst_83 : f32 to vector<8x128xf32>
    %241 = arith.mulf %240, %239 : vector<8x128xf32>
    %242 = math.tanh %241 : vector<8x128xf32>
    %cst_84 = arith.constant 5.000000e-01 : f32
    %243 = vector.broadcast %cst_84 : f32 to vector<8x128xf32>
    %244 = arith.mulf %243, %242 : vector<8x128xf32>
    %cst_85 = arith.constant 5.000000e-01 : f32
    %245 = vector.broadcast %cst_85 : f32 to vector<8x128xf32>
    %246 = arith.addf %244, %245 : vector<8x128xf32>
    %247 = vector.extract_strided_slice %238 {offsets = [0, 128], sizes = [8, 128], strides = [1, 1]} : vector<8x512xf32> to vector<8x128xf32>
    %cst_86 = arith.constant 5.000000e-01 : f32
    %248 = vector.broadcast %cst_86 : f32 to vector<8x128xf32>
    %249 = arith.mulf %248, %247 : vector<8x128xf32>
    %250 = math.tanh %249 : vector<8x128xf32>
    %cst_87 = arith.constant 5.000000e-01 : f32
    %251 = vector.broadcast %cst_87 : f32 to vector<8x128xf32>
    %252 = arith.mulf %251, %250 : vector<8x128xf32>
    %cst_88 = arith.constant 5.000000e-01 : f32
    %253 = vector.broadcast %cst_88 : f32 to vector<8x128xf32>
    %254 = arith.addf %252, %253 : vector<8x128xf32>
    %255 = vector.extract_strided_slice %238 {offsets = [0, 256], sizes = [8, 128], strides = [1, 1]} : vector<8x512xf32> to vector<8x128xf32>
    %256 = math.tanh %255 : vector<8x128xf32>
    %257 = vector.extract_strided_slice %238 {offsets = [0, 384], sizes = [8, 128], strides = [1, 1]} : vector<8x512xf32> to vector<8x128xf32>
    %cst_89 = arith.constant 5.000000e-01 : f32
    %258 = vector.broadcast %cst_89 : f32 to vector<8x128xf32>
    %259 = arith.mulf %258, %257 : vector<8x128xf32>
    %260 = math.tanh %259 : vector<8x128xf32>
    %cst_90 = arith.constant 5.000000e-01 : f32
    %261 = vector.broadcast %cst_90 : f32 to vector<8x128xf32>
    %262 = arith.mulf %261, %260 : vector<8x128xf32>
    %cst_91 = arith.constant 5.000000e-01 : f32
    %263 = vector.broadcast %cst_91 : f32 to vector<8x128xf32>
    %264 = arith.addf %262, %263 : vector<8x128xf32>
    %265 = arith.mulf %254, %194 : vector<8x128xf32>
    %266 = arith.mulf %246, %256 : vector<8x128xf32>
    %267 = arith.addf %265, %266 : vector<8x128xf32>
    %268 = math.tanh %267 : vector<8x128xf32>
    %269 = arith.mulf %264, %268 : vector<8x128xf32>
    %270 = arith.truncf %269 : vector<8x128xf32> to vector<8x128xbf16>
    %271 = tpu.concatenate %270, %232 in 1 : vector<8x128xbf16>, vector<8x128xbf16> -> vector<8x256xbf16>
    %cst_92 = arith.constant dense<0.000000e+00> : vector<8x512xf32>
    %272 = tpu.matmul %271, %8, %cst_92 {dimension_numbers = #tpu.dot_dimension_numbers<[1], [0], [0], [1], [0, 0, 1, 1], [], []>} : vector<8x256xbf16>, vector<256x512xbf16>, vector<8x512xf32> -> vector<8x512xf32>
    %273 = arith.addf %272, %11 : vector<8x512xf32>
    %274 = vector.extract_strided_slice %273 {offsets = [0, 0], sizes = [8, 128], strides = [1, 1]} : vector<8x512xf32> to vector<8x128xf32>
    %cst_93 = arith.constant 5.000000e-01 : f32
    %275 = vector.broadcast %cst_93 : f32 to vector<8x128xf32>
    %276 = arith.mulf %275, %274 : vector<8x128xf32>
    %277 = math.tanh %276 : vector<8x128xf32>
    %cst_94 = arith.constant 5.000000e-01 : f32
    %278 = vector.broadcast %cst_94 : f32 to vector<8x128xf32>
    %279 = arith.mulf %278, %277 : vector<8x128xf32>
    %cst_95 = arith.constant 5.000000e-01 : f32
    %280 = vector.broadcast %cst_95 : f32 to vector<8x128xf32>
    %281 = arith.addf %279, %280 : vector<8x128xf32>
    %282 = vector.extract_strided_slice %273 {offsets = [0, 128], sizes = [8, 128], strides = [1, 1]} : vector<8x512xf32> to vector<8x128xf32>
    %cst_96 = arith.constant 5.000000e-01 : f32
    %283 = vector.broadcast %cst_96 : f32 to vector<8x128xf32>
    %284 = arith.mulf %283, %282 : vector<8x128xf32>
    %285 = math.tanh %284 : vector<8x128xf32>
    %cst_97 = arith.constant 5.000000e-01 : f32
    %286 = vector.broadcast %cst_97 : f32 to vector<8x128xf32>
    %287 = arith.mulf %286, %285 : vector<8x128xf32>
    %cst_98 = arith.constant 5.000000e-01 : f32
    %288 = vector.broadcast %cst_98 : f32 to vector<8x128xf32>
    %289 = arith.addf %287, %288 : vector<8x128xf32>
    %290 = vector.extract_strided_slice %273 {offsets = [0, 256], sizes = [8, 128], strides = [1, 1]} : vector<8x512xf32> to vector<8x128xf32>
    %291 = math.tanh %290 : vector<8x128xf32>
    %292 = vector.extract_strided_slice %273 {offsets = [0, 384], sizes = [8, 128], strides = [1, 1]} : vector<8x512xf32> to vector<8x128xf32>
    %cst_99 = arith.constant 5.000000e-01 : f32
    %293 = vector.broadcast %cst_99 : f32 to vector<8x128xf32>
    %294 = arith.mulf %293, %292 : vector<8x128xf32>
    %295 = math.tanh %294 : vector<8x128xf32>
    %cst_100 = arith.constant 5.000000e-01 : f32
    %296 = vector.broadcast %cst_100 : f32 to vector<8x128xf32>
    %297 = arith.mulf %296, %295 : vector<8x128xf32>
    %cst_101 = arith.constant 5.000000e-01 : f32
    %298 = vector.broadcast %cst_101 : f32 to vector<8x128xf32>
    %299 = arith.addf %297, %298 : vector<8x128xf32>
    %300 = arith.mulf %289, %229 : vector<8x128xf32>
    %301 = arith.mulf %281, %291 : vector<8x128xf32>
    %302 = arith.addf %300, %301 : vector<8x128xf32>
    %303 = math.tanh %302 : vector<8x128xf32>
    %304 = arith.mulf %299, %303 : vector<8x128xf32>
    %305 = arith.truncf %304 : vector<8x128xf32> to vector<8x128xbf16>
    %c4_i32 = arith.constant 4 : i32
    %c8_i32_102 = arith.constant 8 : i32
    %306 = arith.muli %c4_i32, %c8_i32_102 : i32
    %307 = tpu.assume_multiple %306, 8 : i32
    %308 = arith.index_cast %307 : i32 to index
    %c0_103 = arith.constant 0 : index
    %309 = vector.load %arg9[%308, %c0_103] : memref<64x512xf32, #tpu.memory_space<vmem>>, vector<8x512xf32>
    %cst_104 = arith.constant dense<0.000000e+00> : vector<8x512xf32>
    %310 = tpu.matmul %270, %7, %cst_104 {dimension_numbers = #tpu.dot_dimension_numbers<[1], [0], [0], [1], [0, 0, 1, 1], [], []>} : vector<8x128xbf16>, vector<128x512xbf16>, vector<8x512xf32> -> vector<8x512xf32>
    %311 = arith.addf %309, %310 : vector<8x512xf32>
    %312 = vector.extract_strided_slice %311 {offsets = [0, 0], sizes = [8, 128], strides = [1, 1]} : vector<8x512xf32> to vector<8x128xf32>
    %cst_105 = arith.constant 5.000000e-01 : f32
    %313 = vector.broadcast %cst_105 : f32 to vector<8x128xf32>
    %314 = arith.mulf %313, %312 : vector<8x128xf32>
    %315 = math.tanh %314 : vector<8x128xf32>
    %cst_106 = arith.constant 5.000000e-01 : f32
    %316 = vector.broadcast %cst_106 : f32 to vector<8x128xf32>
    %317 = arith.mulf %316, %315 : vector<8x128xf32>
    %cst_107 = arith.constant 5.000000e-01 : f32
    %318 = vector.broadcast %cst_107 : f32 to vector<8x128xf32>
    %319 = arith.addf %317, %318 : vector<8x128xf32>
    %320 = vector.extract_strided_slice %311 {offsets = [0, 128], sizes = [8, 128], strides = [1, 1]} : vector<8x512xf32> to vector<8x128xf32>
    %cst_108 = arith.constant 5.000000e-01 : f32
    %321 = vector.broadcast %cst_108 : f32 to vector<8x128xf32>
    %322 = arith.mulf %321, %320 : vector<8x128xf32>
    %323 = math.tanh %322 : vector<8x128xf32>
    %cst_109 = arith.constant 5.000000e-01 : f32
    %324 = vector.broadcast %cst_109 : f32 to vector<8x128xf32>
    %325 = arith.mulf %324, %323 : vector<8x128xf32>
    %cst_110 = arith.constant 5.000000e-01 : f32
    %326 = vector.broadcast %cst_110 : f32 to vector<8x128xf32>
    %327 = arith.addf %325, %326 : vector<8x128xf32>
    %328 = vector.extract_strided_slice %311 {offsets = [0, 256], sizes = [8, 128], strides = [1, 1]} : vector<8x512xf32> to vector<8x128xf32>
    %329 = math.tanh %328 : vector<8x128xf32>
    %330 = vector.extract_strided_slice %311 {offsets = [0, 384], sizes = [8, 128], strides = [1, 1]} : vector<8x512xf32> to vector<8x128xf32>
    %cst_111 = arith.constant 5.000000e-01 : f32
    %331 = vector.broadcast %cst_111 : f32 to vector<8x128xf32>
    %332 = arith.mulf %331, %330 : vector<8x128xf32>
    %333 = math.tanh %332 : vector<8x128xf32>
    %cst_112 = arith.constant 5.000000e-01 : f32
    %334 = vector.broadcast %cst_112 : f32 to vector<8x128xf32>
    %335 = arith.mulf %334, %333 : vector<8x128xf32>
    %cst_113 = arith.constant 5.000000e-01 : f32
    %336 = vector.broadcast %cst_113 : f32 to vector<8x128xf32>
    %337 = arith.addf %335, %336 : vector<8x128xf32>
    %338 = arith.mulf %327, %267 : vector<8x128xf32>
    %339 = arith.mulf %319, %329 : vector<8x128xf32>
    %340 = arith.addf %338, %339 : vector<8x128xf32>
    %341 = math.tanh %340 : vector<8x128xf32>
    %342 = arith.mulf %337, %341 : vector<8x128xf32>
    %343 = arith.truncf %342 : vector<8x128xf32> to vector<8x128xbf16>
    %344 = tpu.concatenate %343, %305 in 1 : vector<8x128xbf16>, vector<8x128xbf16> -> vector<8x256xbf16>
    %cst_114 = arith.constant dense<0.000000e+00> : vector<8x512xf32>
    %345 = tpu.matmul %344, %8, %cst_114 {dimension_numbers = #tpu.dot_dimension_numbers<[1], [0], [0], [1], [0, 0, 1, 1], [], []>} : vector<8x256xbf16>, vector<256x512xbf16>, vector<8x512xf32> -> vector<8x512xf32>
    %346 = arith.addf %345, %11 : vector<8x512xf32>
    %347 = vector.extract_strided_slice %346 {offsets = [0, 0], sizes = [8, 128], strides = [1, 1]} : vector<8x512xf32> to vector<8x128xf32>
    %cst_115 = arith.constant 5.000000e-01 : f32
    %348 = vector.broadcast %cst_115 : f32 to vector<8x128xf32>
    %349 = arith.mulf %348, %347 : vector<8x128xf32>
    %350 = math.tanh %349 : vector<8x128xf32>
    %cst_116 = arith.constant 5.000000e-01 : f32
    %351 = vector.broadcast %cst_116 : f32 to vector<8x128xf32>
    %352 = arith.mulf %351, %350 : vector<8x128xf32>
    %cst_117 = arith.constant 5.000000e-01 : f32
    %353 = vector.broadcast %cst_117 : f32 to vector<8x128xf32>
    %354 = arith.addf %352, %353 : vector<8x128xf32>
    %355 = vector.extract_strided_slice %346 {offsets = [0, 128], sizes = [8, 128], strides = [1, 1]} : vector<8x512xf32> to vector<8x128xf32>
    %cst_118 = arith.constant 5.000000e-01 : f32
    %356 = vector.broadcast %cst_118 : f32 to vector<8x128xf32>
    %357 = arith.mulf %356, %355 : vector<8x128xf32>
    %358 = math.tanh %357 : vector<8x128xf32>
    %cst_119 = arith.constant 5.000000e-01 : f32
    %359 = vector.broadcast %cst_119 : f32 to vector<8x128xf32>
    %360 = arith.mulf %359, %358 : vector<8x128xf32>
    %cst_120 = arith.constant 5.000000e-01 : f32
    %361 = vector.broadcast %cst_120 : f32 to vector<8x128xf32>
    %362 = arith.addf %360, %361 : vector<8x128xf32>
    %363 = vector.extract_strided_slice %346 {offsets = [0, 256], sizes = [8, 128], strides = [1, 1]} : vector<8x512xf32> to vector<8x128xf32>
    %364 = math.tanh %363 : vector<8x128xf32>
    %365 = vector.extract_strided_slice %346 {offsets = [0, 384], sizes = [8, 128], strides = [1, 1]} : vector<8x512xf32> to vector<8x128xf32>
    %cst_121 = arith.constant 5.000000e-01 : f32
    %366 = vector.broadcast %cst_121 : f32 to vector<8x128xf32>
    %367 = arith.mulf %366, %365 : vector<8x128xf32>
    %368 = math.tanh %367 : vector<8x128xf32>
    %cst_122 = arith.constant 5.000000e-01 : f32
    %369 = vector.broadcast %cst_122 : f32 to vector<8x128xf32>
    %370 = arith.mulf %369, %368 : vector<8x128xf32>
    %cst_123 = arith.constant 5.000000e-01 : f32
    %371 = vector.broadcast %cst_123 : f32 to vector<8x128xf32>
    %372 = arith.addf %370, %371 : vector<8x128xf32>
    %373 = arith.mulf %362, %302 : vector<8x128xf32>
    %374 = arith.mulf %354, %364 : vector<8x128xf32>
    %375 = arith.addf %373, %374 : vector<8x128xf32>
    %376 = math.tanh %375 : vector<8x128xf32>
    %377 = arith.mulf %372, %376 : vector<8x128xf32>
    %378 = arith.truncf %377 : vector<8x128xf32> to vector<8x128xbf16>
    %c5_i32 = arith.constant 5 : i32
    %c8_i32_124 = arith.constant 8 : i32
    %379 = arith.muli %c5_i32, %c8_i32_124 : i32
    %380 = tpu.assume_multiple %379, 8 : i32
    %381 = arith.index_cast %380 : i32 to index
    %c0_125 = arith.constant 0 : index
    %382 = vector.load %arg9[%381, %c0_125] : memref<64x512xf32, #tpu.memory_space<vmem>>, vector<8x512xf32>
    %cst_126 = arith.constant dense<0.000000e+00> : vector<8x512xf32>
    %383 = tpu.matmul %343, %7, %cst_126 {dimension_numbers = #tpu.dot_dimension_numbers<[1], [0], [0], [1], [0, 0, 1, 1], [], []>} : vector<8x128xbf16>, vector<128x512xbf16>, vector<8x512xf32> -> vector<8x512xf32>
    %384 = arith.addf %382, %383 : vector<8x512xf32>
    %385 = vector.extract_strided_slice %384 {offsets = [0, 0], sizes = [8, 128], strides = [1, 1]} : vector<8x512xf32> to vector<8x128xf32>
    %cst_127 = arith.constant 5.000000e-01 : f32
    %386 = vector.broadcast %cst_127 : f32 to vector<8x128xf32>
    %387 = arith.mulf %386, %385 : vector<8x128xf32>
    %388 = math.tanh %387 : vector<8x128xf32>
    %cst_128 = arith.constant 5.000000e-01 : f32
    %389 = vector.broadcast %cst_128 : f32 to vector<8x128xf32>
    %390 = arith.mulf %389, %388 : vector<8x128xf32>
    %cst_129 = arith.constant 5.000000e-01 : f32
    %391 = vector.broadcast %cst_129 : f32 to vector<8x128xf32>
    %392 = arith.addf %390, %391 : vector<8x128xf32>
    %393 = vector.extract_strided_slice %384 {offsets = [0, 128], sizes = [8, 128], strides = [1, 1]} : vector<8x512xf32> to vector<8x128xf32>
    %cst_130 = arith.constant 5.000000e-01 : f32
    %394 = vector.broadcast %cst_130 : f32 to vector<8x128xf32>
    %395 = arith.mulf %394, %393 : vector<8x128xf32>
    %396 = math.tanh %395 : vector<8x128xf32>
    %cst_131 = arith.constant 5.000000e-01 : f32
    %397 = vector.broadcast %cst_131 : f32 to vector<8x128xf32>
    %398 = arith.mulf %397, %396 : vector<8x128xf32>
    %cst_132 = arith.constant 5.000000e-01 : f32
    %399 = vector.broadcast %cst_132 : f32 to vector<8x128xf32>
    %400 = arith.addf %398, %399 : vector<8x128xf32>
    %401 = vector.extract_strided_slice %384 {offsets = [0, 256], sizes = [8, 128], strides = [1, 1]} : vector<8x512xf32> to vector<8x128xf32>
    %402 = math.tanh %401 : vector<8x128xf32>
    %403 = vector.extract_strided_slice %384 {offsets = [0, 384], sizes = [8, 128], strides = [1, 1]} : vector<8x512xf32> to vector<8x128xf32>
    %cst_133 = arith.constant 5.000000e-01 : f32
    %404 = vector.broadcast %cst_133 : f32 to vector<8x128xf32>
    %405 = arith.mulf %404, %403 : vector<8x128xf32>
    %406 = math.tanh %405 : vector<8x128xf32>
    %cst_134 = arith.constant 5.000000e-01 : f32
    %407 = vector.broadcast %cst_134 : f32 to vector<8x128xf32>
    %408 = arith.mulf %407, %406 : vector<8x128xf32>
    %cst_135 = arith.constant 5.000000e-01 : f32
    %409 = vector.broadcast %cst_135 : f32 to vector<8x128xf32>
    %410 = arith.addf %408, %409 : vector<8x128xf32>
    %411 = arith.mulf %400, %340 : vector<8x128xf32>
    %412 = arith.mulf %392, %402 : vector<8x128xf32>
    %413 = arith.addf %411, %412 : vector<8x128xf32>
    %414 = math.tanh %413 : vector<8x128xf32>
    %415 = arith.mulf %410, %414 : vector<8x128xf32>
    %416 = arith.truncf %415 : vector<8x128xf32> to vector<8x128xbf16>
    %417 = tpu.concatenate %416, %378 in 1 : vector<8x128xbf16>, vector<8x128xbf16> -> vector<8x256xbf16>
    %cst_136 = arith.constant dense<0.000000e+00> : vector<8x512xf32>
    %418 = tpu.matmul %417, %8, %cst_136 {dimension_numbers = #tpu.dot_dimension_numbers<[1], [0], [0], [1], [0, 0, 1, 1], [], []>} : vector<8x256xbf16>, vector<256x512xbf16>, vector<8x512xf32> -> vector<8x512xf32>
    %419 = arith.addf %418, %11 : vector<8x512xf32>
    %420 = vector.extract_strided_slice %419 {offsets = [0, 0], sizes = [8, 128], strides = [1, 1]} : vector<8x512xf32> to vector<8x128xf32>
    %cst_137 = arith.constant 5.000000e-01 : f32
    %421 = vector.broadcast %cst_137 : f32 to vector<8x128xf32>
    %422 = arith.mulf %421, %420 : vector<8x128xf32>
    %423 = math.tanh %422 : vector<8x128xf32>
    %cst_138 = arith.constant 5.000000e-01 : f32
    %424 = vector.broadcast %cst_138 : f32 to vector<8x128xf32>
    %425 = arith.mulf %424, %423 : vector<8x128xf32>
    %cst_139 = arith.constant 5.000000e-01 : f32
    %426 = vector.broadcast %cst_139 : f32 to vector<8x128xf32>
    %427 = arith.addf %425, %426 : vector<8x128xf32>
    %428 = vector.extract_strided_slice %419 {offsets = [0, 128], sizes = [8, 128], strides = [1, 1]} : vector<8x512xf32> to vector<8x128xf32>
    %cst_140 = arith.constant 5.000000e-01 : f32
    %429 = vector.broadcast %cst_140 : f32 to vector<8x128xf32>
    %430 = arith.mulf %429, %428 : vector<8x128xf32>
    %431 = math.tanh %430 : vector<8x128xf32>
    %cst_141 = arith.constant 5.000000e-01 : f32
    %432 = vector.broadcast %cst_141 : f32 to vector<8x128xf32>
    %433 = arith.mulf %432, %431 : vector<8x128xf32>
    %cst_142 = arith.constant 5.000000e-01 : f32
    %434 = vector.broadcast %cst_142 : f32 to vector<8x128xf32>
    %435 = arith.addf %433, %434 : vector<8x128xf32>
    %436 = vector.extract_strided_slice %419 {offsets = [0, 256], sizes = [8, 128], strides = [1, 1]} : vector<8x512xf32> to vector<8x128xf32>
    %437 = math.tanh %436 : vector<8x128xf32>
    %438 = vector.extract_strided_slice %419 {offsets = [0, 384], sizes = [8, 128], strides = [1, 1]} : vector<8x512xf32> to vector<8x128xf32>
    %cst_143 = arith.constant 5.000000e-01 : f32
    %439 = vector.broadcast %cst_143 : f32 to vector<8x128xf32>
    %440 = arith.mulf %439, %438 : vector<8x128xf32>
    %441 = math.tanh %440 : vector<8x128xf32>
    %cst_144 = arith.constant 5.000000e-01 : f32
    %442 = vector.broadcast %cst_144 : f32 to vector<8x128xf32>
    %443 = arith.mulf %442, %441 : vector<8x128xf32>
    %cst_145 = arith.constant 5.000000e-01 : f32
    %444 = vector.broadcast %cst_145 : f32 to vector<8x128xf32>
    %445 = arith.addf %443, %444 : vector<8x128xf32>
    %446 = arith.mulf %435, %375 : vector<8x128xf32>
    %447 = arith.mulf %427, %437 : vector<8x128xf32>
    %448 = arith.addf %446, %447 : vector<8x128xf32>
    %449 = math.tanh %448 : vector<8x128xf32>
    %450 = arith.mulf %445, %449 : vector<8x128xf32>
    %451 = arith.truncf %450 : vector<8x128xf32> to vector<8x128xbf16>
    %c6_i32 = arith.constant 6 : i32
    %c8_i32_146 = arith.constant 8 : i32
    %452 = arith.muli %c6_i32, %c8_i32_146 : i32
    %453 = tpu.assume_multiple %452, 8 : i32
    %454 = arith.index_cast %453 : i32 to index
    %c0_147 = arith.constant 0 : index
    %455 = vector.load %arg9[%454, %c0_147] : memref<64x512xf32, #tpu.memory_space<vmem>>, vector<8x512xf32>
    %cst_148 = arith.constant dense<0.000000e+00> : vector<8x512xf32>
    %456 = tpu.matmul %416, %7, %cst_148 {dimension_numbers = #tpu.dot_dimension_numbers<[1], [0], [0], [1], [0, 0, 1, 1], [], []>} : vector<8x128xbf16>, vector<128x512xbf16>, vector<8x512xf32> -> vector<8x512xf32>
    %457 = arith.addf %455, %456 : vector<8x512xf32>
    %458 = vector.extract_strided_slice %457 {offsets = [0, 0], sizes = [8, 128], strides = [1, 1]} : vector<8x512xf32> to vector<8x128xf32>
    %cst_149 = arith.constant 5.000000e-01 : f32
    %459 = vector.broadcast %cst_149 : f32 to vector<8x128xf32>
    %460 = arith.mulf %459, %458 : vector<8x128xf32>
    %461 = math.tanh %460 : vector<8x128xf32>
    %cst_150 = arith.constant 5.000000e-01 : f32
    %462 = vector.broadcast %cst_150 : f32 to vector<8x128xf32>
    %463 = arith.mulf %462, %461 : vector<8x128xf32>
    %cst_151 = arith.constant 5.000000e-01 : f32
    %464 = vector.broadcast %cst_151 : f32 to vector<8x128xf32>
    %465 = arith.addf %463, %464 : vector<8x128xf32>
    %466 = vector.extract_strided_slice %457 {offsets = [0, 128], sizes = [8, 128], strides = [1, 1]} : vector<8x512xf32> to vector<8x128xf32>
    %cst_152 = arith.constant 5.000000e-01 : f32
    %467 = vector.broadcast %cst_152 : f32 to vector<8x128xf32>
    %468 = arith.mulf %467, %466 : vector<8x128xf32>
    %469 = math.tanh %468 : vector<8x128xf32>
    %cst_153 = arith.constant 5.000000e-01 : f32
    %470 = vector.broadcast %cst_153 : f32 to vector<8x128xf32>
    %471 = arith.mulf %470, %469 : vector<8x128xf32>
    %cst_154 = arith.constant 5.000000e-01 : f32
    %472 = vector.broadcast %cst_154 : f32 to vector<8x128xf32>
    %473 = arith.addf %471, %472 : vector<8x128xf32>
    %474 = vector.extract_strided_slice %457 {offsets = [0, 256], sizes = [8, 128], strides = [1, 1]} : vector<8x512xf32> to vector<8x128xf32>
    %475 = math.tanh %474 : vector<8x128xf32>
    %476 = vector.extract_strided_slice %457 {offsets = [0, 384], sizes = [8, 128], strides = [1, 1]} : vector<8x512xf32> to vector<8x128xf32>
    %cst_155 = arith.constant 5.000000e-01 : f32
    %477 = vector.broadcast %cst_155 : f32 to vector<8x128xf32>
    %478 = arith.mulf %477, %476 : vector<8x128xf32>
    %479 = math.tanh %478 : vector<8x128xf32>
    %cst_156 = arith.constant 5.000000e-01 : f32
    %480 = vector.broadcast %cst_156 : f32 to vector<8x128xf32>
    %481 = arith.mulf %480, %479 : vector<8x128xf32>
    %cst_157 = arith.constant 5.000000e-01 : f32
    %482 = vector.broadcast %cst_157 : f32 to vector<8x128xf32>
    %483 = arith.addf %481, %482 : vector<8x128xf32>
    %484 = arith.mulf %473, %413 : vector<8x128xf32>
    %485 = arith.mulf %465, %475 : vector<8x128xf32>
    %486 = arith.addf %484, %485 : vector<8x128xf32>
    %487 = math.tanh %486 : vector<8x128xf32>
    %488 = arith.mulf %483, %487 : vector<8x128xf32>
    %489 = arith.truncf %488 : vector<8x128xf32> to vector<8x128xbf16>
    %490 = tpu.concatenate %489, %451 in 1 : vector<8x128xbf16>, vector<8x128xbf16> -> vector<8x256xbf16>
    %cst_158 = arith.constant dense<0.000000e+00> : vector<8x512xf32>
    %491 = tpu.matmul %490, %8, %cst_158 {dimension_numbers = #tpu.dot_dimension_numbers<[1], [0], [0], [1], [0, 0, 1, 1], [], []>} : vector<8x256xbf16>, vector<256x512xbf16>, vector<8x512xf32> -> vector<8x512xf32>
    %492 = arith.addf %491, %11 : vector<8x512xf32>
    %493 = vector.extract_strided_slice %492 {offsets = [0, 0], sizes = [8, 128], strides = [1, 1]} : vector<8x512xf32> to vector<8x128xf32>
    %cst_159 = arith.constant 5.000000e-01 : f32
    %494 = vector.broadcast %cst_159 : f32 to vector<8x128xf32>
    %495 = arith.mulf %494, %493 : vector<8x128xf32>
    %496 = math.tanh %495 : vector<8x128xf32>
    %cst_160 = arith.constant 5.000000e-01 : f32
    %497 = vector.broadcast %cst_160 : f32 to vector<8x128xf32>
    %498 = arith.mulf %497, %496 : vector<8x128xf32>
    %cst_161 = arith.constant 5.000000e-01 : f32
    %499 = vector.broadcast %cst_161 : f32 to vector<8x128xf32>
    %500 = arith.addf %498, %499 : vector<8x128xf32>
    %501 = vector.extract_strided_slice %492 {offsets = [0, 128], sizes = [8, 128], strides = [1, 1]} : vector<8x512xf32> to vector<8x128xf32>
    %cst_162 = arith.constant 5.000000e-01 : f32
    %502 = vector.broadcast %cst_162 : f32 to vector<8x128xf32>
    %503 = arith.mulf %502, %501 : vector<8x128xf32>
    %504 = math.tanh %503 : vector<8x128xf32>
    %cst_163 = arith.constant 5.000000e-01 : f32
    %505 = vector.broadcast %cst_163 : f32 to vector<8x128xf32>
    %506 = arith.mulf %505, %504 : vector<8x128xf32>
    %cst_164 = arith.constant 5.000000e-01 : f32
    %507 = vector.broadcast %cst_164 : f32 to vector<8x128xf32>
    %508 = arith.addf %506, %507 : vector<8x128xf32>
    %509 = vector.extract_strided_slice %492 {offsets = [0, 256], sizes = [8, 128], strides = [1, 1]} : vector<8x512xf32> to vector<8x128xf32>
    %510 = math.tanh %509 : vector<8x128xf32>
    %511 = vector.extract_strided_slice %492 {offsets = [0, 384], sizes = [8, 128], strides = [1, 1]} : vector<8x512xf32> to vector<8x128xf32>
    %cst_165 = arith.constant 5.000000e-01 : f32
    %512 = vector.broadcast %cst_165 : f32 to vector<8x128xf32>
    %513 = arith.mulf %512, %511 : vector<8x128xf32>
    %514 = math.tanh %513 : vector<8x128xf32>
    %cst_166 = arith.constant 5.000000e-01 : f32
    %515 = vector.broadcast %cst_166 : f32 to vector<8x128xf32>
    %516 = arith.mulf %515, %514 : vector<8x128xf32>
    %cst_167 = arith.constant 5.000000e-01 : f32
    %517 = vector.broadcast %cst_167 : f32 to vector<8x128xf32>
    %518 = arith.addf %516, %517 : vector<8x128xf32>
    %519 = arith.mulf %508, %448 : vector<8x128xf32>
    %520 = arith.mulf %500, %510 : vector<8x128xf32>
    %521 = arith.addf %519, %520 : vector<8x128xf32>
    %522 = math.tanh %521 : vector<8x128xf32>
    %523 = arith.mulf %518, %522 : vector<8x128xf32>
    %524 = arith.truncf %523 : vector<8x128xf32> to vector<8x128xbf16>
    %c7_i32 = arith.constant 7 : i32
    %c8_i32_168 = arith.constant 8 : i32
    %525 = arith.muli %c7_i32, %c8_i32_168 : i32
    %526 = tpu.assume_multiple %525, 8 : i32
    %527 = arith.index_cast %526 : i32 to index
    %c0_169 = arith.constant 0 : index
    %528 = vector.load %arg9[%527, %c0_169] : memref<64x512xf32, #tpu.memory_space<vmem>>, vector<8x512xf32>
    %cst_170 = arith.constant dense<0.000000e+00> : vector<8x512xf32>
    %529 = tpu.matmul %489, %7, %cst_170 {dimension_numbers = #tpu.dot_dimension_numbers<[1], [0], [0], [1], [0, 0, 1, 1], [], []>} : vector<8x128xbf16>, vector<128x512xbf16>, vector<8x512xf32> -> vector<8x512xf32>
    %530 = arith.addf %528, %529 : vector<8x512xf32>
    %531 = vector.extract_strided_slice %530 {offsets = [0, 0], sizes = [8, 128], strides = [1, 1]} : vector<8x512xf32> to vector<8x128xf32>
    %cst_171 = arith.constant 5.000000e-01 : f32
    %532 = vector.broadcast %cst_171 : f32 to vector<8x128xf32>
    %533 = arith.mulf %532, %531 : vector<8x128xf32>
    %534 = math.tanh %533 : vector<8x128xf32>
    %cst_172 = arith.constant 5.000000e-01 : f32
    %535 = vector.broadcast %cst_172 : f32 to vector<8x128xf32>
    %536 = arith.mulf %535, %534 : vector<8x128xf32>
    %cst_173 = arith.constant 5.000000e-01 : f32
    %537 = vector.broadcast %cst_173 : f32 to vector<8x128xf32>
    %538 = arith.addf %536, %537 : vector<8x128xf32>
    %539 = vector.extract_strided_slice %530 {offsets = [0, 128], sizes = [8, 128], strides = [1, 1]} : vector<8x512xf32> to vector<8x128xf32>
    %cst_174 = arith.constant 5.000000e-01 : f32
    %540 = vector.broadcast %cst_174 : f32 to vector<8x128xf32>
    %541 = arith.mulf %540, %539 : vector<8x128xf32>
    %542 = math.tanh %541 : vector<8x128xf32>
    %cst_175 = arith.constant 5.000000e-01 : f32
    %543 = vector.broadcast %cst_175 : f32 to vector<8x128xf32>
    %544 = arith.mulf %543, %542 : vector<8x128xf32>
    %cst_176 = arith.constant 5.000000e-01 : f32
    %545 = vector.broadcast %cst_176 : f32 to vector<8x128xf32>
    %546 = arith.addf %544, %545 : vector<8x128xf32>
    %547 = vector.extract_strided_slice %530 {offsets = [0, 256], sizes = [8, 128], strides = [1, 1]} : vector<8x512xf32> to vector<8x128xf32>
    %548 = math.tanh %547 : vector<8x128xf32>
    %549 = vector.extract_strided_slice %530 {offsets = [0, 384], sizes = [8, 128], strides = [1, 1]} : vector<8x512xf32> to vector<8x128xf32>
    %cst_177 = arith.constant 5.000000e-01 : f32
    %550 = vector.broadcast %cst_177 : f32 to vector<8x128xf32>
    %551 = arith.mulf %550, %549 : vector<8x128xf32>
    %552 = math.tanh %551 : vector<8x128xf32>
    %cst_178 = arith.constant 5.000000e-01 : f32
    %553 = vector.broadcast %cst_178 : f32 to vector<8x128xf32>
    %554 = arith.mulf %553, %552 : vector<8x128xf32>
    %cst_179 = arith.constant 5.000000e-01 : f32
    %555 = vector.broadcast %cst_179 : f32 to vector<8x128xf32>
    %556 = arith.addf %554, %555 : vector<8x128xf32>
    %557 = arith.mulf %546, %486 : vector<8x128xf32>
    %558 = arith.mulf %538, %548 : vector<8x128xf32>
    %559 = arith.addf %557, %558 : vector<8x128xf32>
    %560 = math.tanh %559 : vector<8x128xf32>
    %561 = arith.mulf %556, %560 : vector<8x128xf32>
    %562 = arith.truncf %561 : vector<8x128xf32> to vector<8x128xbf16>
    %563 = tpu.concatenate %562, %524 in 1 : vector<8x128xbf16>, vector<8x128xbf16> -> vector<8x256xbf16>
    %cst_180 = arith.constant dense<0.000000e+00> : vector<8x512xf32>
    %564 = tpu.matmul %563, %8, %cst_180 {dimension_numbers = #tpu.dot_dimension_numbers<[1], [0], [0], [1], [0, 0, 1, 1], [], []>} : vector<8x256xbf16>, vector<256x512xbf16>, vector<8x512xf32> -> vector<8x512xf32>
    %565 = arith.addf %564, %11 : vector<8x512xf32>
    %566 = vector.extract_strided_slice %565 {offsets = [0, 0], sizes = [8, 128], strides = [1, 1]} : vector<8x512xf32> to vector<8x128xf32>
    %cst_181 = arith.constant 5.000000e-01 : f32
    %567 = vector.broadcast %cst_181 : f32 to vector<8x128xf32>
    %568 = arith.mulf %567, %566 : vector<8x128xf32>
    %569 = math.tanh %568 : vector<8x128xf32>
    %cst_182 = arith.constant 5.000000e-01 : f32
    %570 = vector.broadcast %cst_182 : f32 to vector<8x128xf32>
    %571 = arith.mulf %570, %569 : vector<8x128xf32>
    %cst_183 = arith.constant 5.000000e-01 : f32
    %572 = vector.broadcast %cst_183 : f32 to vector<8x128xf32>
    %573 = arith.addf %571, %572 : vector<8x128xf32>
    %574 = vector.extract_strided_slice %565 {offsets = [0, 128], sizes = [8, 128], strides = [1, 1]} : vector<8x512xf32> to vector<8x128xf32>
    %cst_184 = arith.constant 5.000000e-01 : f32
    %575 = vector.broadcast %cst_184 : f32 to vector<8x128xf32>
    %576 = arith.mulf %575, %574 : vector<8x128xf32>
    %577 = math.tanh %576 : vector<8x128xf32>
    %cst_185 = arith.constant 5.000000e-01 : f32
    %578 = vector.broadcast %cst_185 : f32 to vector<8x128xf32>
    %579 = arith.mulf %578, %577 : vector<8x128xf32>
    %cst_186 = arith.constant 5.000000e-01 : f32
    %580 = vector.broadcast %cst_186 : f32 to vector<8x128xf32>
    %581 = arith.addf %579, %580 : vector<8x128xf32>
    %582 = vector.extract_strided_slice %565 {offsets = [0, 256], sizes = [8, 128], strides = [1, 1]} : vector<8x512xf32> to vector<8x128xf32>
    %583 = math.tanh %582 : vector<8x128xf32>
    %584 = vector.extract_strided_slice %565 {offsets = [0, 384], sizes = [8, 128], strides = [1, 1]} : vector<8x512xf32> to vector<8x128xf32>
    %cst_187 = arith.constant 5.000000e-01 : f32
    %585 = vector.broadcast %cst_187 : f32 to vector<8x128xf32>
    %586 = arith.mulf %585, %584 : vector<8x128xf32>
    %587 = math.tanh %586 : vector<8x128xf32>
    %cst_188 = arith.constant 5.000000e-01 : f32
    %588 = vector.broadcast %cst_188 : f32 to vector<8x128xf32>
    %589 = arith.mulf %588, %587 : vector<8x128xf32>
    %cst_189 = arith.constant 5.000000e-01 : f32
    %590 = vector.broadcast %cst_189 : f32 to vector<8x128xf32>
    %591 = arith.addf %589, %590 : vector<8x128xf32>
    %592 = arith.mulf %581, %521 : vector<8x128xf32>
    %593 = arith.mulf %573, %583 : vector<8x128xf32>
    %594 = arith.addf %592, %593 : vector<8x128xf32>
    %595 = math.tanh %594 : vector<8x128xf32>
    %596 = arith.mulf %591, %595 : vector<8x128xf32>
    %597 = arith.truncf %596 : vector<8x128xf32> to vector<8x128xbf16>
    %c8_i32_190 = arith.constant 8 : i32
    %598 = arith.extf %597 : vector<8x128xbf16> to vector<8x128xf32>
    %c0_191 = arith.constant 0 : index
    %c0_192 = arith.constant 0 : index
    %599 = vector.load %arg6[%c0_191, %c0_192] : memref<128x1xf32, #tpu.memory_space<vmem>>, vector<128x1xf32>
    %cst_193 = arith.constant dense<0.000000e+00> : vector<8x1xf32>
    %600 = tpu.matmul %598, %599, %cst_193 {dimension_numbers = #tpu.dot_dimension_numbers<[1], [0], [0], [1], [0, 0, 1, 1], [], []>} : vector<8x128xf32>, vector<128x1xf32>, vector<8x1xf32> -> vector<8x1xf32>
    %c0_194 = arith.constant 0 : index
    %c0_195 = arith.constant 0 : index
    %601 = vector.load %arg7[%c0_194, %c0_195] : memref<1x1xf32, #tpu.memory_space<vmem>>, vector<1x1xf32>
    %602 = vector.broadcast %601 : vector<1x1xf32> to vector<8x1xf32>
    %603 = arith.addf %600, %602 : vector<8x1xf32>
    %c0_196 = arith.constant 0 : index
    %c0_197 = arith.constant 0 : index
    %604 = vector.load %arg8[%c0_196, %c0_197] : memref<8x1xf32, #tpu.memory_space<vmem>>, vector<8x1xf32>
    tpu.vector_store %arg8[%c0_196, %c0_197], %603 {strides = array<i32>} : memref<8x1xf32, #tpu.memory_space<vmem>>, vector<8x1xf32>,
    return
  }
}

</mosaic_0001>

<bundles_post_ra>
// kernel: lstm_model_forward.1
= control target key start
LH: loop header
LB: loop body
LE: loop exit
PB: predicated region body
PF: predicated region fallthrough
CT: control target
= control target key end

     0   :  { %s5534_s0 = inlined_call_operand.vmem [shape: bf16[64,128], index: 0, kind: input, shape index: {}]   ;;  %s5535_s1 = inlined_call_operand.hbm [shape: bf16[128,512], index: 1, kind: input, shape index: {}]   ;;  %s5536_s2 = inlined_call_operand.vmem [shape: f32[1,512], index: 2, kind: input, shape index: {}]   ;;  %s5537_s3 = inlined_call_operand.hbm [shape: bf16[128,512], index: 3, kind: input, shape index: {}]   ;;  %s5538_s4 = inlined_call_operand.hbm [shape: bf16[256,512], index: 4, kind: input, shape index: {}]   ;;  %s5539_s5 = inlined_call_operand.vmem [shape: f32[1,512], index: 5, kind: input, shape index: {}]   ;;  %s5540_s6 = inlined_call_operand.vmem [shape: f32[128,1], index: 6, kind: input, shape index: {}]   ;;  %s5541_s7 = inlined_call_operand.<no memory space> [shape: f32[1,1], index: 7, kind: input, shape index: {}]   ;;  %s5542_s8 = inlined_call_operand.vmem [shape: f32[8,1], index: 8, kind: output, shape index: {}]  }
   0x1   :  { %v13_v0 = vstv %s5541_s7 }
   0x2   :  { %14 = vst [vmem:[#allocation3] sm:$0x1] %v13_v0 }
   0x3   :  { %15 = vsyncpa [#allocation5], 0 }
   0x4   :  { %16 = vsyncpa [#allocation7], 0  ;;  %s3744_s29 = smov [#allocation6]   ;;  %s3745_s9 = smov [#allocation4]  }
   0x5   :  { %s38_s30 = sshll.u32 %s3744_s29, 4  ;;  %s24_s10 = sshll.u32 %s3745_s9, 4  ;;  %s39_s30 = int_to_ptr.vmem [resolvable:$true] %s38_s30  ;;  %s3801_s10 = int_to_ptr.vmem [resolvable:$true] %s24_s10 }
   0x6   :  { %s3674_s13 = scalar_lea.hbm %s5537_s3, 4096 }
   0x7   :  { %p3675_p0 = scmp.ne.s32.totalorder %s5537_s3, %s3674_s13  ;;  %p3678_p1 = scmp.lt.u32.totalorder %s3674_s13, %s5537_s3 }
   0x9   :  { %p3680_p2 = pnand %p3678_p1, %p3675_p0 }
   0xb   :  { %3683 = shalt.err (!%p3680_p2)
}
   0xc   :  { %s3684_s17 = scalar_lea.vmem %s39_s30, 4096  ;;  %p3689_p4 = scmp.lt.s32.totalorder %s39_s30, %s39_s30 }
   0xd   :  { %p3685_p3 = scmp.ne.s32.totalorder %s39_s30, %s3684_s17  ;;  %p3690_p5 = scmp.lt.s32.totalorder %s3684_s17, %s3684_s17 }
   0xf   :  { %p3691_p6 = por %p3690_p5, %p3689_p4 }
  0x11   :  { %p3692_p7 = pnand %p3691_p6, %p3685_p3 }
  0x13   :  { %3695 = shalt.err (!%p3692_p7)
}
  0x14   :  { %s3746_s18 = smov 256   ;;  %s3747_s19 = smov 16  }
  0x15   :  { %44 = dma.hbm_to_vmem [thread:$0]  %s5537_s3, 4096, %s39_s30, [#allocation7], %s3746_s18, %s3746_s18, %s3747_s19  }
  0x16   :  { %s3696_s24 = scalar_lea.hbm %s5535_s1, 4096 }
  0x17   :  { %p3697_p8 = scmp.ne.s32.totalorder %s5535_s1, %s3696_s24  ;;  %p3700_p9 = scmp.lt.u32.totalorder %s3696_s24, %s5535_s1 }
  0x19   :  { %p3702_p10 = pnand %p3700_p9, %p3697_p8 }
  0x1b   :  { %3705 = shalt.err (!%p3702_p10)
}
  0x1c   :  { %s3706_s29 = scalar_lea.vmem %s3801_s10, 4096  ;;  %p3711_p12 = scmp.lt.s32.totalorder %s3801_s10, %s3801_s10 }
  0x1d   :  { %p3707_p11 = scmp.ne.s32.totalorder %s3801_s10, %s3706_s29  ;;  %p3712_p13 = scmp.lt.s32.totalorder %s3706_s29, %s3706_s29 }
  0x1f   :  { %p3713_p0 = por %p3712_p13, %p3711_p12 }
  0x21   :  { %p3714_p1 = pnand %p3713_p0, %p3707_p11 }
  0x23   :  { %3717 = shalt.err (!%p3714_p1)
}
  0x24   :  { %30 = dma.hbm_to_vmem [thread:$0]  %s5535_s1, 4096, %s3801_s10, [#allocation5], %s3746_s18, %s3746_s18, %s3747_s19  }
  0x25   :  { %s3748_s9 = smov [#allocation8]   ;;  %s3718_s14 = scalar_lea.hbm %s5538_s4, 8192 }
  0x26   :  { %s50_s11 = sshll.u32 %s3748_s9, 4  ;;  %p3719_p2 = scmp.ne.s32.totalorder %s5538_s4, %s3718_s14  ;;  %s51_s11 = int_to_ptr.vmem [resolvable:$true] %s50_s11 }
  0x27   :  { %p3722_p3 = scmp.lt.u32.totalorder %s3718_s14, %s5538_s4 }
  0x29   :  { %p3724_p4 = pnand %p3722_p3, %p3719_p2 }
  0x2b   :  { %3727 = shalt.err (!%p3724_p4)
}
  0x2c   :  { %s3728_s20 = scalar_lea.vmem %s51_s11, 8192  ;;  %p3733_p6 = scmp.lt.s32.totalorder %s51_s11, %s51_s11 }
  0x2d   :  { %p3729_p5 = scmp.ne.s32.totalorder %s51_s11, %s3728_s20  ;;  %p3734_p7 = scmp.lt.s32.totalorder %s3728_s20, %s3728_s20 }
  0x2f   :  { %p3735_p8 = por %p3734_p7, %p3733_p6 }
  0x31   :  { %p3736_p9 = pnand %p3735_p8, %p3729_p5 }
  0x33   :  { %3739 = shalt.err (!%p3736_p9)
}
  0x34   :  { %56 = dma.hbm_to_vmem [thread:$0]  %s5538_s4, 8192, %s51_s11, [#allocation7], %s3746_s18, %s3746_s18, %s3747_s19  }
  0x35   :  { %3740 = dma.done.wait [#allocation5], 4096  }
  0x36   :  { %3741 = vsyncadd [#allocation5], 4294963200 }
  0x37   :  { %3742 = dma.done.wait [#allocation7], 12288  }
  0x38   :  { %3743 = vsyncadd [#allocation7], 4294955008  ;;  %v5543_v1 = vmov 0   ;;  %v3126_v2 = vld [vmem:[#allocation4 + $0x4] ss:$16 sps:$4 sm:$0xff]   ;;  %vm3751_vm0 = vmmov 0  }
  0x39   :  { %351 = vmatprep.mubr.bf16.mxu0 %v5543_v1  ;;  %424 = vmatprep.mubr.bf16.mxu1 %v5543_v1  ;;  %v3128_v3 = vld [vmem:[#allocation4 + $0xc] ss:$16 sps:$4 sm:$0xff]   ;;  %v3130_v4 = vld [vmem:[#allocation4] ss:$16 sps:$4 sm:$0xff]   ;;  %v3131_v5 = vld [vmem:[#allocation4 + $0x8] ss:$16 sps:$4 sm:$0xff]  }
  0x3a   :  { %319 = vmatprep.subr.bf16.mxu0 %v3126_v2  ;;  %392 = vmatprep.subr.bf16.mxu1 %v3128_v3  ;;  %v3132_v6 = vld [vmem:[#allocation4 + $0x24] ss:$16 sps:$4 sm:$0xff]   ;;  %v3134_v7 = vld [vmem:[#allocation4 + $0x2c] ss:$16 sps:$4 sm:$0xff]   ;;  %v3136_v8 = vld [vmem:[#allocation4 + $0x20] ss:$16 sps:$4 sm:$0xff]  }
  0x3b   :  { %320 = vmatpush1.bf16.msra.mxu0 %v3130_v4  ;;  %393 = vmatpush1.bf16.msra.mxu1 %v3131_v5  ;;  %v3137_v9 = vld [vmem:[#allocation4 + $0x28] ss:$16 sps:$4 sm:$0xff]   ;;  %v3138_v10 = vld [vmem:[#allocation4 + $0x44] ss:$16 sps:$4 sm:$0xff]   ;;  %v3140_v11 = vld [vmem:[#allocation4 + $0x4c] ss:$16 sps:$4 sm:$0xff]  }
  0x3c   :  { %321 = vmatprep.subr.bf16.mxu0 %v3132_v6  ;;  %394 = vmatprep.subr.bf16.mxu1 %v3134_v7  ;;  %v3142_v12 = vld [vmem:[#allocation4 + $0x40] ss:$16 sps:$4 sm:$0xff]   ;;  %v3143_v13 = vld [vmem:[#allocation4 + $0x48] ss:$16 sps:$4 sm:$0xff]   ;;  %v3144_v14 = vld [vmem:[#allocation4 + $0x64] ss:$16 sps:$4 sm:$0xff]  }
  0x3d   :  { %v3146_v15 = vld [vmem:[#allocation4 + $0x6c] ss:$16 sps:$4 sm:$0xff]   ;;  %v3148_v16 = vld [vmem:[#allocation4 + $0x60] ss:$16 sps:$4 sm:$0xff]   ;;  %v3149_v17 = vld [vmem:[#allocation4 + $0x68] ss:$16 sps:$4 sm:$0xff]  }
  0x3e   :  { %v3150_v18 = vld [vmem:[#allocation4 + $0x84] ss:$16 sps:$4 sm:$0xff]   ;;  %v3152_v19 = vld [vmem:[#allocation4 + $0x8c] ss:$16 sps:$4 sm:$0xff]   ;;  %v3154_v20 = vld [vmem:[#allocation4 + $0x80] ss:$16 sps:$4 sm:$0xff]  }
  0x3f   :  { %322 = vmatpush1.bf16.msra.mxu0 %v3136_v8  ;;  %395 = vmatpush1.bf16.msra.mxu1 %v3137_v9  ;;  %v3155_v21 = vld [vmem:[#allocation4 + $0x88] ss:$16 sps:$4 sm:$0xff]   ;;  %v3156_v22 = vld [vmem:[#allocation4 + $0xa4] ss:$16 sps:$4 sm:$0xff]   ;;  %v3158_v23 = vld [vmem:[#allocation4 + $0xac] ss:$16 sps:$4 sm:$0xff]  }
  0x40   :  { %323 = vmatprep.subr.bf16.mxu0 %v3138_v10  ;;  %396 = vmatprep.subr.bf16.mxu1 %v3140_v11  ;;  %v3160_v24 = vld [vmem:[#allocation4 + $0xa0] ss:$16 sps:$4 sm:$0xff]   ;;  %v3161_v25 = vld [vmem:[#allocation4 + $0xa8] ss:$16 sps:$4 sm:$0xff]   ;;  %v3162_v26 = vld [vmem:[#allocation4 + $0xc4] ss:$16 sps:$4 sm:$0xff]  }
  0x41   :  { %v3164_v27 = vld [vmem:[#allocation4 + $0xcc] ss:$16 sps:$4 sm:$0xff]   ;;  %v3166_v28 = vld [vmem:[#allocation4 + $0xc0] ss:$16 sps:$4 sm:$0xff]   ;;  %v3167_v29 = vld [vmem:[#allocation4 + $0xc8] ss:$16 sps:$4 sm:$0xff]  }
  0x42   :  { %v3168_v30 = vld [vmem:[#allocation4 + $0xe4] ss:$16 sps:$4 sm:$0xff]   ;;  %v3170_v31 = vld [vmem:[#allocation4 + $0xec] ss:$16 sps:$4 sm:$0xff]   ;;  %v3172_v32 = vld [vmem:[#allocation4 + $0xe0] ss:$16 sps:$4 sm:$0xff]  }
  0x43   :  { %324 = vmatpush1.bf16.msra.mxu0 %v3142_v12  ;;  %397 = vmatpush1.bf16.msra.mxu1 %v3143_v13  ;;  %v3173_v33 = vld [vmem:[#allocation4 + $0xe8] ss:$16 sps:$4 sm:$0xff]   ;;  %v3855_v34 = vld [vmem:[#allocation6 + $0x4] ss:$16 sps:$4 sm:$0xff]   ;;  %v3857_v35 = vld [vmem:[#allocation6 + $0xc] ss:$16 sps:$4 sm:$0xff]  }
  0x44   :  { %325 = vmatprep.subr.bf16.mxu0 %v3144_v14  ;;  %398 = vmatprep.subr.bf16.mxu1 %v3146_v15  ;;  %v3174_v36 = vld [vmem:[%s5534_s0] sm:$0xff]   ;;  %v3864_v38 = vld [vmem:[#allocation6 + $0x8] ss:$16 sps:$4 sm:$0xff]   ;;  %v3200_v54 = vld [vmem:[%s5534_s0 + $0x10] sm:$0xff]   ;;  %vm2893_vm1 = vcmask 7168  }
  0x45   :  { %v3862_v37 = vld [vmem:[#allocation6] ss:$16 sps:$4 sm:$0xff]   ;;  %v3868_v39 = vld [vmem:[#allocation6 + $0x24] ss:$16 sps:$4 sm:$0xff]   ;;  %v3870_v40 = vld [vmem:[#allocation6 + $0x2c] ss:$16 sps:$4 sm:$0xff]  }
  0x46   :  { %v3872_v41 = vld [vmem:[#allocation6 + $0x20] ss:$16 sps:$4 sm:$0xff]   ;;  %v3876_v42 = vld [vmem:[#allocation6 + $0x28] ss:$16 sps:$4 sm:$0xff]   ;;  %v3880_v43 = vld [vmem:[#allocation6 + $0x44] ss:$16 sps:$4 sm:$0xff]  }
  0x47   :  { %326 = vmatpush1.bf16.msra.mxu0 %v3148_v16  ;;  %399 = vmatpush1.bf16.msra.mxu1 %v3149_v17  ;;  %v3882_v44 = vld [vmem:[#allocation6 + $0x4c] ss:$16 sps:$4 sm:$0xff]   ;;  %v3889_v46 = vld [vmem:[#allocation6 + $0x40] ss:$16 sps:$4 sm:$0xff]   ;;  %v3891_v47 = vld [vmem:[#allocation6 + $0x48] ss:$16 sps:$4 sm:$0xff]  }
  0x48   :  { %327 = vmatprep.subr.bf16.mxu0 %v3150_v18  ;;  %400 = vmatprep.subr.bf16.mxu1 %v3152_v19  ;;  %v3187_v45 = vld [vmem:[%s5534_s0 + $0x8] sm:$0xff]   ;;  %v3901_v50 = vld [vmem:[#allocation6 + $0x60] ss:$16 sps:$4 sm:$0xff]   ;;  %v3213_v63 = vld [vmem:[%s5534_s0 + $0x18] sm:$0xff]  }
  0x49   :  { %v3895_v48 = vld [vmem:[#allocation6 + $0x64] ss:$16 sps:$4 sm:$0xff]   ;;  %v3899_v49 = vld [vmem:[#allocation6 + $0x6c] ss:$16 sps:$4 sm:$0xff]   ;;  %v3903_v51 = vld [vmem:[#allocation6 + $0x68] ss:$16 sps:$4 sm:$0xff]  }
  0x4a   :  { %v3907_v52 = vld [vmem:[#allocation6 + $0x84] ss:$16 sps:$4 sm:$0xff]   ;;  %v3911_v53 = vld [vmem:[#allocation6 + $0x8c] ss:$16 sps:$4 sm:$0xff]   ;;  %v3918_v55 = vld [vmem:[#allocation6 + $0x80] ss:$16 sps:$4 sm:$0xff]  }
  0x4b   :  { %328 = vmatpush1.bf16.msra.mxu0 %v3154_v20  ;;  %401 = vmatpush1.bf16.msra.mxu1 %v3155_v21  ;;  %v3920_v56 = vld [vmem:[#allocation6 + $0x88] ss:$16 sps:$4 sm:$0xff]   ;;  %v3922_v57 = vld [vmem:[#allocation6 + $0xa4] ss:$16 sps:$4 sm:$0xff]   ;;  %v3924_v58 = vld [vmem:[#allocation6 + $0xac] ss:$16 sps:$4 sm:$0xff]  }
  0x4c   :  { %329 = vmatprep.subr.bf16.mxu0 %v3156_v22  ;;  %402 = vmatprep.subr.bf16.mxu1 %v3158_v23  ;;  %v3930_v59 = vld [vmem:[#allocation6 + $0xa0] ss:$16 sps:$4 sm:$0xff]   ;;  %v3932_v60 = vld [vmem:[#allocation6 + $0xa8] ss:$16 sps:$4 sm:$0xff]   ;;  %v3934_v61 = vld [vmem:[#allocation6 + $0xc4] ss:$16 sps:$4 sm:$0xff]  }
  0x4d   :  { %v3936_v62 = vld [vmem:[#allocation6 + $0xcc] ss:$16 sps:$4 sm:$0xff]   ;;  %v3947_v0 = vld [vmem:[#allocation6 + $0xc0] ss:$16 sps:$4 sm:$0xff]   ;;  %v3949_v2 = vld [vmem:[#allocation6 + $0xc8] ss:$16 sps:$4 sm:$0xff]  }
  0x4e   :  { %v3951_v3 = vld [vmem:[#allocation6 + $0xe4] ss:$16 sps:$4 sm:$0xff]   ;;  %v3953_v4 = vld [vmem:[#allocation6 + $0xec] ss:$16 sps:$4 sm:$0xff]   ;;  %v3959_v5 = vld [vmem:[#allocation6 + $0xe0] ss:$16 sps:$4 sm:$0xff]  }
  0x4f   :  { %330 = vmatpush1.bf16.msra.mxu0 %v3160_v24  ;;  %403 = vmatpush1.bf16.msra.mxu1 %v3161_v25  ;;  %v3961_v6 = vld [vmem:[#allocation6 + $0xe8] ss:$16 sps:$4 sm:$0xff]   ;;  %v3975_v7 = vld [vmem:[#allocation8 + $0x4] ss:$16 sps:$4 sm:$0xff]   ;;  %v3977_v8 = vld [vmem:[#allocation8 + $0xc] ss:$16 sps:$4 sm:$0xff]  }
  0x50   :  { %331 = vmatprep.subr.bf16.mxu0 %v3162_v26  ;;  %404 = vmatprep.subr.bf16.mxu1 %v3164_v27  ;;  %v3981_v9 = vld [vmem:[#allocation8] ss:$16 sps:$4 sm:$0xff]   ;;  %v3983_v10 = vld [vmem:[#allocation8 + $0x8] ss:$16 sps:$4 sm:$0xff]   ;;  %v3987_v11 = vld [vmem:[#allocation8 + $0x24] ss:$16 sps:$4 sm:$0xff]  }
  0x51   :  { %v3989_v12 = vld [vmem:[#allocation8 + $0x2c] ss:$16 sps:$4 sm:$0xff]   ;;  %v3991_v13 = vld [vmem:[#allocation8 + $0x20] ss:$16 sps:$4 sm:$0xff]   ;;  %v3993_v14 = vld [vmem:[#allocation8 + $0x28] ss:$16 sps:$4 sm:$0xff]  }
  0x52   :  { %v3999_v15 = vld [vmem:[#allocation8 + $0x44] ss:$16 sps:$4 sm:$0xff]   ;;  %v4001_v16 = vld [vmem:[#allocation8 + $0x4c] ss:$16 sps:$4 sm:$0xff]   ;;  %v4005_v17 = vld [vmem:[#allocation8 + $0x40] ss:$16 sps:$4 sm:$0xff]  }
  0x53   :  { %332 = vmatpush1.bf16.msra.mxu0 %v3166_v28  ;;  %405 = vmatpush1.bf16.msra.mxu1 %v3167_v29  ;;  %5879 = vst [vmem:[#allocation11_spill] sm:$0xff] %v4001_v16  ;;  %5880 = vst [vmem:[#allocation12_spill] sm:$0xff] %v4005_v17  ;;  %v4007_v18 = vld [vmem:[#allocation8 + $0x48] ss:$16 sps:$4 sm:$0xff]   ;;  %v4011_v19 = vld [vmem:[#allocation8 + $0x64] ss:$16 sps:$4 sm:$0xff]  }
  0x54   :  { %333 = vmatprep.subr.bf16.mxu0 %v3168_v30  ;;  %406 = vmatprep.subr.bf16.mxu1 %v3170_v31  ;;  %5881 = vst [vmem:[#allocation13_spill] sm:$0xff] %v4007_v18  ;;  %5882 = vst [vmem:[#allocation14_spill] sm:$0xff] %v4011_v19  ;;  %v4013_v20 = vld [vmem:[#allocation8 + $0x6c] ss:$16 sps:$4 sm:$0xff]   ;;  %v4015_v21 = vld [vmem:[#allocation8 + $0x60] ss:$16 sps:$4 sm:$0xff]  }
  0x55   :  { %5883 = vst [vmem:[#allocation15_spill] sm:$0xff] %v4013_v20  ;;  %5884 = vst [vmem:[#allocation16_spill] sm:$0xff] %v4015_v21  ;;  %v4017_v22 = vld [vmem:[#allocation8 + $0x68] ss:$16 sps:$4 sm:$0xff]   ;;  %v4023_v23 = vld [vmem:[#allocation8 + $0x84] ss:$16 sps:$4 sm:$0xff]  }
  0x56   :  { %5885 = vst [vmem:[#allocation17_spill] sm:$0xff] %v4017_v22  ;;  %5886 = vst [vmem:[#allocation18_spill] sm:$0xff] %v4023_v23  ;;  %v4025_v24 = vld [vmem:[#allocation8 + $0x8c] ss:$16 sps:$4 sm:$0xff]   ;;  %v4029_v25 = vld [vmem:[#allocation8 + $0x80] ss:$16 sps:$4 sm:$0xff]  }
  0x57   :  { %334 = vmatpush1.bf16.msra.mxu0 %v3172_v32  ;;  %407 = vmatpush1.bf16.msra.mxu1 %v3173_v33  ;;  %5887 = vst [vmem:[#allocation19_spill] sm:$0xff] %v4025_v24  ;;  %5888 = vst [vmem:[#allocation20_spill] sm:$0xff] %v4029_v25  ;;  %v4031_v26 = vld [vmem:[#allocation8 + $0x88] ss:$16 sps:$4 sm:$0xff]   ;;  %v4035_v27 = vld [vmem:[#allocation8 + $0xa4] ss:$16 sps:$4 sm:$0xff]  }
  0x58   :  { %782 = vmatprep.subr.bf16.mxu0 %v3855_v34  ;;  %823 = vmatprep.subr.bf16.mxu1 %v3857_v35  ;;  %5889 = vst [vmem:[#allocation21_spill] sm:$0xff] %v4031_v26  ;;  %5890 = vst [vmem:[#allocation22_spill] sm:$0xff] %v4035_v27  ;;  %v4037_v28 = vld [vmem:[#allocation8 + $0xac] ss:$16 sps:$4 sm:$0xff]   ;;  %v4039_v29 = vld [vmem:[#allocation8 + $0xa0] ss:$16 sps:$4 sm:$0xff]  }
  0x59   :  { %5891 = vst [vmem:[#allocation23_spill] sm:$0xff] %v4037_v28  ;;  %5892 = vst [vmem:[#allocation24_spill] sm:$0xff] %v4039_v29  ;;  %v4041_v30 = vld [vmem:[#allocation8 + $0xa8] ss:$16 sps:$4 sm:$0xff]   ;;  %v4047_v31 = vld [vmem:[#allocation8 + $0xc4] ss:$16 sps:$4 sm:$0xff]  }
  0x5a   :  { %352 = vmatmul.mubr.bf16.vlgmr.msra.gmra.mrb[0].mxu0 %v3174_v36  ;;  %425 = vmatmul.mubr.bf16.vlgmr.msra.gmra.mrb[0].mxu1 %v3174_v36  ;;  %5893 = vst [vmem:[#allocation25_spill] sm:$0xff] %v4041_v30  ;;  %5894 = vst [vmem:[#allocation26_spill] sm:$0xff] %v4047_v31  ;;  %v4049_v32 = vld [vmem:[#allocation8 + $0xcc] ss:$16 sps:$4 sm:$0xff]   ;;  %v4053_v33 = vld [vmem:[#allocation8 + $0xc0] ss:$16 sps:$4 sm:$0xff]  }
  0x5b   :  { %783 = vmatpush1.bf16.msra.mxu0 %v3862_v37  ;;  %824 = vmatpush1.bf16.msra.mxu1 %v3864_v38  ;;  %5895 = vst [vmem:[#allocation27_spill] sm:$0xff] %v4049_v32  ;;  %5896 = vst [vmem:[#allocation28_spill] sm:$0xff] %v4053_v33  ;;  %v4055_v36 = vld [vmem:[#allocation8 + $0xc8] ss:$16 sps:$4 sm:$0xff]  }
  0x5c   :  { %784 = vmatprep.subr.bf16.mxu0 %v3868_v39  ;;  %825 = vmatprep.subr.bf16.mxu1 %v3870_v40  ;;  %5897 = vst [vmem:[#allocation29_spill] sm:$0xff] %v4055_v36 }
  0x5d   :  { %361 = vmatprep.mubr.bf16.mxu0 %v5543_v1  ;;  %434 = vmatprep.mubr.bf16.mxu1 %v5543_v1 }
  0x5f   :  { %785 = vmatpush1.bf16.msra.mxu0 %v3872_v41  ;;  %826 = vmatpush1.bf16.msra.mxu1 %v3876_v42 }
  0x60   :  { %786 = vmatprep.subr.bf16.mxu0 %v3880_v43  ;;  %827 = vmatprep.subr.bf16.mxu1 %v3882_v44 }
  0x62   :  { %362 = vmatmul.mubr.bf16.gmra.mrb[4].mxu0 %v3187_v45  ;;  %435 = vmatmul.mubr.bf16.gmra.mrb[4].mxu1 %v3187_v45  ;;  %v4059_v45 = vld [vmem:[#allocation8 + $0xe4] ss:$16 sps:$4 sm:$0xff]  }
  0x63   :  { %787 = vmatpush1.bf16.msra.mxu0 %v3889_v46  ;;  %828 = vmatpush1.bf16.msra.mxu1 %v3891_v47  ;;  %5898 = vst [vmem:[#allocation30_spill] sm:$0xff] %v4059_v45 }
  0x64   :  { %788 = vmatprep.subr.bf16.mxu0 %v3895_v48  ;;  %829 = vmatprep.subr.bf16.mxu1 %v3899_v49 }
  0x65   :  { %371 = vmatprep.mubr.bf16.mxu0 %v5543_v1  ;;  %444 = vmatprep.mubr.bf16.mxu1 %v5543_v1 }
  0x67   :  { %789 = vmatpush1.bf16.msra.mxu0 %v3901_v50  ;;  %830 = vmatpush1.bf16.msra.mxu1 %v3903_v51 }
  0x68   :  { %790 = vmatprep.subr.bf16.mxu0 %v3907_v52  ;;  %831 = vmatprep.subr.bf16.mxu1 %v3911_v53 }
  0x6a   :  { %372 = vmatmul.mubr.bf16.gmra.mrb[8].mxu0 %v3200_v54  ;;  %445 = vmatmul.mubr.bf16.gmra.mrb[8].mxu1 %v3200_v54  ;;  %v4061_v54 = vld [vmem:[#allocation8 + $0xec] ss:$16 sps:$4 sm:$0xff]  }
  0x6b   :  { %791 = vmatpush1.bf16.msra.mxu0 %v3918_v55  ;;  %832 = vmatpush1.bf16.msra.mxu1 %v3920_v56  ;;  %5899 = vst [vmem:[#allocation31_spill] sm:$0xff] %v4061_v54 }
  0x6c   :  { %792 = vmatprep.subr.bf16.mxu0 %v3922_v57  ;;  %833 = vmatprep.subr.bf16.mxu1 %v3924_v58 }
  0x6d   :  { %381 = vmatprep.mubr.bf16.mxu0 %v5543_v1  ;;  %454 = vmatprep.mubr.bf16.mxu1 %v5543_v1 }
  0x6f   :  { %793 = vmatpush1.bf16.msra.mxu0 %v3930_v59  ;;  %834 = vmatpush1.bf16.msra.mxu1 %v3932_v60 }
  0x70   :  { %794 = vmatprep.subr.bf16.mxu0 %v3934_v61  ;;  %835 = vmatprep.subr.bf16.mxu1 %v3936_v62 }
  0x72   :  { %382 = vmatmul.mubr.bf16.gmra.mrb[12].mxu0 %v3213_v63  ;;  %455 = vmatmul.mubr.bf16.gmra.mrb[12].mxu1 %v3213_v63  ;;  %v4063_v63 = vld [vmem:[#allocation8 + $0xe0] ss:$16 sps:$4 sm:$0xff]  }
  0x73   :  { %795 = vmatpush1.bf16.msra.mxu0 %v3947_v0  ;;  %836 = vmatpush1.bf16.msra.mxu1 %v3949_v2  ;;  %5900 = vst [vmem:[#allocation32_spill] sm:$0xff] %v4063_v63 }
  0x74   :  { %796 = vmatprep.subr.bf16.mxu0 %v3951_v3  ;;  %837 = vmatprep.subr.bf16.mxu1 %v3953_v4 }
  0x75   :  { %814 = vmatprep.mubr.bf16.mxu0 %v5543_v1  ;;  %855 = vmatprep.mubr.bf16.mxu1 %v5543_v1 }
  0x77   :  { %797 = vmatpush1.bf16.msra.mxu0 %v3959_v5  ;;  %838 = vmatpush1.bf16.msra.mxu1 %v3961_v6 }
  0x78   :  { %1207 = vmatprep.subr.bf16.mxu0 %v3975_v7  ;;  %1248 = vmatprep.subr.bf16.mxu1 %v3977_v8 }
  0x7a   :  { %815 = vmatmul.mubr.bf16.vlgmr.msra.gmra.mrb[16].mxu0 %v5543_v1  ;;  %856 = vmatmul.mubr.bf16.vlgmr.msra.gmra.mrb[16].mxu1 %v5543_v1 }
  0x7b   :  { %1239 = vmatprep.mubr.bf16.mxu0 %v5543_v1  ;;  %1280 = vmatprep.mubr.bf16.mxu1 %v5543_v1  ;;  %v4065_v1 = vld [vmem:[#allocation8 + $0xe8] ss:$16 sps:$4 sm:$0xff]  }
  0x7c   :  { %1208 = vmatpush1.bf16.msra.mxu0 %v3981_v9  ;;  %1249 = vmatpush1.bf16.msra.mxu1 %v3983_v10  ;;  %5901 = vst [vmem:[#allocation33_spill] sm:$0xff] %v4065_v1 }
  0x7d   :  { %1209 = vmatprep.subr.bf16.mxu0 %v3987_v11  ;;  %1250 = vmatprep.subr.bf16.mxu1 %v3989_v12 }
  0x80   :  { %1210 = vmatpush1.bf16.msra.mxu0 %v3991_v13  ;;  %1251 = vmatpush1.bf16.msra.mxu1 %v3993_v14 }
  0x81   :  { %1211 = vmatprep.subr.bf16.mxu0 %v3999_v15  ;;  %1252 = vmatprep.subr.bf16.mxu1 %v4001_v16 }
  0x84   :  { %1212 = vmatpush1.bf16.msra.mxu0 %v4005_v17  ;;  %1253 = vmatpush1.bf16.msra.mxu1 %v4007_v18 }
  0x85   :  { %1213 = vmatprep.subr.bf16.mxu0 %v4011_v19  ;;  %1254 = vmatprep.subr.bf16.mxu1 %v4013_v20 }
  0x88   :  { %1214 = vmatpush1.bf16.msra.mxu0 %v4015_v21  ;;  %1255 = vmatpush1.bf16.msra.mxu1 %v4017_v22 }
  0x89   :  { %1215 = vmatprep.subr.bf16.mxu0 %v4023_v23  ;;  %1256 = vmatprep.subr.bf16.mxu1 %v4025_v24 }
  0x8c   :  { %1216 = vmatpush1.bf16.msra.mxu0 %v4029_v25  ;;  %1257 = vmatpush1.bf16.msra.mxu1 %v4031_v26 }
  0x8d   :  { %1217 = vmatprep.subr.bf16.mxu0 %v4035_v27  ;;  %1258 = vmatprep.subr.bf16.mxu1 %v4037_v28 }
  0x90   :  { %1218 = vmatpush1.bf16.msra.mxu0 %v4039_v29  ;;  %1259 = vmatpush1.bf16.msra.mxu1 %v4041_v30 }
  0x91   :  { %1219 = vmatprep.subr.bf16.mxu0 %v4047_v31  ;;  %1260 = vmatprep.subr.bf16.mxu1 %v4049_v32  ;;  %v4071_v32 = vld [vmem:[#allocation8 + $0x104] ss:$16 sps:$4 sm:$0xff]   ;;  %v4077_v31 = vld [vmem:[#allocation8 + $0x108] ss:$16 sps:$4 sm:$0xff]  }
  0x92   :  { %5902 = vst [vmem:[#allocation34_spill] sm:$0xff] %v4071_v32  ;;  %5905 = vst [vmem:[#allocation37_spill] sm:$0xff] %v4077_v31 }
  0x94   :  { %1220 = vmatpush1.bf16.msra.mxu0 %v4053_v33  ;;  %1261 = vmatpush1.bf16.msra.mxu1 %v4055_v36  ;;  %v4073_v33 = vld [vmem:[#allocation8 + $0x10c] ss:$16 sps:$4 sm:$0xff]   ;;  %v4075_v36 = vld [vmem:[#allocation8 + $0x100] ss:$16 sps:$4 sm:$0xff]  }
  0x95   :  { %1221 = vmatprep.subr.bf16.mxu0 %v4059_v45  ;;  %1262 = vmatprep.subr.bf16.mxu1 %v4061_v54  ;;  %5903 = vst [vmem:[#allocation35_spill] sm:$0xff] %v4073_v33  ;;  %5904 = vst [vmem:[#allocation36_spill] sm:$0xff] %v4075_v36  ;;  %v4083_v54 = vld [vmem:[#allocation8 + $0x124] ss:$16 sps:$4 sm:$0xff]   ;;  %v4089_v45 = vld [vmem:[#allocation8 + $0x128] ss:$16 sps:$4 sm:$0xff]  }
  0x96   :  { %5906 = vst [vmem:[#allocation38_spill] sm:$0xff] %v4083_v54  ;;  %5909 = vst [vmem:[#allocation41_spill] sm:$0xff] %v4089_v45 }
  0x98   :  { %1222 = vmatpush1.bf16.msra.mxu0 %v4063_v63  ;;  %1263 = vmatpush1.bf16.msra.mxu1 %v4065_v1  ;;  %v4085_v63 = vld [vmem:[#allocation8 + $0x12c] ss:$16 sps:$4 sm:$0xff]   ;;  %v4087_v1 = vld [vmem:[#allocation8 + $0x120] ss:$16 sps:$4 sm:$0xff]  }
  0x99   :  { %1223 = vmatprep.subr.bf16.mxu0 %v4071_v32  ;;  %1264 = vmatprep.subr.bf16.mxu1 %v4073_v33  ;;  %5907 = vst [vmem:[#allocation39_spill] sm:$0xff] %v4085_v63  ;;  %5908 = vst [vmem:[#allocation40_spill] sm:$0xff] %v4087_v1  ;;  %v4095_v33 = vld [vmem:[#allocation8 + $0x144] ss:$16 sps:$4 sm:$0xff]   ;;  %v4101_v32 = vld [vmem:[#allocation8 + $0x148] ss:$16 sps:$4 sm:$0xff]  }
  0x9a   :  { %5910 = vst [vmem:[#allocation42_spill] sm:$0xff] %v4095_v33  ;;  %5913 = vst [vmem:[#allocation45_spill] sm:$0xff] %v4101_v32 }
  0x9c   :  { %1224 = vmatpush1.bf16.msra.mxu0 %v4075_v36  ;;  %1265 = vmatpush1.bf16.msra.mxu1 %v4077_v31  ;;  %v4097_v36 = vld [vmem:[#allocation8 + $0x14c] ss:$16 sps:$4 sm:$0xff]   ;;  %v4099_v31 = vld [vmem:[#allocation8 + $0x140] ss:$16 sps:$4 sm:$0xff]  }
  0x9d   :  { %1225 = vmatprep.subr.bf16.mxu0 %v4083_v54  ;;  %1266 = vmatprep.subr.bf16.mxu1 %v4085_v63  ;;  %5911 = vst [vmem:[#allocation43_spill] sm:$0xff] %v4097_v36  ;;  %5912 = vst [vmem:[#allocation44_spill] sm:$0xff] %v4099_v31  ;;  %v4107_v63 = vld [vmem:[#allocation8 + $0x164] ss:$16 sps:$4 sm:$0xff]   ;;  %v4113_v54 = vld [vmem:[#allocation8 + $0x168] ss:$16 sps:$4 sm:$0xff]  }
  0x9e   :  { %5914 = vst [vmem:[#allocation46_spill] sm:$0xff] %v4107_v63  ;;  %5917 = vst [vmem:[#allocation49_spill] sm:$0xff] %v4113_v54 }
  0xa0   :  { %1226 = vmatpush1.bf16.msra.mxu0 %v4087_v1  ;;  %1267 = vmatpush1.bf16.msra.mxu1 %v4089_v45  ;;  %v4109_v1 = vld [vmem:[#allocation8 + $0x16c] ss:$16 sps:$4 sm:$0xff]   ;;  %v4111_v45 = vld [vmem:[#allocation8 + $0x160] ss:$16 sps:$4 sm:$0xff]  }
  0xa1   :  { %1227 = vmatprep.subr.bf16.mxu0 %v4095_v33  ;;  %1268 = vmatprep.subr.bf16.mxu1 %v4097_v36  ;;  %5915 = vst [vmem:[#allocation47_spill] sm:$0xff] %v4109_v1  ;;  %5916 = vst [vmem:[#allocation48_spill] sm:$0xff] %v4111_v45  ;;  %v4119_v36 = vld [vmem:[#allocation8 + $0x184] ss:$16 sps:$4 sm:$0xff]   ;;  %v4125_v33 = vld [vmem:[#allocation8 + $0x188] ss:$16 sps:$4 sm:$0xff]  }
  0xa2   :  { %5918 = vst [vmem:[#allocation50_spill] sm:$0xff] %v4119_v36  ;;  %5921 = vst [vmem:[#allocation53_spill] sm:$0xff] %v4125_v33 }
  0xa4   :  { %1228 = vmatpush1.bf16.msra.mxu0 %v4099_v31  ;;  %1269 = vmatpush1.bf16.msra.mxu1 %v4101_v32  ;;  %v4121_v31 = vld [vmem:[#allocation8 + $0x18c] ss:$16 sps:$4 sm:$0xff]   ;;  %v4123_v32 = vld [vmem:[#allocation8 + $0x180] ss:$16 sps:$4 sm:$0xff]  }
  0xa5   :  { %1229 = vmatprep.subr.bf16.mxu0 %v4107_v63  ;;  %1270 = vmatprep.subr.bf16.mxu1 %v4109_v1  ;;  %5919 = vst [vmem:[#allocation51_spill] sm:$0xff] %v4121_v31  ;;  %5920 = vst [vmem:[#allocation52_spill] sm:$0xff] %v4123_v32  ;;  %v4131_v1 = vld [vmem:[#allocation8 + $0x1a4] ss:$16 sps:$4 sm:$0xff]   ;;  %v4137_v63 = vld [vmem:[#allocation8 + $0x1a8] ss:$16 sps:$4 sm:$0xff]  }
  0xa6   :  { %5922 = vst [vmem:[#allocation54_spill] sm:$0xff] %v4131_v1  ;;  %5925 = vst [vmem:[#allocation57_spill] sm:$0xff] %v4137_v63 }
  0xa8   :  { %1230 = vmatpush1.bf16.msra.mxu0 %v4111_v45  ;;  %1271 = vmatpush1.bf16.msra.mxu1 %v4113_v54  ;;  %v4133_v45 = vld [vmem:[#allocation8 + $0x1ac] ss:$16 sps:$4 sm:$0xff]   ;;  %v4135_v54 = vld [vmem:[#allocation8 + $0x1a0] ss:$16 sps:$4 sm:$0xff]  }
  0xa9   :  { %1231 = vmatprep.subr.bf16.mxu0 %v4119_v36  ;;  %1272 = vmatprep.subr.bf16.mxu1 %v4121_v31  ;;  %5923 = vst [vmem:[#allocation55_spill] sm:$0xff] %v4133_v45  ;;  %5924 = vst [vmem:[#allocation56_spill] sm:$0xff] %v4135_v54  ;;  %v4143_v31 = vld [vmem:[#allocation8 + $0x1c4] ss:$16 sps:$4 sm:$0xff]   ;;  %v4149_v36 = vld [vmem:[#allocation8 + $0x1c8] ss:$16 sps:$4 sm:$0xff]  }
  0xaa   :  { %5926 = vst [vmem:[#allocation58_spill] sm:$0xff] %v4143_v31  ;;  %5929 = vst [vmem:[#allocation61_spill] sm:$0xff] %v4149_v36 }
  0xac   :  { %1232 = vmatpush1.bf16.msra.mxu0 %v4123_v32  ;;  %1273 = vmatpush1.bf16.msra.mxu1 %v4125_v33  ;;  %v4145_v32 = vld [vmem:[#allocation8 + $0x1cc] ss:$16 sps:$4 sm:$0xff]   ;;  %v4147_v33 = vld [vmem:[#allocation8 + $0x1c0] ss:$16 sps:$4 sm:$0xff]  }
  0xad   :  { %1233 = vmatprep.subr.bf16.mxu0 %v4131_v1  ;;  %1274 = vmatprep.subr.bf16.mxu1 %v4133_v45  ;;  %5927 = vst [vmem:[#allocation59_spill] sm:$0xff] %v4145_v32  ;;  %5928 = vst [vmem:[#allocation60_spill] sm:$0xff] %v4147_v33  ;;  %v4155_v45 = vld [vmem:[#allocation8 + $0x1e4] ss:$16 sps:$4 sm:$0xff]   ;;  %v4161_v1 = vld [vmem:[#allocation8 + $0x1e8] ss:$16 sps:$4 sm:$0xff]  }
  0xae   :  { %5930 = vst [vmem:[#allocation62_spill] sm:$0xff] %v4155_v45  ;;  %5933 = vst [vmem:[#allocation65_spill] sm:$0xff] %v4161_v1 }
  0xb0   :  { %1234 = vmatpush1.bf16.msra.mxu0 %v4135_v54  ;;  %1275 = vmatpush1.bf16.msra.mxu1 %v4137_v63  ;;  %v4157_v54 = vld [vmem:[#allocation8 + $0x1ec] ss:$16 sps:$4 sm:$0xff]   ;;  %v4159_v63 = vld [vmem:[#allocation8 + $0x1e0] ss:$16 sps:$4 sm:$0xff]  }
  0xb1   :  { %1235 = vmatprep.subr.bf16.mxu0 %v4143_v31  ;;  %1276 = vmatprep.subr.bf16.mxu1 %v4145_v32  ;;  %5931 = vst [vmem:[#allocation63_spill] sm:$0xff] %v4157_v54  ;;  %5932 = vst [vmem:[#allocation64_spill] sm:$0xff] %v4159_v63 }
  0xb4   :  { %1236 = vmatpush1.bf16.msra.mxu0 %v4147_v33  ;;  %1277 = vmatpush1.bf16.msra.mxu1 %v4149_v36  ;;  %v115_v36 = vlaneseq }
  0xb5   :  { %1237 = vmatprep.subr.bf16.mxu0 %v4155_v45  ;;  %1278 = vmatprep.subr.bf16.mxu1 %v4157_v54  ;;  %v113_v54 = vld [vmem:[%s5536_s2] sm:$0xf] }
  0xb6   :  { %v4169_v33 = vshrl.u32 %v115_v36, 7 }
  0xb8   :  { %1238 = vmatpush1.bf16.msra.mxu0 %v4159_v63  ;;  %1279 = vmatpush1.bf16.msra.mxu1 %v4161_v1  ;;  %5934 = vst [vmem:[#allocation66_spill] sm:$0xff] %v4169_v33  ;;  %v5637_v32 = vsub.s32 2, %v4169_v33  ;;  %v5646_v31 = vsub.s32 3, %v4169_v33  ;;  %v5647_v30 = vsub.s32 0, %v4169_v33  ;;  %v5654_v63 = vsub.s32 1, %v4169_v33 }
  0xb9   :  { %1315 = vmatprep.subr.bf16.mxu0 %v3855_v34  ;;  %1356 = vmatprep.subr.bf16.mxu1 %v3857_v35 }
  0xba   :  { %v4180_v34 = vrot.slane %v113_v54, %v5637_v32  ;;  %v4188_v1 = vrot.slane %v113_v54, %v5646_v31  ;;  %v118_v45 = vrot.slane %v113_v54, %v5647_v30  ;;  %v122_v27 = vrot.slane %v113_v54, %v5654_v63 }
 0x12d   :  { %v4182_v35 = vpop.f32.mrb[0].mxu0  ;;  %v4184_v36 = vpop.f32.mrb[0].mxu1 }
 0x12e   :  { %v355_v29 = vpop.f32.mrb[1].mxu0  ;;  %v428_v28 = vpop.f32.mrb[1].mxu1 }
 0x12f   :  { %v357_v26 = vpop.f32.mrb[2].mxu0  ;;  %v430_v25 = vpop.f32.mrb[2].mxu1 }
 0x130   :  { %v4194_v32 = vadd.f32 %v357_v26, %v118_v45  ;;  %v359_v24 = vpop.f32.mrb[3].mxu0  ;;  %v4197_v23 = vadd.f32 %v430_v25, %v4180_v34  ;;  %v432_v22 = vpop.f32.mrb[3].mxu1 }
 0x131   :  { %v4199_v21 = vadd.f32 %v359_v24, %v122_v27  ;;  %v4202_v31 = vadd.f32 %v432_v22, %v4188_v1 }
 0x132   :  { %5935 = vst [vmem:[#allocation67_spill] sm:$0xff] %v4194_v32  ;;  %5936 = vst [vmem:[#allocation68_spill] sm:$0xff] %v4197_v23 }
 0x133   :  { %5937 = vst [vmem:[#allocation69_spill] sm:$0xff] %v4199_v21  ;;  %5938 = vst [vmem:[#allocation70_spill] sm:$0xff] %v4202_v31 }
 0x135   :  { %v363_v30 = vpop.f32.mrb[4].mxu0  ;;  %v436_v20 = vpop.f32.mrb[4].mxu1 }
 0x136   :  { %v4204_v19 = vadd.f32 %v363_v30, %v118_v45  ;;  %v365_v33 = vpop.f32.mrb[5].mxu0  ;;  %v4207_v54 = vadd.f32 %v436_v20, %v4180_v34  ;;  %v438_v26 = vpop.f32.mrb[5].mxu1 }
 0x137   :  { %v4209_v63 = vadd.f32 %v365_v33, %v122_v27  ;;  %v367_v32 = vpop.f32.mrb[6].mxu0  ;;  %v4212_v25 = vadd.f32 %v438_v26, %v4188_v1  ;;  %v440_v24 = vpop.f32.mrb[6].mxu1 }
 0x138   :  { %5939 = vst [vmem:[#allocation71_spill] sm:$0xff] %v4204_v19  ;;  %5940 = vst [vmem:[#allocation72_spill] sm:$0xff] %v4207_v54  ;;  %v4214_v21 = vadd.f32 %v367_v32, %v118_v45  ;;  %v369_v22 = vpop.f32.mrb[7].mxu0  ;;  %v4217_v31 = vadd.f32 %v440_v24, %v4180_v34  ;;  %v442_v30 = vpop.f32.mrb[7].mxu1 }
 0x139   :  { %5941 = vst [vmem:[#allocation73_spill] sm:$0xff] %v4209_v63  ;;  %5942 = vst [vmem:[#allocation74_spill] sm:$0xff] %v4212_v25  ;;  %v4219_v19 = vadd.f32 %v369_v22, %v122_v27  ;;  %v4222_v20 = vadd.f32 %v442_v30, %v4188_v1 }
 0x13a   :  { %5943 = vst [vmem:[#allocation75_spill] sm:$0xff] %v4214_v21  ;;  %5944 = vst [vmem:[#allocation76_spill] sm:$0xff] %v4217_v31 }
 0x13b   :  { %5945 = vst [vmem:[#allocation77_spill] sm:$0xff] %v4219_v19  ;;  %5946 = vst [vmem:[#allocation78_spill] sm:$0xff] %v4222_v20 }
 0x13d   :  { %v373_v54 = vpop.f32.mrb[8].mxu0  ;;  %v446_v33 = vpop.f32.mrb[8].mxu1 }
 0x13e   :  { %v4224_v63 = vadd.f32 %v373_v54, %v118_v45  ;;  %v375_v23 = vpop.f32.mrb[9].mxu0  ;;  %v4227_v26 = vadd.f32 %v446_v33, %v4180_v34  ;;  %v448_v32 = vpop.f32.mrb[9].mxu1 }
 0x13f   :  { %v4229_v21 = vadd.f32 %v375_v23, %v122_v27  ;;  %v377_v25 = vpop.f32.mrb[10].mxu0  ;;  %v4232_v24 = vadd.f32 %v448_v32, %v4188_v1  ;;  %v450_v22 = vpop.f32.mrb[10].mxu1 }
 0x140   :  { %5947 = vst [vmem:[#allocation79_spill] sm:$0xff] %v4224_v63  ;;  %5948 = vst [vmem:[#allocation80_spill] sm:$0xff] %v4227_v26  ;;  %v4234_v19 = vadd.f32 %v377_v25, %v118_v45  ;;  %v379_v30 = vpop.f32.mrb[11].mxu0  ;;  %v4237_v20 = vadd.f32 %v450_v22, %v4180_v34  ;;  %v452_v54 = vpop.f32.mrb[11].mxu1 }
 0x141   :  { %5949 = vst [vmem:[#allocation81_spill] sm:$0xff] %v4229_v21  ;;  %5950 = vst [vmem:[#allocation82_spill] sm:$0xff] %v4232_v24  ;;  %v4239_v63 = vadd.f32 %v379_v30, %v122_v27  ;;  %v4242_v33 = vadd.f32 %v452_v54, %v4188_v1 }
 0x142   :  { %5951 = vst [vmem:[#allocation83_spill] sm:$0xff] %v4234_v19  ;;  %5952 = vst [vmem:[#allocation84_spill] sm:$0xff] %v4237_v20 }
 0x143   :  { %5953 = vst [vmem:[#allocation85_spill] sm:$0xff] %v4239_v63  ;;  %5954 = vst [vmem:[#allocation86_spill] sm:$0xff] %v4242_v33 }
 0x145   :  { %v383_v26 = vpop.f32.mrb[12].mxu0  ;;  %v456_v23 = vpop.f32.mrb[12].mxu1 }
 0x146   :  { %v4244_v21 = vadd.f32 %v383_v26, %v118_v45  ;;  %v385_v31 = vpop.f32.mrb[13].mxu0  ;;  %v4247_v32 = vadd.f32 %v456_v23, %v4180_v34  ;;  %v458_v25 = vpop.f32.mrb[13].mxu1 }
 0x147   :  { %v4249_v19 = vadd.f32 %v385_v31, %v122_v27  ;;  %v387_v24 = vpop.f32.mrb[14].mxu0  ;;  %v4252_v22 = vadd.f32 %v458_v25, %v4188_v1  ;;  %v460_v30 = vpop.f32.mrb[14].mxu1  ;;  %v354_v31 = vadd.f32 %v4182_v35, %v118_v45  ;;  %v356_v25 = vadd.f32 %v355_v29, %v122_v27 }
 0x148   :  { %5955 = vst [vmem:[#allocation87_spill] sm:$0xff] %v4244_v21  ;;  %5956 = vst [vmem:[#allocation88_spill] sm:$0xff] %v4247_v32  ;;  %v4254_v63 = vadd.f32 %v387_v24, %v118_v45  ;;  %v389_v54 = vpop.f32.mrb[15].mxu0  ;;  %v4257_v33 = vadd.f32 %v460_v30, %v4180_v34  ;;  %v462_v26 = vpop.f32.mrb[15].mxu1 }
 0x149   :  { %5957 = vst [vmem:[#allocation89_spill] sm:$0xff] %v4249_v19  ;;  %5958 = vst [vmem:[#allocation90_spill] sm:$0xff] %v4252_v22  ;;  %v4259_v21 = vadd.f32 %v389_v54, %v122_v27  ;;  %v4262_v23 = vadd.f32 %v462_v26, %v4188_v1  ;;  %v427_v19 = vadd.f32 %v4184_v36, %v4180_v34 }
 0x14a   :  { %5959 = vst [vmem:[#allocation91_spill] sm:$0xff] %v4254_v63  ;;  %5960 = vst [vmem:[#allocation92_spill] sm:$0xff] %v4257_v33  ;;  %v429_v22 = vadd.f32 %v428_v28, %v4188_v1 }
 0x14b   :  { %5961 = vst [vmem:[#allocation93_spill] sm:$0xff] %v4259_v21  ;;  %5962 = vst [vmem:[#allocation94_spill] sm:$0xff] %v4262_v23 }
 0x14d   :  { %v816_v24 = vpop.f32.mrb[16].mxu0  ;;  %v857_v63 = vpop.f32.mrb[16].mxu1 }
 0x14e   :  { %v864_v32 = vadd.f32 %v816_v24, %v354_v31  ;;  %v866_v20 = vadd.f32 %v857_v63, %v427_v19  ;;  %v818_v30 = vpop.f32.mrb[17].mxu0  ;;  %v859_v33 = vpop.f32.mrb[17].mxu1  ;;  %v5992_v31 = vld [vmem:[#allocation39_spill] sm:$0xff]  ;;  %v5994_v24 = vld [vmem:[#allocation41_spill] sm:$0xff] }
 0x14f   :  { %v865_v18 = vadd.f32 %v818_v30, %v356_v25  ;;  %v867_v54 = vadd.f32 %v859_v33, %v429_v22  ;;  %v820_v21 = vpop.f32.mrb[18].mxu0  ;;  %v861_v17 = vpop.f32.mrb[18].mxu1  ;;  %v5993_v25 = vld [vmem:[#allocation40_spill] sm:$0xff]  ;;  %v5995_v30 = vld [vmem:[#allocation42_spill] sm:$0xff] }
 0x150   :  { %v868_v26 = vmul.f32 0.5, %v864_v32  ;;  %v821_v23 = vpop.f32.mrb[19].mxu0  ;;  %v862_v16 = vpop.f32.mrb[19].mxu1 }
 0x151   :  { %v872_v45 = vmul.f32 0.5, %v865_v18  ;;  %v877_v27 = vmul.f32 0.5, %v867_v54  ;;  %v5963_v23 = vmov 0   ;;  %v5996_v54 = vld [vmem:[#allocation43_spill] sm:$0xff] }
 0x152   :  { %3322 = vtanh.f32 %v868_v26  ;;  %v5997_v26 = vld [vmem:[#allocation44_spill] sm:$0xff] }
 0x153   :  { %3324 = vtanh.f32 %v872_v45  ;;  %v5998_v45 = vld [vmem:[#allocation45_spill] sm:$0xff] }
 0x154   :  { %3326 = vtanh.f32 %v866_v20 }
 0x155   :  { %3328 = vtanh.f32 %v877_v27  ;;  %v5999_v27 = vld [vmem:[#allocation46_spill] sm:$0xff] }
 0x15c   :  { %v3323_v29 = vpop.eup %3322 }
 0x15d   :  { %v3325_v1 = vpop.eup %3324  ;;  %v870_v28 = vmul.f32 0.5, %v3323_v29  ;;  %v6000_v29 = vld [vmem:[#allocation47_spill] sm:$0xff] }
 0x15e   :  { %v874_v34 = vmul.f32 0.5, %v3325_v1  ;;  %v3327_v63 = vpop.eup %3326  ;;  %v6001_v1 = vld [vmem:[#allocation48_spill] sm:$0xff] }
 0x15f   :  { %v871_v19 = vadd.f32 0.5, %v870_v28  ;;  %v3329_v16 = vpop.eup %3328  ;;  %v6002_v28 = vld [vmem:[#allocation49_spill] sm:$0xff] }
 0x160   :  { %v875_v35 = vadd.f32 0.5, %v874_v34  ;;  %v879_v17 = vmul.f32 0.5, %v3329_v16  ;;  %v6003_v34 = vld [vmem:[#allocation50_spill] sm:$0xff]  ;;  %v6009_v16 = vld [vmem:[#allocation56_spill] sm:$0xff] }
 0x161   :  { %v882_v36 = vmul.f32 %v3327_v63, %v871_v19  ;;  %v6004_v19 = vld [vmem:[#allocation51_spill] sm:$0xff]  ;;  %v6005_v63 = vld [vmem:[#allocation52_spill] sm:$0xff] }
 0x162   :  { %v881_v33 = vmul.f32 0.0, %v875_v35  ;;  %v880_v18 = vadd.f32 0.5, %v879_v17  ;;  %v6006_v35 = vld [vmem:[#allocation53_spill] sm:$0xff] }
 0x163   :  { %v6010_v17 = vld [vmem:[#allocation57_spill] sm:$0xff] }
 0x164   :  { %v4268_v21 = vadd.f32 %v882_v36, %v881_v33  ;;  %v6007_v36 = vld [vmem:[#allocation54_spill] sm:$0xff]  ;;  %v6008_v33 = vld [vmem:[#allocation55_spill] sm:$0xff] }
 0x166   :  { %3330 = vtanh.f32 %v4268_v21 }
 0x170   :  { %v3331_v32 = vpop.eup %3330 }
 0x171   :  { %v885_v20 = vmul.f32 %v3331_v32, %v880_v18  ;;  %v6011_v18 = vld [vmem:[#allocation58_spill] sm:$0xff]  ;;  %v6012_v32 = vld [vmem:[#allocation59_spill] sm:$0xff] }
 0x173   :  { %v886_v22 = vpack.c.bf16 %v885_v20, %v885_v20  ;;  %v6013_v20 = vld [vmem:[#allocation60_spill] sm:$0xff] }
 0x175   :  { %1240 = vmatmul.mubr.bf16.vlgmr.msra.gmra.mrb[20].mxu0 %v886_v22  ;;  %1281 = vmatmul.mubr.bf16.vlgmr.msra.gmra.mrb[20].mxu1 %v886_v22 }
 0x176   :  { %1316 = vmatpush1.bf16.msra.mxu0 %v3862_v37  ;;  %1357 = vmatpush1.bf16.msra.mxu1 %v3864_v38  ;;  %v5964_v37 = vld [vmem:[#allocation11_spill] sm:$0xff]  ;;  %v5965_v38 = vld [vmem:[#allocation12_spill] sm:$0xff] }
 0x177   :  { %1317 = vmatprep.subr.bf16.mxu0 %v3868_v39  ;;  %1358 = vmatprep.subr.bf16.mxu1 %v3870_v40  ;;  %v5966_v39 = vld [vmem:[#allocation13_spill] sm:$0xff]  ;;  %v5967_v40 = vld [vmem:[#allocation14_spill] sm:$0xff] }
 0x178   :  { %1347 = vmatprep.mubr.bf16.mxu0 %v5963_v23  ;;  %1388 = vmatprep.mubr.bf16.mxu1 %v5963_v23 }
 0x17a   :  { %1318 = vmatpush1.bf16.msra.mxu0 %v3872_v41  ;;  %1359 = vmatpush1.bf16.msra.mxu1 %v3876_v42  ;;  %v5968_v41 = vld [vmem:[#allocation15_spill] sm:$0xff]  ;;  %v5969_v42 = vld [vmem:[#allocation16_spill] sm:$0xff] }
 0x17b   :  { %1319 = vmatprep.subr.bf16.mxu0 %v3880_v43  ;;  %1360 = vmatprep.subr.bf16.mxu1 %v3882_v44  ;;  %v5970_v43 = vld [vmem:[#allocation17_spill] sm:$0xff]  ;;  %v5971_v44 = vld [vmem:[#allocation18_spill] sm:$0xff] }
 0x17e   :  { %1320 = vmatpush1.bf16.msra.mxu0 %v3889_v46  ;;  %1361 = vmatpush1.bf16.msra.mxu1 %v3891_v47  ;;  %v5972_v46 = vld [vmem:[#allocation19_spill] sm:$0xff]  ;;  %v5973_v47 = vld [vmem:[#allocation20_spill] sm:$0xff] }
 0x17f   :  { %1321 = vmatprep.subr.bf16.mxu0 %v3895_v48  ;;  %1362 = vmatprep.subr.bf16.mxu1 %v3899_v49  ;;  %v5974_v48 = vld [vmem:[#allocation21_spill] sm:$0xff]  ;;  %v5975_v49 = vld [vmem:[#allocation22_spill] sm:$0xff] }
 0x182   :  { %1322 = vmatpush1.bf16.msra.mxu0 %v3901_v50  ;;  %1363 = vmatpush1.bf16.msra.mxu1 %v3903_v51  ;;  %v5976_v50 = vld [vmem:[#allocation23_spill] sm:$0xff]  ;;  %v5977_v51 = vld [vmem:[#allocation24_spill] sm:$0xff] }
 0x183   :  { %1323 = vmatprep.subr.bf16.mxu0 %v3907_v52  ;;  %1364 = vmatprep.subr.bf16.mxu1 %v3911_v53  ;;  %v5978_v52 = vld [vmem:[#allocation25_spill] sm:$0xff]  ;;  %v5979_v53 = vld [vmem:[#allocation26_spill] sm:$0xff] }
 0x186   :  { %1324 = vmatpush1.bf16.msra.mxu0 %v3918_v55  ;;  %1365 = vmatpush1.bf16.msra.mxu1 %v3920_v56  ;;  %v5980_v55 = vld [vmem:[#allocation27_spill] sm:$0xff]  ;;  %v5981_v56 = vld [vmem:[#allocation28_spill] sm:$0xff] }
 0x187   :  { %1325 = vmatprep.subr.bf16.mxu0 %v3922_v57  ;;  %1366 = vmatprep.subr.bf16.mxu1 %v3924_v58  ;;  %v5982_v57 = vld [vmem:[#allocation29_spill] sm:$0xff]  ;;  %v5983_v58 = vld [vmem:[#allocation30_spill] sm:$0xff] }
 0x18a   :  { %1326 = vmatpush1.bf16.msra.mxu0 %v3930_v59  ;;  %1367 = vmatpush1.bf16.msra.mxu1 %v3932_v60  ;;  %v5984_v59 = vld [vmem:[#allocation31_spill] sm:$0xff]  ;;  %v5985_v60 = vld [vmem:[#allocation32_spill] sm:$0xff] }
 0x18b   :  { %1327 = vmatprep.subr.bf16.mxu0 %v3934_v61  ;;  %1368 = vmatprep.subr.bf16.mxu1 %v3936_v62  ;;  %v5986_v61 = vld [vmem:[#allocation33_spill] sm:$0xff]  ;;  %v5987_v62 = vld [vmem:[#allocation34_spill] sm:$0xff] }
 0x18e   :  { %1328 = vmatpush1.bf16.msra.mxu0 %v3947_v0  ;;  %1369 = vmatpush1.bf16.msra.mxu1 %v3949_v2  ;;  %v5988_v0 = vld [vmem:[#allocation35_spill] sm:$0xff]  ;;  %v5989_v2 = vld [vmem:[#allocation36_spill] sm:$0xff] }
 0x18f   :  { %1329 = vmatprep.subr.bf16.mxu0 %v3951_v3  ;;  %1370 = vmatprep.subr.bf16.mxu1 %v3953_v4  ;;  %v5990_v3 = vld [vmem:[#allocation37_spill] sm:$0xff]  ;;  %v5991_v4 = vld [vmem:[#allocation38_spill] sm:$0xff] }
 0x192   :  { %1330 = vmatpush1.bf16.msra.mxu0 %v3959_v5  ;;  %1371 = vmatpush1.bf16.msra.mxu1 %v3961_v6 }
 0x193   :  { %1420 = vmatprep.subr.bf16.mxu0 %v3975_v7  ;;  %1461 = vmatprep.subr.bf16.mxu1 %v3977_v8 }
 0x195   :  { %1348 = vmatmul.mubr.bf16.vlgmr.msra.gmra.mrb[24].mxu0 %v886_v22  ;;  %1389 = vmatmul.mubr.bf16.vlgmr.msra.gmra.mrb[24].mxu1 %v886_v22  ;;  %v6014_v22 = vld [vmem:[#allocation61_spill] sm:$0xff] }
 0x196   :  { %1421 = vmatpush1.bf16.msra.mxu0 %v3981_v9  ;;  %1462 = vmatpush1.bf16.msra.mxu1 %v3983_v10 }
 0x197   :  { %1422 = vmatprep.subr.bf16.mxu0 %v3987_v11  ;;  %1463 = vmatprep.subr.bf16.mxu1 %v3989_v12 }
 0x19a   :  { %1423 = vmatpush1.bf16.msra.mxu0 %v3991_v13  ;;  %1464 = vmatpush1.bf16.msra.mxu1 %v3993_v14 }
 0x19b   :  { %1424 = vmatprep.subr.bf16.mxu0 %v3999_v15  ;;  %1465 = vmatprep.subr.bf16.mxu1 %v5964_v37 }
 0x19e   :  { %1425 = vmatpush1.bf16.msra.mxu0 %v5965_v38  ;;  %1466 = vmatpush1.bf16.msra.mxu1 %v5966_v39 }
 0x19f   :  { %1426 = vmatprep.subr.bf16.mxu0 %v5967_v40  ;;  %1467 = vmatprep.subr.bf16.mxu1 %v5968_v41 }
 0x1a2   :  { %1427 = vmatpush1.bf16.msra.mxu0 %v5969_v42  ;;  %1468 = vmatpush1.bf16.msra.mxu1 %v5970_v43 }
 0x1a3   :  { %1428 = vmatprep.subr.bf16.mxu0 %v5971_v44  ;;  %1469 = vmatprep.subr.bf16.mxu1 %v5972_v46 }
 0x1a6   :  { %1429 = vmatpush1.bf16.msra.mxu0 %v5973_v47  ;;  %1470 = vmatpush1.bf16.msra.mxu1 %v5974_v48 }
 0x1a7   :  { %1430 = vmatprep.subr.bf16.mxu0 %v5975_v49  ;;  %1471 = vmatprep.subr.bf16.mxu1 %v5976_v50 }
 0x1aa   :  { %1431 = vmatpush1.bf16.msra.mxu0 %v5977_v51  ;;  %1472 = vmatpush1.bf16.msra.mxu1 %v5978_v52 }
 0x1ab   :  { %1432 = vmatprep.subr.bf16.mxu0 %v5979_v53  ;;  %1473 = vmatprep.subr.bf16.mxu1 %v5980_v55 }
 0x1ae   :  { %1433 = vmatpush1.bf16.msra.mxu0 %v5981_v56  ;;  %1474 = vmatpush1.bf16.msra.mxu1 %v5982_v57 }
 0x1af   :  { %1434 = vmatprep.subr.bf16.mxu0 %v5983_v58  ;;  %1475 = vmatprep.subr.bf16.mxu1 %v5984_v59 }
 0x1b2   :  { %1435 = vmatpush1.bf16.msra.mxu0 %v5985_v60  ;;  %1476 = vmatpush1.bf16.msra.mxu1 %v5986_v61 }
 0x1b3   :  { %1436 = vmatprep.subr.bf16.mxu0 %v5987_v62  ;;  %1477 = vmatprep.subr.bf16.mxu1 %v5988_v0 }
 0x1b6   :  { %1437 = vmatpush1.bf16.msra.mxu0 %v5989_v2  ;;  %1478 = vmatpush1.bf16.msra.mxu1 %v5990_v3 }
 0x1b7   :  { %1438 = vmatprep.subr.bf16.mxu0 %v5991_v4  ;;  %1479 = vmatprep.subr.bf16.mxu1 %v5992_v31 }
 0x1ba   :  { %1439 = vmatpush1.bf16.msra.mxu0 %v5993_v25  ;;  %1480 = vmatpush1.bf16.msra.mxu1 %v5994_v24 }
 0x1bb   :  { %1440 = vmatprep.subr.bf16.mxu0 %v5995_v30  ;;  %1481 = vmatprep.subr.bf16.mxu1 %v5996_v54 }
 0x1be   :  { %1441 = vmatpush1.bf16.msra.mxu0 %v5997_v26  ;;  %1482 = vmatpush1.bf16.msra.mxu1 %v5998_v45 }
 0x1bf   :  { %1442 = vmatprep.subr.bf16.mxu0 %v5999_v27  ;;  %1483 = vmatprep.subr.bf16.mxu1 %v6000_v29 }
 0x1c2   :  { %1443 = vmatpush1.bf16.msra.mxu0 %v6001_v1  ;;  %1484 = vmatpush1.bf16.msra.mxu1 %v6002_v28 }
 0x1c3   :  { %1444 = vmatprep.subr.bf16.mxu0 %v6003_v34  ;;  %1485 = vmatprep.subr.bf16.mxu1 %v6004_v19  ;;  %v6015_v19 = vld [vmem:[#allocation62_spill] sm:$0xff] }
 0x1c6   :  { %1445 = vmatpush1.bf16.msra.mxu0 %v6005_v63  ;;  %1486 = vmatpush1.bf16.msra.mxu1 %v6006_v35  ;;  %v6016_v63 = vld [vmem:[#allocation63_spill] sm:$0xff]  ;;  %v6017_v35 = vld [vmem:[#allocation64_spill] sm:$0xff] }
 0x1c7   :  { %1446 = vmatprep.subr.bf16.mxu0 %v6007_v36  ;;  %1487 = vmatprep.subr.bf16.mxu1 %v6008_v33  ;;  %v6018_v36 = vld [vmem:[#allocation65_spill] sm:$0xff] }
 0x1c8   :  { %v4367_v33 = vld [vmem:[#allocation6 + $0x4] ss:$16 sps:$4 sm:$0xff]  }
 0x1c9   :  { %6019 = vst [vmem:[#allocation11_spill] sm:$0xff] %v4367_v33 }
 0x1ca   :  { %1447 = vmatpush1.bf16.msra.mxu0 %v6009_v16  ;;  %1488 = vmatpush1.bf16.msra.mxu1 %v6010_v17  ;;  %v4370_v17 = vld [vmem:[#allocation6 + $0xc] ss:$16 sps:$4 sm:$0xff]  }
 0x1cb   :  { %1448 = vmatprep.subr.bf16.mxu0 %v6011_v18  ;;  %1489 = vmatprep.subr.bf16.mxu1 %v6012_v32  ;;  %6020 = vst [vmem:[#allocation12_spill] sm:$0xff] %v4370_v17 }
 0x1ce   :  { %1449 = vmatpush1.bf16.msra.mxu0 %v6013_v20  ;;  %1490 = vmatpush1.bf16.msra.mxu1 %v6014_v22  ;;  %v593_v22 = vld [vmem:[%s5539_s5] sm:$0xf] }
 0x1cf   :  { %1450 = vmatprep.subr.bf16.mxu0 %v6015_v19  ;;  %1491 = vmatprep.subr.bf16.mxu1 %v6016_v63  ;;  %v6021_v20 = vld [vmem:[#allocation66_spill] sm:$0xff] }
 0x1d0   :  { %v6022_v19 = vsub.s32 0, %v6021_v20  ;;  %v6026_v16 = vsub.s32 2, %v6021_v20  ;;  %v6028_v30 = vsub.s32 3, %v6021_v20 }
 0x1d2   :  { %1451 = vmatpush1.bf16.msra.mxu0 %v6017_v35  ;;  %1492 = vmatpush1.bf16.msra.mxu1 %v6018_v36  ;;  %v4378_v32 = vrot.slane %v593_v22, %v6022_v19  ;;  %v6024_v35 = vsub.s32 1, %v6021_v20  ;;  %v4387_v34 = vrot.slane %v593_v22, %v6026_v16 }
 0x1d3   :  { %1528 = vmatprep.subr.bf16.mxu0 %v4367_v33  ;;  %1569 = vmatprep.subr.bf16.mxu1 %v4370_v17 }
 0x1d4   :  { %6023 = vst [vmem:[#allocation13_spill] sm:$0xff] %v4378_v32  ;;  %v4382_v63 = vrot.slane %v593_v22, %v6024_v35  ;;  %6027 = vst [vmem:[#allocation15_spill] sm:$0xff] %v4387_v34 }
 0x1d6   :  { %6025 = vst [vmem:[#allocation14_spill] sm:$0xff] %v4382_v63 }
 0x248   :  { %v1241_v36 = vpop.f32.mrb[20].mxu0  ;;  %v1282_v18 = vpop.f32.mrb[20].mxu1 }
 0x249   :  { %v1242_v33 = vadd.f32 %v1241_v36, %v4378_v32  ;;  %v1243_v17 = vpop.f32.mrb[21].mxu0  ;;  %v1284_v28 = vpop.f32.mrb[21].mxu1  ;;  %v1283_v35 = vadd.f32 %v1282_v18, %v4387_v34  ;;  %v4393_v36 = vrot.slane %v593_v22, %v6028_v30 }
 0x24a   :  { %v1244_v1 = vadd.f32 %v1243_v17, %v4382_v63  ;;  %v1245_v29 = vpop.f32.mrb[22].mxu0  ;;  %v1286_v27 = vpop.f32.mrb[22].mxu1 }
 0x24b   :  { %v1289_v19 = vmul.f32 0.5, %v1242_v33  ;;  %v1246_v45 = vpop.f32.mrb[23].mxu0  ;;  %v1287_v26 = vpop.f32.mrb[23].mxu1  ;;  %6029 = vst [vmem:[#allocation16_spill] sm:$0xff] %v4393_v36  ;;  %v1285_v16 = vadd.f32 %v1284_v28, %v4393_v36  ;;  %v6031_v28 = vld [vmem:[#allocation67_spill] sm:$0xff] }
 0x24c   :  { %v1293_v54 = vmul.f32 0.5, %v1244_v1 }
 0x24d   :  { %3332 = vtanh.f32 %v1289_v19  ;;  %v1298_v32 = vmul.f32 0.5, %v1285_v16  ;;  %v6032_v16 = vld [vmem:[#allocation68_spill] sm:$0xff] }
 0x24e   :  { %3334 = vtanh.f32 %v1293_v54 }
 0x24f   :  { %3336 = vtanh.f32 %v1283_v35 }
 0x250   :  { %3338 = vtanh.f32 %v1298_v32 }
 0x257   :  { %v3333_v24 = vpop.eup %3332 }
 0x258   :  { %v3335_v17 = vpop.eup %3334  ;;  %v1291_v29 = vmul.f32 0.5, %v3333_v24 }
 0x259   :  { %v1295_v27 = vmul.f32 0.5, %v3335_v17  ;;  %v3337_v26 = vpop.eup %3336 }
 0x25a   :  { %v1292_v45 = vadd.f32 0.5, %v1291_v29  ;;  %v3339_v30 = vpop.eup %3338  ;;  %v6033_v29 = vld [vmem:[#allocation69_spill] sm:$0xff] }
 0x25b   :  { %v1296_v1 = vadd.f32 0.5, %v1295_v27  ;;  %v1300_v54 = vmul.f32 0.5, %v3339_v30  ;;  %v6034_v27 = vld [vmem:[#allocation70_spill] sm:$0xff] }
 0x25c   :  { %v1303_v33 = vmul.f32 %v3337_v26, %v1292_v45 }
 0x25d   :  { %v1302_v19 = vmul.f32 0.0, %v1296_v1  ;;  %v1301_v32 = vadd.f32 0.5, %v1300_v54 }
 0x25f   :  { %v4396_v18 = vadd.f32 %v1303_v33, %v1302_v19 }
 0x261   :  { %6030 = vst [vmem:[#allocation17_spill] sm:$0xff] %v4396_v18  ;;  %3340 = vtanh.f32 %v4396_v18 }
 0x268   :  { %v1349_v20 = vpop.f32.mrb[24].mxu0  ;;  %v1390_v22 = vpop.f32.mrb[24].mxu1 }
 0x269   :  { %v1397_v35 = vadd.f32 %v1349_v20, %v6031_v28  ;;  %v1399_v36 = vadd.f32 %v1390_v22, %v6032_v16  ;;  %v1351_v24 = vpop.f32.mrb[25].mxu0  ;;  %v1392_v17 = vpop.f32.mrb[25].mxu1 }
 0x26a   :  { %v1398_v34 = vadd.f32 %v1351_v24, %v6033_v29  ;;  %v1400_v45 = vadd.f32 %v1392_v17, %v6034_v27  ;;  %v1353_v26 = vpop.f32.mrb[26].mxu0  ;;  %v1394_v1 = vpop.f32.mrb[26].mxu1 }
 0x26b   :  { %v3341_v33 = vpop.eup %3340  ;;  %v1401_v19 = vmul.f32 0.5, %v1397_v35  ;;  %v1354_v18 = vpop.f32.mrb[27].mxu0  ;;  %v4411_v1 = vld [vmem:[#allocation6] ss:$16 sps:$4 sm:$0xff]  }
 0x26c   :  { %v1395_v63 = vpop.f32.mrb[27].mxu1  ;;  %v1405_v30 = vmul.f32 0.5, %v1398_v34  ;;  %v1306_v25 = vmul.f32 %v3341_v33, %v1301_v32  ;;  %v1410_v22 = vmul.f32 0.5, %v1400_v45  ;;  %v4417_v33 = vld [vmem:[#allocation6 + $0x24] ss:$16 sps:$4 sm:$0xff]  }
 0x26d   :  { %3342 = vtanh.f32 %v1401_v19  ;;  %v4420_v19 = vld [vmem:[#allocation6 + $0x2c] ss:$16 sps:$4 sm:$0xff]  }
 0x26e   :  { %3344 = vtanh.f32 %v1405_v30  ;;  %v1307_v20 = vpack.c.bf16 %v1306_v25, %v1306_v25  ;;  %v4425_v30 = vld [vmem:[#allocation6 + $0x20] ss:$16 sps:$4 sm:$0xff]  }
 0x26f   :  { %3346 = vtanh.f32 %v1399_v36 }
 0x270   :  { %1452 = vmatprep.mubr.bf16.mxu0 %v1307_v20  ;;  %1493 = vmatprep.mubr.bf16.mxu1 %v1307_v20  ;;  %3348 = vtanh.f32 %v1410_v22  ;;  %v4428_v20 = vld [vmem:[#allocation6 + $0x28] ss:$16 sps:$4 sm:$0xff]   ;;  %v4431_v22 = vld [vmem:[#allocation6 + $0x44] ss:$16 sps:$4 sm:$0xff]  }
 0x277   :  { %v3343_v54 = vpop.eup %3342 }
 0x278   :  { %v3345_v28 = vpop.eup %3344  ;;  %v1403_v16 = vmul.f32 0.5, %v3343_v54  ;;  %v4434_v54 = vld [vmem:[#allocation6 + $0x4c] ss:$16 sps:$4 sm:$0xff]  }
 0x279   :  { %v1407_v24 = vmul.f32 0.5, %v3345_v28  ;;  %v3347_v29 = vpop.eup %3346  ;;  %v4437_v28 = vld [vmem:[#allocation6 + $0x40] ss:$16 sps:$4 sm:$0xff]  }
 0x27a   :  { %v1404_v17 = vadd.f32 0.5, %v1403_v16  ;;  %v3349_v25 = vpop.eup %3348  ;;  %v4440_v16 = vld [vmem:[#allocation6 + $0x48] ss:$16 sps:$4 sm:$0xff]  }
 0x27b   :  { %v1408_v27 = vadd.f32 0.5, %v1407_v24  ;;  %v1412_v18 = vmul.f32 0.5, %v3349_v25  ;;  %v4443_v24 = vld [vmem:[#allocation6 + $0x64] ss:$16 sps:$4 sm:$0xff]   ;;  %v4461_v25 = vld [vmem:[#allocation6 + $0x80] ss:$16 sps:$4 sm:$0xff]  }
 0x27c   :  { %v1415_v35 = vmul.f32 %v3347_v29, %v1404_v17  ;;  %v4446_v17 = vld [vmem:[#allocation6 + $0x6c] ss:$16 sps:$4 sm:$0xff]   ;;  %v4449_v29 = vld [vmem:[#allocation6 + $0x60] ss:$16 sps:$4 sm:$0xff]   ;;  %6036 = vst [vmem:[#allocation19_spill] sm:$0xff] %v4461_v25 }
 0x27d   :  { %v1414_v63 = vmul.f32 %v1408_v27, %v4268_v21  ;;  %v1413_v32 = vadd.f32 0.5, %v1412_v18  ;;  %v4414_v21 = vld [vmem:[#allocation6 + $0x8] ss:$16 sps:$4 sm:$0xff]  }
 0x27e   :  { %v4452_v27 = vld [vmem:[#allocation6 + $0x68] ss:$16 sps:$4 sm:$0xff]  }
 0x27f   :  { %v4404_v34 = vadd.f32 %v1415_v35, %v1414_v63  ;;  %v4455_v35 = vld [vmem:[#allocation6 + $0x84] ss:$16 sps:$4 sm:$0xff]   ;;  %v4458_v63 = vld [vmem:[#allocation6 + $0x8c] ss:$16 sps:$4 sm:$0xff]   ;;  %v4464_v18 = vld [vmem:[#allocation6 + $0x88] ss:$16 sps:$4 sm:$0xff]  }
 0x280   :  { %6035 = vst [vmem:[#allocation18_spill] sm:$0xff] %v4458_v63  ;;  %6037 = vst [vmem:[#allocation20_spill] sm:$0xff] %v4464_v18 }
 0x281   :  { %3350 = vtanh.f32 %v4404_v34 }
 0x28b   :  { %v3351_v36 = vpop.eup %3350 }
 0x28c   :  { %v1418_v45 = vmul.f32 %v3351_v36, %v1413_v32  ;;  %v4467_v32 = vld [vmem:[#allocation6 + $0xa4] ss:$16 sps:$4 sm:$0xff]   ;;  %v4470_v36 = vld [vmem:[#allocation6 + $0xac] ss:$16 sps:$4 sm:$0xff]  }
 0x28d   :  { %6038 = vst [vmem:[#allocation21_spill] sm:$0xff] %v4467_v32  ;;  %6039 = vst [vmem:[#allocation22_spill] sm:$0xff] %v4470_v36 }
 0x28e   :  { %v4407_v26 = vpack.c.bf16 %v1418_v45, %v1418_v45  ;;  %v4473_v45 = vld [vmem:[#allocation6 + $0xa0] ss:$16 sps:$4 sm:$0xff]  }
 0x28f   :  { %6040 = vst [vmem:[#allocation23_spill] sm:$0xff] %v4473_v45 }
 0x290   :  { %1453 = vmatmul.mubr.bf16.vlgmr.msra.gmra.mrb[28].mxu0 %v4407_v26  ;;  %1494 = vmatmul.mubr.bf16.vlgmr.msra.gmra.mrb[28].mxu1 %v4407_v26 }
 0x291   :  { %1529 = vmatpush1.bf16.msra.mxu0 %v4411_v1  ;;  %1570 = vmatpush1.bf16.msra.mxu1 %v4414_v21 }
 0x292   :  { %1530 = vmatprep.subr.bf16.mxu0 %v4417_v33  ;;  %1571 = vmatprep.subr.bf16.mxu1 %v4420_v19 }
 0x293   :  { %1560 = vmatprep.mubr.bf16.mxu0 %v5963_v23  ;;  %1601 = vmatprep.mubr.bf16.mxu1 %v5963_v23 }
 0x295   :  { %1531 = vmatpush1.bf16.msra.mxu0 %v4425_v30  ;;  %1572 = vmatpush1.bf16.msra.mxu1 %v4428_v20 }
 0x296   :  { %1532 = vmatprep.subr.bf16.mxu0 %v4431_v22  ;;  %1573 = vmatprep.subr.bf16.mxu1 %v4434_v54 }
 0x299   :  { %1533 = vmatpush1.bf16.msra.mxu0 %v4437_v28  ;;  %1574 = vmatpush1.bf16.msra.mxu1 %v4440_v16 }
 0x29a   :  { %1534 = vmatprep.subr.bf16.mxu0 %v4443_v24  ;;  %1575 = vmatprep.subr.bf16.mxu1 %v4446_v17 }
 0x29d   :  { %1535 = vmatpush1.bf16.msra.mxu0 %v4449_v29  ;;  %1576 = vmatpush1.bf16.msra.mxu1 %v4452_v27 }
 0x29e   :  { %1536 = vmatprep.subr.bf16.mxu0 %v4455_v35  ;;  %1577 = vmatprep.subr.bf16.mxu1 %v4458_v63  ;;  %v4476_v63 = vld [vmem:[#allocation6 + $0xa8] ss:$16 sps:$4 sm:$0xff]  }
 0x29f   :  { %6041 = vst [vmem:[#allocation24_spill] sm:$0xff] %v4476_v63 }
 0x2a1   :  { %1537 = vmatpush1.bf16.msra.mxu0 %v4461_v25  ;;  %1578 = vmatpush1.bf16.msra.mxu1 %v4464_v18  ;;  %v4479_v25 = vld [vmem:[#allocation6 + $0xc4] ss:$16 sps:$4 sm:$0xff]   ;;  %v4482_v18 = vld [vmem:[#allocation6 + $0xcc] ss:$16 sps:$4 sm:$0xff]  }
 0x2a2   :  { %1538 = vmatprep.subr.bf16.mxu0 %v4467_v32  ;;  %1579 = vmatprep.subr.bf16.mxu1 %v4470_v36  ;;  %v4485_v32 = vld [vmem:[#allocation6 + $0xc0] ss:$16 sps:$4 sm:$0xff]   ;;  %v4488_v36 = vld [vmem:[#allocation6 + $0xc8] ss:$16 sps:$4 sm:$0xff]  }
 0x2a5   :  { %1539 = vmatpush1.bf16.msra.mxu0 %v4473_v45  ;;  %1580 = vmatpush1.bf16.msra.mxu1 %v4476_v63  ;;  %v4491_v45 = vld [vmem:[#allocation6 + $0xe4] ss:$16 sps:$4 sm:$0xff]   ;;  %v4494_v63 = vld [vmem:[#allocation6 + $0xec] ss:$16 sps:$4 sm:$0xff]  }
 0x2a6   :  { %1540 = vmatprep.subr.bf16.mxu0 %v4479_v25  ;;  %1581 = vmatprep.subr.bf16.mxu1 %v4482_v18 }
 0x2a9   :  { %1541 = vmatpush1.bf16.msra.mxu0 %v4485_v32  ;;  %1582 = vmatpush1.bf16.msra.mxu1 %v4488_v36 }
 0x2aa   :  { %1542 = vmatprep.subr.bf16.mxu0 %v4491_v45  ;;  %1583 = vmatprep.subr.bf16.mxu1 %v4494_v63 }
 0x2ad   :  { %1543 = vmatpush1.bf16.msra.mxu0 %v3959_v5  ;;  %1584 = vmatpush1.bf16.msra.mxu1 %v3961_v6  ;;  %v6042_v5 = vld [vmem:[#allocation40_spill] sm:$0xff]  ;;  %v6043_v6 = vld [vmem:[#allocation41_spill] sm:$0xff] }
 0x2ae   :  { %1633 = vmatprep.subr.bf16.mxu0 %v3975_v7  ;;  %1674 = vmatprep.subr.bf16.mxu1 %v3977_v8  ;;  %v6044_v7 = vld [vmem:[#allocation42_spill] sm:$0xff]  ;;  %v6045_v8 = vld [vmem:[#allocation43_spill] sm:$0xff] }
 0x2b0   :  { %1561 = vmatmul.mubr.bf16.vlgmr.msra.gmra.mrb[32].mxu0 %v4407_v26  ;;  %1602 = vmatmul.mubr.bf16.vlgmr.msra.gmra.mrb[32].mxu1 %v4407_v26 }
 0x2b1   :  { %1634 = vmatpush1.bf16.msra.mxu0 %v3981_v9  ;;  %1675 = vmatpush1.bf16.msra.mxu1 %v3983_v10  ;;  %v6046_v9 = vld [vmem:[#allocation44_spill] sm:$0xff]  ;;  %v6047_v10 = vld [vmem:[#allocation45_spill] sm:$0xff] }
 0x2b2   :  { %1635 = vmatprep.subr.bf16.mxu0 %v3987_v11  ;;  %1676 = vmatprep.subr.bf16.mxu1 %v3989_v12  ;;  %v6048_v11 = vld [vmem:[#allocation46_spill] sm:$0xff]  ;;  %v6049_v12 = vld [vmem:[#allocation47_spill] sm:$0xff] }
 0x2b5   :  { %1636 = vmatpush1.bf16.msra.mxu0 %v3991_v13  ;;  %1677 = vmatpush1.bf16.msra.mxu1 %v3993_v14  ;;  %v6050_v13 = vld [vmem:[#allocation48_spill] sm:$0xff]  ;;  %v6051_v14 = vld [vmem:[#allocation49_spill] sm:$0xff] }
 0x2b6   :  { %1637 = vmatprep.subr.bf16.mxu0 %v3999_v15  ;;  %1678 = vmatprep.subr.bf16.mxu1 %v5964_v37  ;;  %v6052_v15 = vld [vmem:[#allocation50_spill] sm:$0xff]  ;;  %v6053_v37 = vld [vmem:[#allocation51_spill] sm:$0xff] }
 0x2b9   :  { %1638 = vmatpush1.bf16.msra.mxu0 %v5965_v38  ;;  %1679 = vmatpush1.bf16.msra.mxu1 %v5966_v39  ;;  %v6054_v38 = vld [vmem:[#allocation52_spill] sm:$0xff]  ;;  %v6055_v39 = vld [vmem:[#allocation53_spill] sm:$0xff] }
 0x2ba   :  { %1639 = vmatprep.subr.bf16.mxu0 %v5967_v40  ;;  %1680 = vmatprep.subr.bf16.mxu1 %v5968_v41  ;;  %v6056_v40 = vld [vmem:[#allocation54_spill] sm:$0xff]  ;;  %v6057_v41 = vld [vmem:[#allocation55_spill] sm:$0xff] }
 0x2bd   :  { %1640 = vmatpush1.bf16.msra.mxu0 %v5969_v42  ;;  %1681 = vmatpush1.bf16.msra.mxu1 %v5970_v43  ;;  %v6058_v42 = vld [vmem:[#allocation56_spill] sm:$0xff]  ;;  %v6059_v43 = vld [vmem:[#allocation57_spill] sm:$0xff] }
 0x2be   :  { %1641 = vmatprep.subr.bf16.mxu0 %v5971_v44  ;;  %1682 = vmatprep.subr.bf16.mxu1 %v5972_v46  ;;  %v6060_v44 = vld [vmem:[#allocation58_spill] sm:$0xff]  ;;  %v6061_v46 = vld [vmem:[#allocation59_spill] sm:$0xff] }
 0x2c1   :  { %1642 = vmatpush1.bf16.msra.mxu0 %v5973_v47  ;;  %1683 = vmatpush1.bf16.msra.mxu1 %v5974_v48  ;;  %v6062_v47 = vld [vmem:[#allocation60_spill] sm:$0xff]  ;;  %v6063_v48 = vld [vmem:[#allocation61_spill] sm:$0xff] }
 0x2c2   :  { %1643 = vmatprep.subr.bf16.mxu0 %v5975_v49  ;;  %1684 = vmatprep.subr.bf16.mxu1 %v5976_v50  ;;  %v6064_v49 = vld [vmem:[#allocation62_spill] sm:$0xff]  ;;  %v6065_v50 = vld [vmem:[#allocation63_spill] sm:$0xff] }
 0x2c5   :  { %1644 = vmatpush1.bf16.msra.mxu0 %v5977_v51  ;;  %1685 = vmatpush1.bf16.msra.mxu1 %v5978_v52  ;;  %v6066_v51 = vld [vmem:[#allocation64_spill] sm:$0xff]  ;;  %v6067_v52 = vld [vmem:[#allocation65_spill] sm:$0xff] }
 0x2c6   :  { %1645 = vmatprep.subr.bf16.mxu0 %v5979_v53  ;;  %1686 = vmatprep.subr.bf16.mxu1 %v5980_v55  ;;  %v6068_v53 = vld [vmem:[#allocation11_spill] sm:$0xff]  ;;  %v6069_v55 = vld [vmem:[#allocation12_spill] sm:$0xff] }
 0x2c9   :  { %1646 = vmatpush1.bf16.msra.mxu0 %v5981_v56  ;;  %1687 = vmatpush1.bf16.msra.mxu1 %v5982_v57 }
 0x2ca   :  { %1647 = vmatprep.subr.bf16.mxu0 %v5983_v58  ;;  %1688 = vmatprep.subr.bf16.mxu1 %v5984_v59  ;;  %v6070_v58 = vld [vmem:[#allocation13_spill] sm:$0xff] }
 0x2cd   :  { %1648 = vmatpush1.bf16.msra.mxu0 %v5985_v60  ;;  %1689 = vmatpush1.bf16.msra.mxu1 %v5986_v61 }
 0x2ce   :  { %1649 = vmatprep.subr.bf16.mxu0 %v5987_v62  ;;  %1690 = vmatprep.subr.bf16.mxu1 %v5988_v0  ;;  %v6071_v62 = vld [vmem:[#allocation14_spill] sm:$0xff] }
 0x2d1   :  { %1650 = vmatpush1.bf16.msra.mxu0 %v5989_v2  ;;  %1691 = vmatpush1.bf16.msra.mxu1 %v5990_v3 }
 0x2d2   :  { %1651 = vmatprep.subr.bf16.mxu0 %v5991_v4  ;;  %1692 = vmatprep.subr.bf16.mxu1 %v5992_v31 }
 0x2d5   :  { %1652 = vmatpush1.bf16.msra.mxu0 %v6042_v5  ;;  %1693 = vmatpush1.bf16.msra.mxu1 %v6043_v6  ;;  %v6072_v6 = vld [vmem:[#allocation15_spill] sm:$0xff] }
 0x2d6   :  { %1653 = vmatprep.subr.bf16.mxu0 %v6044_v7  ;;  %1694 = vmatprep.subr.bf16.mxu1 %v6045_v8  ;;  %v6073_v8 = vld [vmem:[#allocation16_spill] sm:$0xff] }
 0x2d9   :  { %1654 = vmatpush1.bf16.msra.mxu0 %v6046_v9  ;;  %1695 = vmatpush1.bf16.msra.mxu1 %v6047_v10 }
 0x2da   :  { %1655 = vmatprep.subr.bf16.mxu0 %v6048_v11  ;;  %1696 = vmatprep.subr.bf16.mxu1 %v6049_v12 }
 0x2dd   :  { %1656 = vmatpush1.bf16.msra.mxu0 %v6050_v13  ;;  %1697 = vmatpush1.bf16.msra.mxu1 %v6051_v14 }
 0x2de   :  { %1657 = vmatprep.subr.bf16.mxu0 %v6052_v15  ;;  %1698 = vmatprep.subr.bf16.mxu1 %v6053_v37 }
 0x2e1   :  { %1658 = vmatpush1.bf16.msra.mxu0 %v6054_v38  ;;  %1699 = vmatpush1.bf16.msra.mxu1 %v6055_v39 }
 0x2e2   :  { %1659 = vmatprep.subr.bf16.mxu0 %v6056_v40  ;;  %1700 = vmatprep.subr.bf16.mxu1 %v6057_v41  ;;  %v6074_v40 = vld [vmem:[#allocation17_spill] sm:$0xff] }
 0x2e5   :  { %1660 = vmatpush1.bf16.msra.mxu0 %v6058_v42  ;;  %1701 = vmatpush1.bf16.msra.mxu1 %v6059_v43 }
 0x2e6   :  { %1661 = vmatprep.subr.bf16.mxu0 %v6060_v44  ;;  %1702 = vmatprep.subr.bf16.mxu1 %v6061_v46 }
 0x2e9   :  { %1662 = vmatpush1.bf16.msra.mxu0 %v6062_v47  ;;  %1703 = vmatpush1.bf16.msra.mxu1 %v6063_v48  ;;  %v6075_v48 = vld [vmem:[#allocation71_spill] sm:$0xff] }
 0x2ea   :  { %1663 = vmatprep.subr.bf16.mxu0 %v6064_v49  ;;  %1704 = vmatprep.subr.bf16.mxu1 %v6065_v50  ;;  %v6076_v50 = vld [vmem:[#allocation72_spill] sm:$0xff] }
 0x2ed   :  { %1664 = vmatpush1.bf16.msra.mxu0 %v6066_v51  ;;  %1705 = vmatpush1.bf16.msra.mxu1 %v6067_v52 }
 0x2ee   :  { %1741 = vmatprep.subr.bf16.mxu0 %v6068_v53  ;;  %1782 = vmatprep.subr.bf16.mxu1 %v6069_v55 }
 0x363   :  { %v1454_v56 = vpop.f32.mrb[28].mxu0  ;;  %v1495_v57 = vpop.f32.mrb[28].mxu1 }
 0x364   :  { %v1455_v59 = vadd.f32 %v1454_v56, %v6070_v58  ;;  %v1456_v60 = vpop.f32.mrb[29].mxu0  ;;  %v1497_v61 = vpop.f32.mrb[29].mxu1  ;;  %v1496_v7 = vadd.f32 %v1495_v57, %v6072_v6 }
 0x365   :  { %v1457_v0 = vadd.f32 %v1456_v60, %v6071_v62  ;;  %v1458_v2 = vpop.f32.mrb[30].mxu0  ;;  %v1499_v3 = vpop.f32.mrb[30].mxu1  ;;  %v1498_v9 = vadd.f32 %v1497_v61, %v6073_v8  ;;  %v6078_v61 = vld [vmem:[#allocation74_spill] sm:$0xff] }
 0x366   :  { %v1502_v4 = vmul.f32 0.5, %v1455_v59  ;;  %v1459_v31 = vpop.f32.mrb[31].mxu0  ;;  %v1500_v26 = vpop.f32.mrb[31].mxu1  ;;  %v6077_v59 = vld [vmem:[#allocation73_spill] sm:$0xff] }
 0x367   :  { %v1506_v5 = vmul.f32 0.5, %v1457_v0  ;;  %v1511_v10 = vmul.f32 0.5, %v1498_v9 }
 0x368   :  { %3352 = vtanh.f32 %v1502_v4 }
 0x369   :  { %3354 = vtanh.f32 %v1506_v5 }
 0x36a   :  { %3356 = vtanh.f32 %v1496_v7 }
 0x36b   :  { %3358 = vtanh.f32 %v1511_v10 }
 0x372   :  { %v3353_v11 = vpop.eup %3352 }
 0x373   :  { %v3355_v12 = vpop.eup %3354  ;;  %v1504_v13 = vmul.f32 0.5, %v3353_v11 }
 0x374   :  { %v1508_v14 = vmul.f32 0.5, %v3355_v12  ;;  %v3357_v37 = vpop.eup %3356 }
 0x375   :  { %v1505_v15 = vadd.f32 0.5, %v1504_v13  ;;  %v3359_v43 = vpop.eup %3358 }
 0x376   :  { %v1509_v38 = vadd.f32 0.5, %v1508_v14  ;;  %v1513_v44 = vmul.f32 0.5, %v3359_v43 }
 0x377   :  { %v1516_v39 = vmul.f32 %v3357_v37, %v1505_v15 }
 0x378   :  { %v1515_v41 = vmul.f32 %v1509_v38, %v6074_v40  ;;  %v1514_v57 = vadd.f32 0.5, %v1513_v44 }
 0x37a   :  { %v4572_v42 = vadd.f32 %v1516_v39, %v1515_v41 }
 0x37c   :  { %3360 = vtanh.f32 %v4572_v42 }
 0x383   :  { %v1562_v46 = vpop.f32.mrb[32].mxu0  ;;  %v1603_v47 = vpop.f32.mrb[32].mxu1 }
 0x384   :  { %v1610_v49 = vadd.f32 %v1562_v46, %v6075_v48  ;;  %v1612_v51 = vadd.f32 %v1603_v47, %v6076_v50  ;;  %v1564_v52 = vpop.f32.mrb[33].mxu0  ;;  %v1605_v56 = vpop.f32.mrb[33].mxu1 }
 0x385   :  { %v1611_v60 = vadd.f32 %v1564_v52, %v6077_v59  ;;  %v1613_v0 = vadd.f32 %v1605_v56, %v6078_v61  ;;  %v1566_v2 = vpop.f32.mrb[34].mxu0  ;;  %v1607_v3 = vpop.f32.mrb[34].mxu1  ;;  %v6081_v52 = vld [vmem:[#allocation20_spill] sm:$0xff]  ;;  %v6082_v56 = vld [vmem:[#allocation21_spill] sm:$0xff]  ;;  %v6084_v59 = vld [vmem:[#allocation23_spill] sm:$0xff] }
 0x386   :  { %v3361_v4 = vpop.eup %3360  ;;  %v1614_v31 = vmul.f32 0.5, %v1610_v49  ;;  %v1567_v26 = vpop.f32.mrb[35].mxu0  ;;  %v4613_v61 = vld [vmem:[#allocation6 + $0xe0] ss:$16 sps:$4 sm:$0xff]   ;;  %v4619_v2 = vld [vmem:[#allocation8 + $0x4] ss:$16 sps:$4 sm:$0xff]  }
 0x387   :  { %v1608_v5 = vpop.f32.mrb[35].mxu1  ;;  %v1618_v7 = vmul.f32 0.5, %v1611_v60  ;;  %v1519_v9 = vmul.f32 %v3361_v4, %v1514_v57  ;;  %v1623_v11 = vmul.f32 0.5, %v1613_v0  ;;  %v6083_v57 = vld [vmem:[#allocation22_spill] sm:$0xff]  ;;  %v6085_v60 = vld [vmem:[#allocation24_spill] sm:$0xff] }
 0x388   :  { %3362 = vtanh.f32 %v1614_v31  ;;  %v4616_v0 = vld [vmem:[#allocation6 + $0xe8] ss:$16 sps:$4 sm:$0xff]   ;;  %v4622_v3 = vld [vmem:[#allocation8 + $0xc] ss:$16 sps:$4 sm:$0xff]   ;;  %v4625_v4 = vld [vmem:[#allocation8] ss:$16 sps:$4 sm:$0xff]  }
 0x389   :  { %3364 = vtanh.f32 %v1618_v7  ;;  %v1520_v10 = vpack.c.bf16 %v1519_v9, %v1519_v9  ;;  %v4628_v31 = vld [vmem:[#allocation8 + $0x8] ss:$16 sps:$4 sm:$0xff]   ;;  %v4631_v26 = vld [vmem:[#allocation8 + $0x24] ss:$16 sps:$4 sm:$0xff]   ;;  %v4634_v5 = vld [vmem:[#allocation8 + $0x2c] ss:$16 sps:$4 sm:$0xff]  }
 0x38a   :  { %3366 = vtanh.f32 %v1612_v51  ;;  %v6080_v51 = vld [vmem:[#allocation19_spill] sm:$0xff]  ;;  %v4640_v9 = vld [vmem:[#allocation8 + $0x28] ss:$16 sps:$4 sm:$0xff]  }
 0x38b   :  { %1665 = vmatprep.mubr.bf16.mxu0 %v1520_v10  ;;  %1706 = vmatprep.mubr.bf16.mxu1 %v1520_v10  ;;  %3368 = vtanh.f32 %v1623_v11  ;;  %v4637_v7 = vld [vmem:[#allocation8 + $0x20] ss:$16 sps:$4 sm:$0xff]   ;;  %v4643_v10 = vld [vmem:[#allocation8 + $0x44] ss:$16 sps:$4 sm:$0xff]   ;;  %v4646_v11 = vld [vmem:[#allocation8 + $0x4c] ss:$16 sps:$4 sm:$0xff]  }
 0x392   :  { %v3363_v12 = vpop.eup %3362 }
 0x393   :  { %v3365_v13 = vpop.eup %3364  ;;  %v1616_v14 = vmul.f32 0.5, %v3363_v12  ;;  %v4649_v12 = vld [vmem:[#allocation8 + $0x40] ss:$16 sps:$4 sm:$0xff]  }
 0x394   :  { %v1620_v15 = vmul.f32 0.5, %v3365_v13  ;;  %v3367_v38 = vpop.eup %3366  ;;  %6086 = vst [vmem:[#allocation25_spill] sm:$0xff] %v4649_v12  ;;  %v4652_v13 = vld [vmem:[#allocation8 + $0x48] ss:$16 sps:$4 sm:$0xff]  }
 0x395   :  { %v1617_v37 = vadd.f32 0.5, %v1616_v14  ;;  %v3369_v44 = vpop.eup %3368  ;;  %6087 = vst [vmem:[#allocation26_spill] sm:$0xff] %v4652_v13  ;;  %v4655_v14 = vld [vmem:[#allocation8 + $0x64] ss:$16 sps:$4 sm:$0xff]  }
 0x396   :  { %v1621_v39 = vadd.f32 0.5, %v1620_v15  ;;  %v1625_v46 = vmul.f32 0.5, %v3369_v44  ;;  %6088 = vst [vmem:[#allocation27_spill] sm:$0xff] %v4655_v14  ;;  %v4658_v15 = vld [vmem:[#allocation8 + $0x6c] ss:$16 sps:$4 sm:$0xff]  }
 0x397   :  { %v1628_v40 = vmul.f32 %v3367_v38, %v1617_v37  ;;  %6089 = vst [vmem:[#allocation28_spill] sm:$0xff] %v4658_v15  ;;  %v4661_v37 = vld [vmem:[#allocation8 + $0x60] ss:$16 sps:$4 sm:$0xff]   ;;  %v4664_v38 = vld [vmem:[#allocation8 + $0x68] ss:$16 sps:$4 sm:$0xff]  }
 0x398   :  { %v1627_v41 = vmul.f32 %v1621_v39, %v4404_v34  ;;  %v1626_v47 = vadd.f32 0.5, %v1625_v46  ;;  %v6079_v34 = vld [vmem:[#allocation18_spill] sm:$0xff]  ;;  %6090 = vst [vmem:[#allocation29_spill] sm:$0xff] %v4661_v37  ;;  %6091 = vst [vmem:[#allocation30_spill] sm:$0xff] %v4664_v38  ;;  %v4667_v39 = vld [vmem:[#allocation8 + $0x84] ss:$16 sps:$4 sm:$0xff]  }
 0x399   :  { %6092 = vst [vmem:[#allocation31_spill] sm:$0xff] %v4667_v39  ;;  %v4676_v44 = vld [vmem:[#allocation8 + $0x88] ss:$16 sps:$4 sm:$0xff]   ;;  %v4679_v46 = vld [vmem:[#allocation8 + $0xa4] ss:$16 sps:$4 sm:$0xff]  }
 0x39a   :  { %v4580_v43 = vadd.f32 %v1628_v40, %v1627_v41  ;;  %v4670_v40 = vld [vmem:[#allocation8 + $0x8c] ss:$16 sps:$4 sm:$0xff]   ;;  %v4673_v41 = vld [vmem:[#allocation8 + $0x80] ss:$16 sps:$4 sm:$0xff]   ;;  %6095 = vst [vmem:[#allocation34_spill] sm:$0xff] %v4676_v44  ;;  %6096 = vst [vmem:[#allocation35_spill] sm:$0xff] %v4679_v46 }
 0x39b   :  { %6093 = vst [vmem:[#allocation32_spill] sm:$0xff] %v4670_v40  ;;  %6094 = vst [vmem:[#allocation33_spill] sm:$0xff] %v4673_v41 }
 0x39c   :  { %3370 = vtanh.f32 %v4580_v43 }
 0x3a6   :  { %v3371_v48 = vpop.eup %3370 }
 0x3a7   :  { %v1631_v49 = vmul.f32 %v3371_v48, %v1626_v47  ;;  %v4682_v47 = vld [vmem:[#allocation8 + $0xac] ss:$16 sps:$4 sm:$0xff]   ;;  %v4685_v48 = vld [vmem:[#allocation8 + $0xa0] ss:$16 sps:$4 sm:$0xff]  }
 0x3a8   :  { %6097 = vst [vmem:[#allocation36_spill] sm:$0xff] %v4682_v47  ;;  %6098 = vst [vmem:[#allocation37_spill] sm:$0xff] %v4685_v48 }
 0x3a9   :  { %v1632_v50 = vpack.c.bf16 %v1631_v49, %v1631_v49  ;;  %v4688_v49 = vld [vmem:[#allocation8 + $0xa8] ss:$16 sps:$4 sm:$0xff]  }
 0x3aa   :  { %6099 = vst [vmem:[#allocation38_spill] sm:$0xff] %v4688_v49 }
 0x3ab   :  { %1666 = vmatmul.mubr.bf16.vlgmr.msra.gmra.mrb[36].mxu0 %v1632_v50  ;;  %1707 = vmatmul.mubr.bf16.vlgmr.msra.gmra.mrb[36].mxu1 %v1632_v50 }
 0x3ac   :  { %1742 = vmatpush1.bf16.msra.mxu0 %v4411_v1  ;;  %1783 = vmatpush1.bf16.msra.mxu1 %v4414_v21 }
 0x3ad   :  { %1743 = vmatprep.subr.bf16.mxu0 %v4417_v33  ;;  %1784 = vmatprep.subr.bf16.mxu1 %v4420_v19 }
 0x3ae   :  { %1773 = vmatprep.mubr.bf16.mxu0 %v5963_v23  ;;  %1814 = vmatprep.mubr.bf16.mxu1 %v5963_v23 }
 0x3b0   :  { %1744 = vmatpush1.bf16.msra.mxu0 %v4425_v30  ;;  %1785 = vmatpush1.bf16.msra.mxu1 %v4428_v20 }
 0x3b1   :  { %1745 = vmatprep.subr.bf16.mxu0 %v4431_v22  ;;  %1786 = vmatprep.subr.bf16.mxu1 %v4434_v54 }
 0x3b4   :  { %1746 = vmatpush1.bf16.msra.mxu0 %v4437_v28  ;;  %1787 = vmatpush1.bf16.msra.mxu1 %v4440_v16 }
 0x3b5   :  { %1747 = vmatprep.subr.bf16.mxu0 %v4443_v24  ;;  %1788 = vmatprep.subr.bf16.mxu1 %v4446_v17 }
 0x3b8   :  { %1748 = vmatpush1.bf16.msra.mxu0 %v4449_v29  ;;  %1789 = vmatpush1.bf16.msra.mxu1 %v4452_v27 }
 0x3b9   :  { %1749 = vmatprep.subr.bf16.mxu0 %v4455_v35  ;;  %1790 = vmatprep.subr.bf16.mxu1 %v6079_v34 }
 0x3bc   :  { %1750 = vmatpush1.bf16.msra.mxu0 %v6080_v51  ;;  %1791 = vmatpush1.bf16.msra.mxu1 %v6081_v52 }
 0x3bd   :  { %1751 = vmatprep.subr.bf16.mxu0 %v6082_v56  ;;  %1792 = vmatprep.subr.bf16.mxu1 %v6083_v57 }
 0x3c0   :  { %1752 = vmatpush1.bf16.msra.mxu0 %v6084_v59  ;;  %1793 = vmatpush1.bf16.msra.mxu1 %v6085_v60 }
 0x3c1   :  { %1753 = vmatprep.subr.bf16.mxu0 %v4479_v25  ;;  %1794 = vmatprep.subr.bf16.mxu1 %v4482_v18 }
 0x3c4   :  { %1754 = vmatpush1.bf16.msra.mxu0 %v4485_v32  ;;  %1795 = vmatpush1.bf16.msra.mxu1 %v4488_v36 }
 0x3c5   :  { %1755 = vmatprep.subr.bf16.mxu0 %v4491_v45  ;;  %1796 = vmatprep.subr.bf16.mxu1 %v4494_v63 }
 0x3c8   :  { %1756 = vmatpush1.bf16.msra.mxu0 %v4613_v61  ;;  %1797 = vmatpush1.bf16.msra.mxu1 %v4616_v0 }
 0x3c9   :  { %1846 = vmatprep.subr.bf16.mxu0 %v4619_v2  ;;  %1887 = vmatprep.subr.bf16.mxu1 %v4622_v3 }
 0x3cb   :  { %1774 = vmatmul.mubr.bf16.vlgmr.msra.gmra.mrb[40].mxu0 %v1632_v50  ;;  %1815 = vmatmul.mubr.bf16.vlgmr.msra.gmra.mrb[40].mxu1 %v1632_v50  ;;  %v4691_v50 = vld [vmem:[#allocation8 + $0xc4] ss:$16 sps:$4 sm:$0xff]  }
 0x3cc   :  { %1847 = vmatpush1.bf16.msra.mxu0 %v4625_v4  ;;  %1888 = vmatpush1.bf16.msra.mxu1 %v4628_v31  ;;  %6100 = vst [vmem:[#allocation39_spill] sm:$0xff] %v4691_v50 }
 0x3cd   :  { %1848 = vmatprep.subr.bf16.mxu0 %v4631_v26  ;;  %1889 = vmatprep.subr.bf16.mxu1 %v4634_v5 }
 0x3d0   :  { %1849 = vmatpush1.bf16.msra.mxu0 %v4637_v7  ;;  %1890 = vmatpush1.bf16.msra.mxu1 %v4640_v9 }
 0x3d1   :  { %1850 = vmatprep.subr.bf16.mxu0 %v4643_v10  ;;  %1891 = vmatprep.subr.bf16.mxu1 %v4646_v11 }
 0x3d4   :  { %1851 = vmatpush1.bf16.msra.mxu0 %v4649_v12  ;;  %1892 = vmatpush1.bf16.msra.mxu1 %v4652_v13 }
 0x3d5   :  { %1852 = vmatprep.subr.bf16.mxu0 %v4655_v14  ;;  %1893 = vmatprep.subr.bf16.mxu1 %v4658_v15 }
 0x3d8   :  { %1853 = vmatpush1.bf16.msra.mxu0 %v4661_v37  ;;  %1894 = vmatpush1.bf16.msra.mxu1 %v4664_v38 }
 0x3d9   :  { %1854 = vmatprep.subr.bf16.mxu0 %v4667_v39  ;;  %1895 = vmatprep.subr.bf16.mxu1 %v4670_v40 }
 0x3dc   :  { %1855 = vmatpush1.bf16.msra.mxu0 %v4673_v41  ;;  %1896 = vmatpush1.bf16.msra.mxu1 %v4676_v44  ;;  %v4694_v44 = vld [vmem:[#allocation8 + $0xcc] ss:$16 sps:$4 sm:$0xff]  }
 0x3dd   :  { %1856 = vmatprep.subr.bf16.mxu0 %v4679_v46  ;;  %1897 = vmatprep.subr.bf16.mxu1 %v4682_v47  ;;  %6101 = vst [vmem:[#allocation66_spill] sm:$0xff] %v4694_v44  ;;  %v4697_v46 = vld [vmem:[#allocation8 + $0xc0] ss:$16 sps:$4 sm:$0xff]   ;;  %v4700_v47 = vld [vmem:[#allocation8 + $0xc8] ss:$16 sps:$4 sm:$0xff]  }
 0x3de   :  { %6102 = vst [vmem:[#allocation67_spill] sm:$0xff] %v4697_v46  ;;  %6103 = vst [vmem:[#allocation68_spill] sm:$0xff] %v4700_v47 }
 0x3e0   :  { %1857 = vmatpush1.bf16.msra.mxu0 %v4685_v48  ;;  %1898 = vmatpush1.bf16.msra.mxu1 %v4688_v49  ;;  %v4703_v48 = vld [vmem:[#allocation8 + $0xe4] ss:$16 sps:$4 sm:$0xff]   ;;  %v4706_v49 = vld [vmem:[#allocation8 + $0xec] ss:$16 sps:$4 sm:$0xff]  }
 0x3e1   :  { %1858 = vmatprep.subr.bf16.mxu0 %v4691_v50  ;;  %1899 = vmatprep.subr.bf16.mxu1 %v4694_v44  ;;  %6104 = vst [vmem:[#allocation69_spill] sm:$0xff] %v4703_v48  ;;  %6105 = vst [vmem:[#allocation70_spill] sm:$0xff] %v4706_v49  ;;  %v4709_v50 = vld [vmem:[#allocation8 + $0xe0] ss:$16 sps:$4 sm:$0xff]   ;;  %v4712_v44 = vld [vmem:[#allocation8 + $0xe8] ss:$16 sps:$4 sm:$0xff]  }
 0x3e2   :  { %6106 = vst [vmem:[#allocation40_spill] sm:$0xff] %v4709_v50  ;;  %6107 = vst [vmem:[#allocation41_spill] sm:$0xff] %v4712_v44 }
 0x3e4   :  { %1859 = vmatpush1.bf16.msra.mxu0 %v4697_v46  ;;  %1900 = vmatpush1.bf16.msra.mxu1 %v4700_v47  ;;  %v4715_v46 = vld [vmem:[#allocation8 + $0x104] ss:$16 sps:$4 sm:$0xff]   ;;  %v4718_v47 = vld [vmem:[#allocation8 + $0x10c] ss:$16 sps:$4 sm:$0xff]  }
 0x3e5   :  { %1860 = vmatprep.subr.bf16.mxu0 %v4703_v48  ;;  %1901 = vmatprep.subr.bf16.mxu1 %v4706_v49  ;;  %6108 = vst [vmem:[#allocation42_spill] sm:$0xff] %v4715_v46  ;;  %6109 = vst [vmem:[#allocation43_spill] sm:$0xff] %v4718_v47  ;;  %v4721_v48 = vld [vmem:[#allocation8 + $0x100] ss:$16 sps:$4 sm:$0xff]   ;;  %v4724_v49 = vld [vmem:[#allocation8 + $0x108] ss:$16 sps:$4 sm:$0xff]  }
 0x3e6   :  { %6110 = vst [vmem:[#allocation44_spill] sm:$0xff] %v4721_v48  ;;  %6111 = vst [vmem:[#allocation45_spill] sm:$0xff] %v4724_v49 }
 0x3e8   :  { %1861 = vmatpush1.bf16.msra.mxu0 %v4709_v50  ;;  %1902 = vmatpush1.bf16.msra.mxu1 %v4712_v44  ;;  %v4727_v50 = vld [vmem:[#allocation8 + $0x124] ss:$16 sps:$4 sm:$0xff]   ;;  %v4730_v44 = vld [vmem:[#allocation8 + $0x12c] ss:$16 sps:$4 sm:$0xff]  }
 0x3e9   :  { %1862 = vmatprep.subr.bf16.mxu0 %v4715_v46  ;;  %1903 = vmatprep.subr.bf16.mxu1 %v4718_v47  ;;  %6112 = vst [vmem:[#allocation46_spill] sm:$0xff] %v4727_v50  ;;  %6113 = vst [vmem:[#allocation47_spill] sm:$0xff] %v4730_v44  ;;  %v4733_v46 = vld [vmem:[#allocation8 + $0x120] ss:$16 sps:$4 sm:$0xff]   ;;  %v4736_v47 = vld [vmem:[#allocation8 + $0x128] ss:$16 sps:$4 sm:$0xff]  }
 0x3ea   :  { %6114 = vst [vmem:[#allocation48_spill] sm:$0xff] %v4733_v46  ;;  %6115 = vst [vmem:[#allocation49_spill] sm:$0xff] %v4736_v47 }
 0x3ec   :  { %1863 = vmatpush1.bf16.msra.mxu0 %v4721_v48  ;;  %1904 = vmatpush1.bf16.msra.mxu1 %v4724_v49  ;;  %v4739_v48 = vld [vmem:[#allocation8 + $0x144] ss:$16 sps:$4 sm:$0xff]   ;;  %v4742_v49 = vld [vmem:[#allocation8 + $0x14c] ss:$16 sps:$4 sm:$0xff]  }
 0x3ed   :  { %1864 = vmatprep.subr.bf16.mxu0 %v4727_v50  ;;  %1905 = vmatprep.subr.bf16.mxu1 %v4730_v44  ;;  %6116 = vst [vmem:[#allocation50_spill] sm:$0xff] %v4739_v48  ;;  %6117 = vst [vmem:[#allocation51_spill] sm:$0xff] %v4742_v49  ;;  %v4745_v50 = vld [vmem:[#allocation8 + $0x140] ss:$16 sps:$4 sm:$0xff]   ;;  %v4748_v44 = vld [vmem:[#allocation8 + $0x148] ss:$16 sps:$4 sm:$0xff]  }
 0x3ee   :  { %6118 = vst [vmem:[#allocation52_spill] sm:$0xff] %v4745_v50  ;;  %6119 = vst [vmem:[#allocation53_spill] sm:$0xff] %v4748_v44 }
 0x3f0   :  { %1865 = vmatpush1.bf16.msra.mxu0 %v4733_v46  ;;  %1906 = vmatpush1.bf16.msra.mxu1 %v4736_v47  ;;  %v4751_v46 = vld [vmem:[#allocation8 + $0x164] ss:$16 sps:$4 sm:$0xff]   ;;  %v4754_v47 = vld [vmem:[#allocation8 + $0x16c] ss:$16 sps:$4 sm:$0xff]  }
 0x3f1   :  { %1866 = vmatprep.subr.bf16.mxu0 %v4739_v48  ;;  %1907 = vmatprep.subr.bf16.mxu1 %v4742_v49  ;;  %6120 = vst [vmem:[#allocation54_spill] sm:$0xff] %v4751_v46  ;;  %6121 = vst [vmem:[#allocation55_spill] sm:$0xff] %v4754_v47  ;;  %v4757_v48 = vld [vmem:[#allocation8 + $0x160] ss:$16 sps:$4 sm:$0xff]   ;;  %v4760_v49 = vld [vmem:[#allocation8 + $0x168] ss:$16 sps:$4 sm:$0xff]  }
 0x3f2   :  { %6122 = vst [vmem:[#allocation56_spill] sm:$0xff] %v4757_v48  ;;  %6123 = vst [vmem:[#allocation57_spill] sm:$0xff] %v4760_v49 }
 0x3f4   :  { %1867 = vmatpush1.bf16.msra.mxu0 %v4745_v50  ;;  %1908 = vmatpush1.bf16.msra.mxu1 %v4748_v44  ;;  %v4763_v50 = vld [vmem:[#allocation8 + $0x184] ss:$16 sps:$4 sm:$0xff]   ;;  %v4766_v44 = vld [vmem:[#allocation8 + $0x18c] ss:$16 sps:$4 sm:$0xff]  }
 0x3f5   :  { %1868 = vmatprep.subr.bf16.mxu0 %v4751_v46  ;;  %1909 = vmatprep.subr.bf16.mxu1 %v4754_v47  ;;  %6124 = vst [vmem:[#allocation58_spill] sm:$0xff] %v4763_v50  ;;  %6125 = vst [vmem:[#allocation59_spill] sm:$0xff] %v4766_v44  ;;  %v4769_v46 = vld [vmem:[#allocation8 + $0x180] ss:$16 sps:$4 sm:$0xff]   ;;  %v4772_v47 = vld [vmem:[#allocation8 + $0x188] ss:$16 sps:$4 sm:$0xff]  }
 0x3f6   :  { %6126 = vst [vmem:[#allocation60_spill] sm:$0xff] %v4769_v46  ;;  %6127 = vst [vmem:[#allocation61_spill] sm:$0xff] %v4772_v47 }
 0x3f8   :  { %1869 = vmatpush1.bf16.msra.mxu0 %v4757_v48  ;;  %1910 = vmatpush1.bf16.msra.mxu1 %v4760_v49  ;;  %v4775_v48 = vld [vmem:[#allocation8 + $0x1a4] ss:$16 sps:$4 sm:$0xff]   ;;  %v4778_v49 = vld [vmem:[#allocation8 + $0x1ac] ss:$16 sps:$4 sm:$0xff]  }
 0x3f9   :  { %1870 = vmatprep.subr.bf16.mxu0 %v4763_v50  ;;  %1911 = vmatprep.subr.bf16.mxu1 %v4766_v44  ;;  %6128 = vst [vmem:[#allocation62_spill] sm:$0xff] %v4775_v48  ;;  %6129 = vst [vmem:[#allocation63_spill] sm:$0xff] %v4778_v49  ;;  %v4781_v50 = vld [vmem:[#allocation8 + $0x1a0] ss:$16 sps:$4 sm:$0xff]   ;;  %v4784_v44 = vld [vmem:[#allocation8 + $0x1a8] ss:$16 sps:$4 sm:$0xff]  }
 0x3fa   :  { %6130 = vst [vmem:[#allocation64_spill] sm:$0xff] %v4781_v50  ;;  %6131 = vst [vmem:[#allocation65_spill] sm:$0xff] %v4784_v44 }
 0x3fc   :  { %1871 = vmatpush1.bf16.msra.mxu0 %v4769_v46  ;;  %1912 = vmatpush1.bf16.msra.mxu1 %v4772_v47  ;;  %v4787_v46 = vld [vmem:[#allocation8 + $0x1c4] ss:$16 sps:$4 sm:$0xff]   ;;  %v4790_v47 = vld [vmem:[#allocation8 + $0x1cc] ss:$16 sps:$4 sm:$0xff]  }
 0x3fd   :  { %1872 = vmatprep.subr.bf16.mxu0 %v4775_v48  ;;  %1913 = vmatprep.subr.bf16.mxu1 %v4778_v49  ;;  %6132 = vst [vmem:[#allocation11_spill] sm:$0xff] %v4787_v46  ;;  %6133 = vst [vmem:[#allocation12_spill] sm:$0xff] %v4790_v47  ;;  %v4793_v48 = vld [vmem:[#allocation8 + $0x1c0] ss:$16 sps:$4 sm:$0xff]   ;;  %v4796_v49 = vld [vmem:[#allocation8 + $0x1c8] ss:$16 sps:$4 sm:$0xff]  }
 0x3fe   :  { %6134 = vst [vmem:[#allocation17_spill] sm:$0xff] %v4793_v48  ;;  %6135 = vst [vmem:[#allocation71_spill] sm:$0xff] %v4796_v49 }
 0x400   :  { %1873 = vmatpush1.bf16.msra.mxu0 %v4781_v50  ;;  %1914 = vmatpush1.bf16.msra.mxu1 %v4784_v44  ;;  %v4799_v50 = vld [vmem:[#allocation8 + $0x1e4] ss:$16 sps:$4 sm:$0xff]   ;;  %v4802_v44 = vld [vmem:[#allocation8 + $0x1ec] ss:$16 sps:$4 sm:$0xff]  }
 0x401   :  { %1874 = vmatprep.subr.bf16.mxu0 %v4787_v46  ;;  %1915 = vmatprep.subr.bf16.mxu1 %v4790_v47  ;;  %6136 = vst [vmem:[#allocation72_spill] sm:$0xff] %v4799_v50  ;;  %6137 = vst [vmem:[#allocation73_spill] sm:$0xff] %v4802_v44  ;;  %v4805_v46 = vld [vmem:[#allocation8 + $0x1e0] ss:$16 sps:$4 sm:$0xff]   ;;  %v4808_v47 = vld [vmem:[#allocation8 + $0x1e8] ss:$16 sps:$4 sm:$0xff]  }
 0x402   :  { %6138 = vst [vmem:[#allocation74_spill] sm:$0xff] %v4805_v46  ;;  %6139 = vst [vmem:[#allocation18_spill] sm:$0xff] %v4808_v47 }
 0x404   :  { %1875 = vmatpush1.bf16.msra.mxu0 %v4793_v48  ;;  %1916 = vmatpush1.bf16.msra.mxu1 %v4796_v49 }
 0x405   :  { %1876 = vmatprep.subr.bf16.mxu0 %v4799_v50  ;;  %1917 = vmatprep.subr.bf16.mxu1 %v4802_v44 }
 0x408   :  { %1877 = vmatpush1.bf16.msra.mxu0 %v4805_v46  ;;  %1918 = vmatpush1.bf16.msra.mxu1 %v4808_v47 }
 0x409   :  { %1954 = vmatprep.subr.bf16.mxu0 %v6068_v53  ;;  %1995 = vmatprep.subr.bf16.mxu1 %v6069_v55 }
 0x47e   :  { %v1667_v49 = vpop.f32.mrb[36].mxu0  ;;  %v1708_v48 = vpop.f32.mrb[36].mxu1 }
 0x47f   :  { %v1668_v50 = vadd.f32 %v1667_v49, %v6070_v58  ;;  %v1669_v41 = vpop.f32.mrb[37].mxu0  ;;  %v1710_v40 = vpop.f32.mrb[37].mxu1  ;;  %v1709_v47 = vadd.f32 %v1708_v48, %v6072_v6 }
 0x480   :  { %v1670_v44 = vadd.f32 %v1669_v41, %v6071_v62  ;;  %v1671_v39 = vpop.f32.mrb[38].mxu0  ;;  %v1712_v38 = vpop.f32.mrb[38].mxu1  ;;  %v1711_v53 = vadd.f32 %v1710_v40, %v6073_v8  ;;  %v6143_v8 = vld [vmem:[#allocation77_spill] sm:$0xff] }
 0x481   :  { %v1715_v37 = vmul.f32 0.5, %v1668_v50  ;;  %v1672_v46 = vpop.f32.mrb[39].mxu0  ;;  %v1713_v15 = vpop.f32.mrb[39].mxu1 }
 0x482   :  { %v1719_v14 = vmul.f32 0.5, %v1670_v44  ;;  %v1724_v55 = vmul.f32 0.5, %v1711_v53  ;;  %v6142_v53 = vld [vmem:[#allocation76_spill] sm:$0xff] }
 0x483   :  { %3372 = vtanh.f32 %v1715_v37 }
 0x484   :  { %3374 = vtanh.f32 %v1719_v14 }
 0x485   :  { %3376 = vtanh.f32 %v1709_v47  ;;  %v6141_v47 = vld [vmem:[#allocation75_spill] sm:$0xff] }
 0x486   :  { %3378 = vtanh.f32 %v1724_v55 }
 0x48d   :  { %v3373_v13 = vpop.eup %3372 }
 0x48e   :  { %v3375_v49 = vpop.eup %3374  ;;  %v1717_v58 = vmul.f32 0.5, %v3373_v13 }
 0x48f   :  { %v1721_v12 = vmul.f32 0.5, %v3375_v49  ;;  %v3377_v39 = vpop.eup %3376 }
 0x490   :  { %v1718_v41 = vadd.f32 0.5, %v1717_v58  ;;  %v3379_v14 = vpop.eup %3378 }
 0x491   :  { %v1722_v38 = vadd.f32 0.5, %v1721_v12  ;;  %v1726_v37 = vmul.f32 0.5, %v3379_v14 }
 0x492   :  { %v1729_v50 = vmul.f32 %v3377_v39, %v1718_v41  ;;  %v6144_v41 = vld [vmem:[#allocation78_spill] sm:$0xff] }
 0x493   :  { %v1728_v15 = vmul.f32 %v1722_v38, %v4572_v42  ;;  %v1727_v58 = vadd.f32 0.5, %v1726_v37 }
 0x495   :  { %v4818_v44 = vadd.f32 %v1729_v50, %v1728_v15 }
 0x497   :  { %6140 = vst [vmem:[#allocation19_spill] sm:$0xff] %v4818_v44  ;;  %3380 = vtanh.f32 %v4818_v44 }
 0x49e   :  { %v1775_v46 = vpop.f32.mrb[40].mxu0  ;;  %v1816_v40 = vpop.f32.mrb[40].mxu1 }
 0x49f   :  { %v1823_v48 = vadd.f32 %v1775_v46, %v6141_v47  ;;  %v1825_v13 = vadd.f32 %v1816_v40, %v6142_v53  ;;  %v1777_v49 = vpop.f32.mrb[41].mxu0  ;;  %v1818_v55 = vpop.f32.mrb[41].mxu1 }
 0x4a0   :  { %v1824_v12 = vadd.f32 %v1777_v49, %v6143_v8  ;;  %v1826_v39 = vadd.f32 %v1818_v55, %v6144_v41  ;;  %v1779_v42 = vpop.f32.mrb[42].mxu0  ;;  %v1820_v38 = vpop.f32.mrb[42].mxu1 }
 0x4a1   :  { %v3381_v50 = vpop.eup %3380  ;;  %v1827_v15 = vmul.f32 0.5, %v1823_v48  ;;  %v1780_v44 = vpop.f32.mrb[43].mxu0  ;;  %v6174_v38 = vld [vmem:[#allocation49_spill] sm:$0xff] }
 0x4a2   :  { %v1821_v6 = vpop.f32.mrb[43].mxu1  ;;  %v1831_v14 = vmul.f32 0.5, %v1824_v12  ;;  %v1732_v62 = vmul.f32 %v3381_v50, %v1727_v58  ;;  %v1836_v40 = vmul.f32 0.5, %v1826_v39  ;;  %v6175_v50 = vld [vmem:[#allocation50_spill] sm:$0xff] }
 0x4a3   :  { %3382 = vtanh.f32 %v1827_v15  ;;  %v6176_v15 = vld [vmem:[#allocation51_spill] sm:$0xff] }
 0x4a4   :  { %3384 = vtanh.f32 %v1831_v14  ;;  %v1733_v46 = vpack.c.bf16 %v1732_v62, %v1732_v62  ;;  %v6177_v14 = vld [vmem:[#allocation52_spill] sm:$0xff] }
 0x4a5   :  { %3386 = vtanh.f32 %v1825_v13 }
 0x4a6   :  { %1878 = vmatprep.mubr.bf16.mxu0 %v1733_v46  ;;  %1919 = vmatprep.mubr.bf16.mxu1 %v1733_v46  ;;  %3388 = vtanh.f32 %v1836_v40  ;;  %v6178_v46 = vld [vmem:[#allocation53_spill] sm:$0xff]  ;;  %v6179_v40 = vld [vmem:[#allocation54_spill] sm:$0xff] }
 0x4ad   :  { %v3383_v37 = vpop.eup %3382 }
 0x4ae   :  { %v3385_v47 = vpop.eup %3384  ;;  %v1829_v8 = vmul.f32 0.5, %v3383_v37  ;;  %v6180_v37 = vld [vmem:[#allocation55_spill] sm:$0xff] }
 0x4af   :  { %v1833_v53 = vmul.f32 0.5, %v3385_v47  ;;  %v3387_v55 = vpop.eup %3386  ;;  %v6181_v47 = vld [vmem:[#allocation56_spill] sm:$0xff] }
 0x4b0   :  { %v1830_v49 = vadd.f32 0.5, %v1829_v8  ;;  %v3389_v62 = vpop.eup %3388  ;;  %v6182_v8 = vld [vmem:[#allocation57_spill] sm:$0xff] }
 0x4b1   :  { %v1834_v41 = vadd.f32 0.5, %v1833_v53  ;;  %v1838_v58 = vmul.f32 0.5, %v3389_v62  ;;  %v6183_v53 = vld [vmem:[#allocation58_spill] sm:$0xff]  ;;  %v6189_v62 = vld [vmem:[#allocation64_spill] sm:$0xff] }
 0x4b2   :  { %v1841_v48 = vmul.f32 %v3387_v55, %v1830_v49  ;;  %v6184_v49 = vld [vmem:[#allocation59_spill] sm:$0xff]  ;;  %v6185_v55 = vld [vmem:[#allocation60_spill] sm:$0xff] }
 0x4b3   :  { %v1840_v6 = vmul.f32 %v1834_v41, %v4580_v43  ;;  %v1839_v12 = vadd.f32 0.5, %v1838_v58  ;;  %v6166_v43 = vld [vmem:[#allocation41_spill] sm:$0xff] }
 0x4b4   :  { %v6186_v41 = vld [vmem:[#allocation61_spill] sm:$0xff] }
 0x4b5   :  { %v4826_v44 = vadd.f32 %v1841_v48, %v1840_v6  ;;  %v6187_v48 = vld [vmem:[#allocation62_spill] sm:$0xff]  ;;  %v6188_v6 = vld [vmem:[#allocation63_spill] sm:$0xff]  ;;  %v6190_v58 = vld [vmem:[#allocation65_spill] sm:$0xff] }
 0x4b7   :  { %3390 = vtanh.f32 %v4826_v44 }
 0x4c1   :  { %v3391_v13 = vpop.eup %3390 }
 0x4c2   :  { %v1844_v39 = vmul.f32 %v3391_v13, %v1839_v12  ;;  %v6191_v12 = vld [vmem:[#allocation11_spill] sm:$0xff]  ;;  %v6192_v13 = vld [vmem:[#allocation12_spill] sm:$0xff] }
 0x4c4   :  { %v1845_v42 = vpack.c.bf16 %v1844_v39, %v1844_v39  ;;  %v6193_v39 = vld [vmem:[#allocation17_spill] sm:$0xff] }
 0x4c6   :  { %1879 = vmatmul.mubr.bf16.vlgmr.msra.gmra.mrb[44].mxu0 %v1845_v42  ;;  %1920 = vmatmul.mubr.bf16.vlgmr.msra.gmra.mrb[44].mxu1 %v1845_v42 }
 0x4c7   :  { %1955 = vmatpush1.bf16.msra.mxu0 %v4411_v1  ;;  %1996 = vmatpush1.bf16.msra.mxu1 %v4414_v21  ;;  %v6145_v1 = vld [vmem:[#allocation25_spill] sm:$0xff]  ;;  %v6146_v21 = vld [vmem:[#allocation26_spill] sm:$0xff] }
 0x4c8   :  { %1956 = vmatprep.subr.bf16.mxu0 %v4417_v33  ;;  %1997 = vmatprep.subr.bf16.mxu1 %v4420_v19  ;;  %v6147_v33 = vld [vmem:[#allocation27_spill] sm:$0xff]  ;;  %v6148_v19 = vld [vmem:[#allocation28_spill] sm:$0xff] }
 0x4c9   :  { %1986 = vmatprep.mubr.bf16.mxu0 %v5963_v23  ;;  %2027 = vmatprep.mubr.bf16.mxu1 %v5963_v23 }
 0x4cb   :  { %1957 = vmatpush1.bf16.msra.mxu0 %v4425_v30  ;;  %1998 = vmatpush1.bf16.msra.mxu1 %v4428_v20  ;;  %v6149_v30 = vld [vmem:[#allocation29_spill] sm:$0xff]  ;;  %v6150_v20 = vld [vmem:[#allocation30_spill] sm:$0xff] }
 0x4cc   :  { %1958 = vmatprep.subr.bf16.mxu0 %v4431_v22  ;;  %1999 = vmatprep.subr.bf16.mxu1 %v4434_v54  ;;  %v6151_v22 = vld [vmem:[#allocation31_spill] sm:$0xff]  ;;  %v6152_v54 = vld [vmem:[#allocation32_spill] sm:$0xff] }
 0x4cf   :  { %1959 = vmatpush1.bf16.msra.mxu0 %v4437_v28  ;;  %2000 = vmatpush1.bf16.msra.mxu1 %v4440_v16  ;;  %v6153_v28 = vld [vmem:[#allocation33_spill] sm:$0xff]  ;;  %v6154_v16 = vld [vmem:[#allocation34_spill] sm:$0xff] }
 0x4d0   :  { %1960 = vmatprep.subr.bf16.mxu0 %v4443_v24  ;;  %2001 = vmatprep.subr.bf16.mxu1 %v4446_v17  ;;  %v6155_v24 = vld [vmem:[#allocation35_spill] sm:$0xff]  ;;  %v6156_v17 = vld [vmem:[#allocation36_spill] sm:$0xff] }
 0x4d3   :  { %1961 = vmatpush1.bf16.msra.mxu0 %v4449_v29  ;;  %2002 = vmatpush1.bf16.msra.mxu1 %v4452_v27  ;;  %v6157_v29 = vld [vmem:[#allocation37_spill] sm:$0xff]  ;;  %v6158_v27 = vld [vmem:[#allocation38_spill] sm:$0xff] }
 0x4d4   :  { %1962 = vmatprep.subr.bf16.mxu0 %v4455_v35  ;;  %2003 = vmatprep.subr.bf16.mxu1 %v6079_v34  ;;  %v6159_v35 = vld [vmem:[#allocation39_spill] sm:$0xff]  ;;  %v6167_v34 = vld [vmem:[#allocation42_spill] sm:$0xff] }
 0x4d7   :  { %1963 = vmatpush1.bf16.msra.mxu0 %v6080_v51  ;;  %2004 = vmatpush1.bf16.msra.mxu1 %v6081_v52  ;;  %v6168_v51 = vld [vmem:[#allocation43_spill] sm:$0xff]  ;;  %v6169_v52 = vld [vmem:[#allocation44_spill] sm:$0xff] }
 0x4d8   :  { %1964 = vmatprep.subr.bf16.mxu0 %v6082_v56  ;;  %2005 = vmatprep.subr.bf16.mxu1 %v6083_v57  ;;  %v6170_v56 = vld [vmem:[#allocation45_spill] sm:$0xff]  ;;  %v6171_v57 = vld [vmem:[#allocation46_spill] sm:$0xff] }
 0x4db   :  { %1965 = vmatpush1.bf16.msra.mxu0 %v6084_v59  ;;  %2006 = vmatpush1.bf16.msra.mxu1 %v6085_v60  ;;  %v6172_v59 = vld [vmem:[#allocation47_spill] sm:$0xff]  ;;  %v6173_v60 = vld [vmem:[#allocation48_spill] sm:$0xff] }
 0x4dc   :  { %1966 = vmatprep.subr.bf16.mxu0 %v4479_v25  ;;  %2007 = vmatprep.subr.bf16.mxu1 %v4482_v18  ;;  %v6161_v25 = vld [vmem:[#allocation67_spill] sm:$0xff]  ;;  %v6162_v18 = vld [vmem:[#allocation68_spill] sm:$0xff] }
 0x4df   :  { %1967 = vmatpush1.bf16.msra.mxu0 %v4485_v32  ;;  %2008 = vmatpush1.bf16.msra.mxu1 %v4488_v36  ;;  %v6163_v32 = vld [vmem:[#allocation69_spill] sm:$0xff]  ;;  %v6164_v36 = vld [vmem:[#allocation70_spill] sm:$0xff] }
 0x4e0   :  { %1968 = vmatprep.subr.bf16.mxu0 %v4491_v45  ;;  %2009 = vmatprep.subr.bf16.mxu1 %v4494_v63  ;;  %v6160_v63 = vld [vmem:[#allocation66_spill] sm:$0xff]  ;;  %v6165_v45 = vld [vmem:[#allocation40_spill] sm:$0xff] }
 0x4e3   :  { %1969 = vmatpush1.bf16.msra.mxu0 %v4613_v61  ;;  %2010 = vmatpush1.bf16.msra.mxu1 %v4616_v0 }
 0x4e4   :  { %2059 = vmatprep.subr.bf16.mxu0 %v4619_v2  ;;  %2100 = vmatprep.subr.bf16.mxu1 %v4622_v3 }
 0x4e6   :  { %1987 = vmatmul.mubr.bf16.vlgmr.msra.gmra.mrb[48].mxu0 %v1845_v42  ;;  %2028 = vmatmul.mubr.bf16.vlgmr.msra.gmra.mrb[48].mxu1 %v1845_v42  ;;  %v6194_v42 = vld [vmem:[#allocation71_spill] sm:$0xff] }
 0x4e7   :  { %2060 = vmatpush1.bf16.msra.mxu0 %v4625_v4  ;;  %2101 = vmatpush1.bf16.msra.mxu1 %v4628_v31 }
 0x4e8   :  { %2061 = vmatprep.subr.bf16.mxu0 %v4631_v26  ;;  %2102 = vmatprep.subr.bf16.mxu1 %v4634_v5 }
 0x4eb   :  { %2062 = vmatpush1.bf16.msra.mxu0 %v4637_v7  ;;  %2103 = vmatpush1.bf16.msra.mxu1 %v4640_v9 }
 0x4ec   :  { %2063 = vmatprep.subr.bf16.mxu0 %v4643_v10  ;;  %2104 = vmatprep.subr.bf16.mxu1 %v4646_v11 }
 0x4ef   :  { %2064 = vmatpush1.bf16.msra.mxu0 %v6145_v1  ;;  %2105 = vmatpush1.bf16.msra.mxu1 %v6146_v21 }
 0x4f0   :  { %2065 = vmatprep.subr.bf16.mxu0 %v6147_v33  ;;  %2106 = vmatprep.subr.bf16.mxu1 %v6148_v19 }
 0x4f3   :  { %2066 = vmatpush1.bf16.msra.mxu0 %v6149_v30  ;;  %2107 = vmatpush1.bf16.msra.mxu1 %v6150_v20 }
 0x4f4   :  { %2067 = vmatprep.subr.bf16.mxu0 %v6151_v22  ;;  %2108 = vmatprep.subr.bf16.mxu1 %v6152_v54 }
 0x4f7   :  { %2068 = vmatpush1.bf16.msra.mxu0 %v6153_v28  ;;  %2109 = vmatpush1.bf16.msra.mxu1 %v6154_v16 }
 0x4f8   :  { %2069 = vmatprep.subr.bf16.mxu0 %v6155_v24  ;;  %2110 = vmatprep.subr.bf16.mxu1 %v6156_v17 }
 0x4fb   :  { %2070 = vmatpush1.bf16.msra.mxu0 %v6157_v29  ;;  %2111 = vmatpush1.bf16.msra.mxu1 %v6158_v27 }
 0x4fc   :  { %2071 = vmatprep.subr.bf16.mxu0 %v6159_v35  ;;  %2112 = vmatprep.subr.bf16.mxu1 %v6160_v63 }
 0x4ff   :  { %2072 = vmatpush1.bf16.msra.mxu0 %v6161_v25  ;;  %2113 = vmatpush1.bf16.msra.mxu1 %v6162_v18 }
 0x500   :  { %2073 = vmatprep.subr.bf16.mxu0 %v6163_v32  ;;  %2114 = vmatprep.subr.bf16.mxu1 %v6164_v36 }
 0x503   :  { %2074 = vmatpush1.bf16.msra.mxu0 %v6165_v45  ;;  %2115 = vmatpush1.bf16.msra.mxu1 %v6166_v43 }
 0x504   :  { %2075 = vmatprep.subr.bf16.mxu0 %v6167_v34  ;;  %2116 = vmatprep.subr.bf16.mxu1 %v6168_v51 }
 0x507   :  { %2076 = vmatpush1.bf16.msra.mxu0 %v6169_v52  ;;  %2117 = vmatpush1.bf16.msra.mxu1 %v6170_v56 }
 0x508   :  { %2077 = vmatprep.subr.bf16.mxu0 %v6171_v57  ;;  %2118 = vmatprep.subr.bf16.mxu1 %v6172_v59 }
 0x50b   :  { %2078 = vmatpush1.bf16.msra.mxu0 %v6173_v60  ;;  %2119 = vmatpush1.bf16.msra.mxu1 %v6174_v38 }
 0x50c   :  { %2079 = vmatprep.subr.bf16.mxu0 %v6175_v50  ;;  %2120 = vmatprep.subr.bf16.mxu1 %v6176_v15 }
 0x50f   :  { %2080 = vmatpush1.bf16.msra.mxu0 %v6177_v14  ;;  %2121 = vmatpush1.bf16.msra.mxu1 %v6178_v46 }
 0x510   :  { %2081 = vmatprep.subr.bf16.mxu0 %v6179_v40  ;;  %2122 = vmatprep.subr.bf16.mxu1 %v6180_v37 }
 0x513   :  { %2082 = vmatpush1.bf16.msra.mxu0 %v6181_v47  ;;  %2123 = vmatpush1.bf16.msra.mxu1 %v6182_v8 }
 0x514   :  { %2083 = vmatprep.subr.bf16.mxu0 %v6183_v53  ;;  %2124 = vmatprep.subr.bf16.mxu1 %v6184_v49  ;;  %v6195_v49 = vld [vmem:[#allocation72_spill] sm:$0xff]  ;;  %v6202_v53 = vld [vmem:[#allocation14_spill] sm:$0xff] }
 0x517   :  { %2084 = vmatpush1.bf16.msra.mxu0 %v6185_v55  ;;  %2125 = vmatpush1.bf16.msra.mxu1 %v6186_v41  ;;  %v6196_v55 = vld [vmem:[#allocation73_spill] sm:$0xff]  ;;  %v6197_v41 = vld [vmem:[#allocation74_spill] sm:$0xff] }
 0x518   :  { %2085 = vmatprep.subr.bf16.mxu0 %v6187_v48  ;;  %2126 = vmatprep.subr.bf16.mxu1 %v6188_v6  ;;  %v6198_v48 = vld [vmem:[#allocation18_spill] sm:$0xff]  ;;  %v4925_v6 = vld [vmem:[#allocation6 + $0x4] ss:$16 sps:$4 sm:$0xff]  }
 0x519   :  { %6199 = vst [vmem:[#allocation20_spill] sm:$0xff] %v4925_v6 }
 0x51b   :  { %2086 = vmatpush1.bf16.msra.mxu0 %v6189_v62  ;;  %2127 = vmatpush1.bf16.msra.mxu1 %v6190_v58  ;;  %v4928_v58 = vld [vmem:[#allocation6 + $0xc] ss:$16 sps:$4 sm:$0xff]  }
 0x51c   :  { %2087 = vmatprep.subr.bf16.mxu0 %v6191_v12  ;;  %2128 = vmatprep.subr.bf16.mxu1 %v6192_v13  ;;  %6200 = vst [vmem:[#allocation21_spill] sm:$0xff] %v4928_v58  ;;  %v6201_v12 = vld [vmem:[#allocation13_spill] sm:$0xff] }
 0x51f   :  { %2088 = vmatpush1.bf16.msra.mxu0 %v6193_v39  ;;  %2129 = vmatpush1.bf16.msra.mxu1 %v6194_v42 }
 0x520   :  { %2089 = vmatprep.subr.bf16.mxu0 %v6195_v49  ;;  %2130 = vmatprep.subr.bf16.mxu1 %v6196_v55 }
 0x523   :  { %2090 = vmatpush1.bf16.msra.mxu0 %v6197_v41  ;;  %2131 = vmatpush1.bf16.msra.mxu1 %v6198_v48 }
 0x524   :  { %2167 = vmatprep.subr.bf16.mxu0 %v4925_v6  ;;  %2208 = vmatprep.subr.bf16.mxu1 %v4928_v58  ;;  %v6203_v6 = vld [vmem:[#allocation15_spill] sm:$0xff]  ;;  %v6204_v58 = vld [vmem:[#allocation16_spill] sm:$0xff] }
 0x599   :  { %v1880_v13 = vpop.f32.mrb[44].mxu0  ;;  %v1921_v39 = vpop.f32.mrb[44].mxu1 }
 0x59a   :  { %v1881_v42 = vadd.f32 %v1880_v13, %v6201_v12  ;;  %v1882_v62 = vpop.f32.mrb[45].mxu0  ;;  %v1923_v49 = vpop.f32.mrb[45].mxu1  ;;  %v1922_v46 = vadd.f32 %v1921_v39, %v6203_v6  ;;  %v6209_v6 = vld [vmem:[#allocation81_spill] sm:$0xff] }
 0x59b   :  { %v1883_v55 = vadd.f32 %v1882_v62, %v6202_v53  ;;  %v1884_v8 = vpop.f32.mrb[46].mxu0  ;;  %v1925_v41 = vpop.f32.mrb[46].mxu1  ;;  %v1924_v14 = vadd.f32 %v1923_v49, %v6204_v58  ;;  %v6208_v58 = vld [vmem:[#allocation80_spill] sm:$0xff] }
 0x59c   :  { %v1928_v47 = vmul.f32 0.5, %v1881_v42  ;;  %v1885_v48 = vpop.f32.mrb[47].mxu0  ;;  %v1926_v37 = vpop.f32.mrb[47].mxu1 }
 0x59d   :  { %v1932_v40 = vmul.f32 0.5, %v1883_v55  ;;  %v1937_v15 = vmul.f32 0.5, %v1924_v14  ;;  %v6205_v48 = vld [vmem:[#allocation19_spill] sm:$0xff] }
 0x59e   :  { %3392 = vtanh.f32 %v1928_v47  ;;  %v6207_v14 = vld [vmem:[#allocation79_spill] sm:$0xff] }
 0x59f   :  { %3394 = vtanh.f32 %v1932_v40 }
 0x5a0   :  { %3396 = vtanh.f32 %v1922_v46 }
 0x5a1   :  { %3398 = vtanh.f32 %v1937_v15 }
 0x5a8   :  { %v3393_v50 = vpop.eup %3392 }
 0x5a9   :  { %v3395_v13 = vpop.eup %3394  ;;  %v1930_v12 = vmul.f32 0.5, %v3393_v50 }
 0x5aa   :  { %v1934_v38 = vmul.f32 0.5, %v3395_v13  ;;  %v3397_v8 = vpop.eup %3396 }
 0x5ab   :  { %v1931_v62 = vadd.f32 0.5, %v1930_v12  ;;  %v3399_v40 = vpop.eup %3398 }
 0x5ac   :  { %v1935_v41 = vadd.f32 0.5, %v1934_v38  ;;  %v1939_v46 = vmul.f32 0.5, %v3399_v40 }
 0x5ad   :  { %v1942_v42 = vmul.f32 %v3397_v8, %v1931_v62  ;;  %v6210_v62 = vld [vmem:[#allocation82_spill] sm:$0xff] }
 0x5ae   :  { %v1941_v37 = vmul.f32 %v1935_v41, %v6205_v48  ;;  %v1940_v12 = vadd.f32 0.5, %v1939_v46 }
 0x5b0   :  { %v4936_v55 = vadd.f32 %v1942_v42, %v1941_v37 }
 0x5b2   :  { %6206 = vst [vmem:[#allocation22_spill] sm:$0xff] %v4936_v55  ;;  %3400 = vtanh.f32 %v4936_v55 }
 0x5b9   :  { %v1988_v47 = vpop.f32.mrb[48].mxu0  ;;  %v2029_v49 = vpop.f32.mrb[48].mxu1 }
 0x5ba   :  { %v2036_v39 = vadd.f32 %v1988_v47, %v6207_v14  ;;  %v2038_v50 = vadd.f32 %v2029_v49, %v6208_v58  ;;  %v1990_v13 = vpop.f32.mrb[49].mxu0  ;;  %v2031_v15 = vpop.f32.mrb[49].mxu1 }
 0x5bb   :  { %v2037_v38 = vadd.f32 %v1990_v13, %v6209_v6  ;;  %v2039_v8 = vadd.f32 %v2031_v15, %v6210_v62  ;;  %v1992_v41 = vpop.f32.mrb[50].mxu0  ;;  %v2033_v42 = vpop.f32.mrb[50].mxu1 }
 0x5bc   :  { %v3401_v48 = vpop.eup %3400  ;;  %v2040_v37 = vmul.f32 0.5, %v2036_v39  ;;  %v1993_v55 = vpop.f32.mrb[51].mxu0  ;;  %v4951_v42 = vld [vmem:[#allocation6] ss:$16 sps:$4 sm:$0xff]  }
 0x5bd   :  { %v2034_v53 = vpop.f32.mrb[51].mxu1  ;;  %v2044_v40 = vmul.f32 0.5, %v2037_v38  ;;  %v1945_v60 = vmul.f32 %v3401_v48, %v1940_v12  ;;  %v2049_v58 = vmul.f32 0.5, %v2039_v8  ;;  %v4957_v48 = vld [vmem:[#allocation6 + $0x24] ss:$16 sps:$4 sm:$0xff]  }
 0x5be   :  { %3402 = vtanh.f32 %v2040_v37  ;;  %v4960_v37 = vld [vmem:[#allocation6 + $0x2c] ss:$16 sps:$4 sm:$0xff]  }
 0x5bf   :  { %3404 = vtanh.f32 %v2044_v40  ;;  %v1946_v47 = vpack.c.bf16 %v1945_v60, %v1945_v60  ;;  %v4965_v40 = vld [vmem:[#allocation6 + $0x20] ss:$16 sps:$4 sm:$0xff]  }
 0x5c0   :  { %3406 = vtanh.f32 %v2038_v50 }
 0x5c1   :  { %2091 = vmatprep.mubr.bf16.mxu0 %v1946_v47  ;;  %2132 = vmatprep.mubr.bf16.mxu1 %v1946_v47  ;;  %3408 = vtanh.f32 %v2049_v58  ;;  %v4968_v47 = vld [vmem:[#allocation6 + $0x28] ss:$16 sps:$4 sm:$0xff]   ;;  %v4971_v58 = vld [vmem:[#allocation6 + $0x44] ss:$16 sps:$4 sm:$0xff]  }
 0x5c8   :  { %v3403_v46 = vpop.eup %3402 }
 0x5c9   :  { %v3405_v49 = vpop.eup %3404  ;;  %v2042_v6 = vmul.f32 0.5, %v3403_v46  ;;  %v4974_v46 = vld [vmem:[#allocation6 + $0x4c] ss:$16 sps:$4 sm:$0xff]  }
 0x5ca   :  { %v2046_v14 = vmul.f32 0.5, %v3405_v49  ;;  %v3407_v15 = vpop.eup %3406  ;;  %v4977_v49 = vld [vmem:[#allocation6 + $0x40] ss:$16 sps:$4 sm:$0xff]  }
 0x5cb   :  { %v2043_v13 = vadd.f32 0.5, %v2042_v6  ;;  %v3409_v60 = vpop.eup %3408  ;;  %v4980_v6 = vld [vmem:[#allocation6 + $0x48] ss:$16 sps:$4 sm:$0xff]  }
 0x5cc   :  { %v2047_v62 = vadd.f32 0.5, %v2046_v14  ;;  %v2051_v12 = vmul.f32 0.5, %v3409_v60  ;;  %v4983_v14 = vld [vmem:[#allocation6 + $0x64] ss:$16 sps:$4 sm:$0xff]   ;;  %v5001_v60 = vld [vmem:[#allocation6 + $0x80] ss:$16 sps:$4 sm:$0xff]  }
 0x5cd   :  { %v2054_v39 = vmul.f32 %v3407_v15, %v2043_v13  ;;  %v4986_v13 = vld [vmem:[#allocation6 + $0x6c] ss:$16 sps:$4 sm:$0xff]   ;;  %v4989_v15 = vld [vmem:[#allocation6 + $0x60] ss:$16 sps:$4 sm:$0xff]   ;;  %6212 = vst [vmem:[#allocation24_spill] sm:$0xff] %v5001_v60 }
 0x5ce   :  { %v2053_v53 = vmul.f32 %v2047_v62, %v4826_v44  ;;  %v2052_v38 = vadd.f32 0.5, %v2051_v12  ;;  %v4954_v44 = vld [vmem:[#allocation6 + $0x8] ss:$16 sps:$4 sm:$0xff]  }
 0x5cf   :  { %v4992_v62 = vld [vmem:[#allocation6 + $0x68] ss:$16 sps:$4 sm:$0xff]  }
 0x5d0   :  { %v4944_v55 = vadd.f32 %v2054_v39, %v2053_v53  ;;  %v4995_v39 = vld [vmem:[#allocation6 + $0x84] ss:$16 sps:$4 sm:$0xff]   ;;  %v4998_v53 = vld [vmem:[#allocation6 + $0x8c] ss:$16 sps:$4 sm:$0xff]   ;;  %v5004_v12 = vld [vmem:[#allocation6 + $0x88] ss:$16 sps:$4 sm:$0xff]  }
 0x5d1   :  { %6211 = vst [vmem:[#allocation23_spill] sm:$0xff] %v4998_v53  ;;  %6213 = vst [vmem:[#allocation75_spill] sm:$0xff] %v5004_v12 }
 0x5d2   :  { %3410 = vtanh.f32 %v4944_v55 }
 0x5dc   :  { %v3411_v50 = vpop.eup %3410 }
 0x5dd   :  { %v2057_v8 = vmul.f32 %v3411_v50, %v2052_v38  ;;  %v5007_v38 = vld [vmem:[#allocation6 + $0xa4] ss:$16 sps:$4 sm:$0xff]   ;;  %v5010_v50 = vld [vmem:[#allocation6 + $0xac] ss:$16 sps:$4 sm:$0xff]  }
 0x5de   :  { %6214 = vst [vmem:[#allocation76_spill] sm:$0xff] %v5007_v38  ;;  %6215 = vst [vmem:[#allocation77_spill] sm:$0xff] %v5010_v50 }
 0x5df   :  { %v4947_v41 = vpack.c.bf16 %v2057_v8, %v2057_v8  ;;  %v5013_v8 = vld [vmem:[#allocation6 + $0xa0] ss:$16 sps:$4 sm:$0xff]  }
 0x5e0   :  { %6216 = vst [vmem:[#allocation78_spill] sm:$0xff] %v5013_v8 }
 0x5e1   :  { %2092 = vmatmul.mubr.bf16.vlgmr.msra.gmra.mrb[52].mxu0 %v4947_v41  ;;  %2133 = vmatmul.mubr.bf16.vlgmr.msra.gmra.mrb[52].mxu1 %v4947_v41 }
 0x5e2   :  { %2168 = vmatpush1.bf16.msra.mxu0 %v4951_v42  ;;  %2209 = vmatpush1.bf16.msra.mxu1 %v4954_v44 }
 0x5e3   :  { %2169 = vmatprep.subr.bf16.mxu0 %v4957_v48  ;;  %2210 = vmatprep.subr.bf16.mxu1 %v4960_v37 }
 0x5e4   :  { %2199 = vmatprep.mubr.bf16.mxu0 %v5963_v23  ;;  %2240 = vmatprep.mubr.bf16.mxu1 %v5963_v23 }
 0x5e6   :  { %2170 = vmatpush1.bf16.msra.mxu0 %v4965_v40  ;;  %2211 = vmatpush1.bf16.msra.mxu1 %v4968_v47 }
 0x5e7   :  { %2171 = vmatprep.subr.bf16.mxu0 %v4971_v58  ;;  %2212 = vmatprep.subr.bf16.mxu1 %v4974_v46 }
 0x5ea   :  { %2172 = vmatpush1.bf16.msra.mxu0 %v4977_v49  ;;  %2213 = vmatpush1.bf16.msra.mxu1 %v4980_v6 }
 0x5eb   :  { %2173 = vmatprep.subr.bf16.mxu0 %v4983_v14  ;;  %2214 = vmatprep.subr.bf16.mxu1 %v4986_v13 }
 0x5ee   :  { %2174 = vmatpush1.bf16.msra.mxu0 %v4989_v15  ;;  %2215 = vmatpush1.bf16.msra.mxu1 %v4992_v62 }
 0x5ef   :  { %2175 = vmatprep.subr.bf16.mxu0 %v4995_v39  ;;  %2216 = vmatprep.subr.bf16.mxu1 %v4998_v53  ;;  %v5016_v53 = vld [vmem:[#allocation6 + $0xa8] ss:$16 sps:$4 sm:$0xff]  }
 0x5f0   :  { %6217 = vst [vmem:[#allocation25_spill] sm:$0xff] %v5016_v53 }
 0x5f2   :  { %2176 = vmatpush1.bf16.msra.mxu0 %v5001_v60  ;;  %2217 = vmatpush1.bf16.msra.mxu1 %v5004_v12  ;;  %v5019_v60 = vld [vmem:[#allocation6 + $0xc4] ss:$16 sps:$4 sm:$0xff]   ;;  %v5022_v12 = vld [vmem:[#allocation6 + $0xcc] ss:$16 sps:$4 sm:$0xff]  }
 0x5f3   :  { %2177 = vmatprep.subr.bf16.mxu0 %v5007_v38  ;;  %2218 = vmatprep.subr.bf16.mxu1 %v5010_v50  ;;  %v5025_v38 = vld [vmem:[#allocation6 + $0xc0] ss:$16 sps:$4 sm:$0xff]   ;;  %v5028_v50 = vld [vmem:[#allocation6 + $0xc8] ss:$16 sps:$4 sm:$0xff]  }
 0x5f6   :  { %2178 = vmatpush1.bf16.msra.mxu0 %v5013_v8  ;;  %2219 = vmatpush1.bf16.msra.mxu1 %v5016_v53  ;;  %v5031_v8 = vld [vmem:[#allocation6 + $0xe4] ss:$16 sps:$4 sm:$0xff]   ;;  %v5034_v53 = vld [vmem:[#allocation6 + $0xec] ss:$16 sps:$4 sm:$0xff]  }
 0x5f7   :  { %2179 = vmatprep.subr.bf16.mxu0 %v5019_v60  ;;  %2220 = vmatprep.subr.bf16.mxu1 %v5022_v12 }
 0x5fa   :  { %2180 = vmatpush1.bf16.msra.mxu0 %v5025_v38  ;;  %2221 = vmatpush1.bf16.msra.mxu1 %v5028_v50 }
 0x5fb   :  { %2181 = vmatprep.subr.bf16.mxu0 %v5031_v8  ;;  %2222 = vmatprep.subr.bf16.mxu1 %v5034_v53 }
 0x5fe   :  { %2182 = vmatpush1.bf16.msra.mxu0 %v4613_v61  ;;  %2223 = vmatpush1.bf16.msra.mxu1 %v4616_v0  ;;  %v6218_v61 = vld [vmem:[#allocation48_spill] sm:$0xff]  ;;  %v6219_v0 = vld [vmem:[#allocation49_spill] sm:$0xff] }
 0x5ff   :  { %2272 = vmatprep.subr.bf16.mxu0 %v4619_v2  ;;  %2313 = vmatprep.subr.bf16.mxu1 %v4622_v3  ;;  %v6220_v2 = vld [vmem:[#allocation50_spill] sm:$0xff]  ;;  %v6221_v3 = vld [vmem:[#allocation51_spill] sm:$0xff] }
 0x601   :  { %2200 = vmatmul.mubr.bf16.vlgmr.msra.gmra.mrb[56].mxu0 %v4947_v41  ;;  %2241 = vmatmul.mubr.bf16.vlgmr.msra.gmra.mrb[56].mxu1 %v4947_v41 }
 0x602   :  { %2273 = vmatpush1.bf16.msra.mxu0 %v4625_v4  ;;  %2314 = vmatpush1.bf16.msra.mxu1 %v4628_v31  ;;  %v6222_v4 = vld [vmem:[#allocation52_spill] sm:$0xff]  ;;  %v6223_v31 = vld [vmem:[#allocation53_spill] sm:$0xff] }
 0x603   :  { %2274 = vmatprep.subr.bf16.mxu0 %v4631_v26  ;;  %2315 = vmatprep.subr.bf16.mxu1 %v4634_v5  ;;  %v6224_v26 = vld [vmem:[#allocation54_spill] sm:$0xff]  ;;  %v6225_v5 = vld [vmem:[#allocation55_spill] sm:$0xff] }
 0x606   :  { %2275 = vmatpush1.bf16.msra.mxu0 %v4637_v7  ;;  %2316 = vmatpush1.bf16.msra.mxu1 %v4640_v9  ;;  %v6226_v7 = vld [vmem:[#allocation56_spill] sm:$0xff]  ;;  %v6227_v9 = vld [vmem:[#allocation57_spill] sm:$0xff] }
 0x607   :  { %2276 = vmatprep.subr.bf16.mxu0 %v4643_v10  ;;  %2317 = vmatprep.subr.bf16.mxu1 %v4646_v11  ;;  %v6228_v10 = vld [vmem:[#allocation58_spill] sm:$0xff]  ;;  %v6229_v11 = vld [vmem:[#allocation59_spill] sm:$0xff] }
 0x60a   :  { %2277 = vmatpush1.bf16.msra.mxu0 %v6145_v1  ;;  %2318 = vmatpush1.bf16.msra.mxu1 %v6146_v21  ;;  %v6230_v1 = vld [vmem:[#allocation60_spill] sm:$0xff]  ;;  %v6231_v21 = vld [vmem:[#allocation61_spill] sm:$0xff] }
 0x60b   :  { %2278 = vmatprep.subr.bf16.mxu0 %v6147_v33  ;;  %2319 = vmatprep.subr.bf16.mxu1 %v6148_v19  ;;  %v6232_v33 = vld [vmem:[#allocation62_spill] sm:$0xff]  ;;  %v6233_v19 = vld [vmem:[#allocation63_spill] sm:$0xff] }
 0x60e   :  { %2279 = vmatpush1.bf16.msra.mxu0 %v6149_v30  ;;  %2320 = vmatpush1.bf16.msra.mxu1 %v6150_v20  ;;  %v6234_v30 = vld [vmem:[#allocation64_spill] sm:$0xff]  ;;  %v6235_v20 = vld [vmem:[#allocation65_spill] sm:$0xff] }
 0x60f   :  { %2280 = vmatprep.subr.bf16.mxu0 %v6151_v22  ;;  %2321 = vmatprep.subr.bf16.mxu1 %v6152_v54  ;;  %v6236_v22 = vld [vmem:[#allocation11_spill] sm:$0xff]  ;;  %v6237_v54 = vld [vmem:[#allocation12_spill] sm:$0xff] }
 0x612   :  { %2281 = vmatpush1.bf16.msra.mxu0 %v6153_v28  ;;  %2322 = vmatpush1.bf16.msra.mxu1 %v6154_v16  ;;  %v6238_v28 = vld [vmem:[#allocation17_spill] sm:$0xff]  ;;  %v6239_v16 = vld [vmem:[#allocation71_spill] sm:$0xff] }
 0x613   :  { %2282 = vmatprep.subr.bf16.mxu0 %v6155_v24  ;;  %2323 = vmatprep.subr.bf16.mxu1 %v6156_v17  ;;  %v6240_v24 = vld [vmem:[#allocation72_spill] sm:$0xff]  ;;  %v6241_v17 = vld [vmem:[#allocation73_spill] sm:$0xff] }
 0x616   :  { %2283 = vmatpush1.bf16.msra.mxu0 %v6157_v29  ;;  %2324 = vmatpush1.bf16.msra.mxu1 %v6158_v27  ;;  %v6242_v29 = vld [vmem:[#allocation74_spill] sm:$0xff] }
 0x617   :  { %2284 = vmatprep.subr.bf16.mxu0 %v6159_v35  ;;  %2325 = vmatprep.subr.bf16.mxu1 %v6160_v63  ;;  %v6243_v27 = vld [vmem:[#allocation18_spill] sm:$0xff]  ;;  %v6244_v35 = vld [vmem:[#allocation20_spill] sm:$0xff]  ;;  %v6245_v63 = vld [vmem:[#allocation21_spill] sm:$0xff] }
 0x61a   :  { %2285 = vmatpush1.bf16.msra.mxu0 %v6161_v25  ;;  %2326 = vmatpush1.bf16.msra.mxu1 %v6162_v18 }
 0x61b   :  { %2286 = vmatprep.subr.bf16.mxu0 %v6163_v32  ;;  %2327 = vmatprep.subr.bf16.mxu1 %v6164_v36  ;;  %v6246_v32 = vld [vmem:[#allocation13_spill] sm:$0xff] }
 0x61e   :  { %2287 = vmatpush1.bf16.msra.mxu0 %v6165_v45  ;;  %2328 = vmatpush1.bf16.msra.mxu1 %v6166_v43 }
 0x61f   :  { %2288 = vmatprep.subr.bf16.mxu0 %v6167_v34  ;;  %2329 = vmatprep.subr.bf16.mxu1 %v6168_v51  ;;  %v6247_v34 = vld [vmem:[#allocation14_spill] sm:$0xff] }
 0x622   :  { %2289 = vmatpush1.bf16.msra.mxu0 %v6169_v52  ;;  %2330 = vmatpush1.bf16.msra.mxu1 %v6170_v56 }
 0x623   :  { %2290 = vmatprep.subr.bf16.mxu0 %v6171_v57  ;;  %2331 = vmatprep.subr.bf16.mxu1 %v6172_v59 }
 0x626   :  { %2291 = vmatpush1.bf16.msra.mxu0 %v6218_v61  ;;  %2332 = vmatpush1.bf16.msra.mxu1 %v6219_v0  ;;  %v6248_v0 = vld [vmem:[#allocation15_spill] sm:$0xff] }
 0x627   :  { %2292 = vmatprep.subr.bf16.mxu0 %v6220_v2  ;;  %2333 = vmatprep.subr.bf16.mxu1 %v6221_v3  ;;  %v6249_v3 = vld [vmem:[#allocation16_spill] sm:$0xff] }
 0x62a   :  { %2293 = vmatpush1.bf16.msra.mxu0 %v6222_v4  ;;  %2334 = vmatpush1.bf16.msra.mxu1 %v6223_v31 }
 0x62b   :  { %2294 = vmatprep.subr.bf16.mxu0 %v6224_v26  ;;  %2335 = vmatprep.subr.bf16.mxu1 %v6225_v5 }
 0x62e   :  { %2295 = vmatpush1.bf16.msra.mxu0 %v6226_v7  ;;  %2336 = vmatpush1.bf16.msra.mxu1 %v6227_v9 }
 0x62f   :  { %2296 = vmatprep.subr.bf16.mxu0 %v6228_v10  ;;  %2337 = vmatprep.subr.bf16.mxu1 %v6229_v11 }
 0x632   :  { %2297 = vmatpush1.bf16.msra.mxu0 %v6230_v1  ;;  %2338 = vmatpush1.bf16.msra.mxu1 %v6231_v21 }
 0x633   :  { %2298 = vmatprep.subr.bf16.mxu0 %v6232_v33  ;;  %2339 = vmatprep.subr.bf16.mxu1 %v6233_v19  ;;  %v6250_v33 = vld [vmem:[#allocation22_spill] sm:$0xff] }
 0x636   :  { %2299 = vmatpush1.bf16.msra.mxu0 %v6234_v30  ;;  %2340 = vmatpush1.bf16.msra.mxu1 %v6235_v20 }
 0x637   :  { %2300 = vmatprep.subr.bf16.mxu0 %v6236_v22  ;;  %2341 = vmatprep.subr.bf16.mxu1 %v6237_v54 }
 0x63a   :  { %2301 = vmatpush1.bf16.msra.mxu0 %v6238_v28  ;;  %2342 = vmatpush1.bf16.msra.mxu1 %v6239_v16  ;;  %v6251_v16 = vld [vmem:[#allocation83_spill] sm:$0xff] }
 0x63b   :  { %2302 = vmatprep.subr.bf16.mxu0 %v6240_v24  ;;  %2343 = vmatprep.subr.bf16.mxu1 %v6241_v17  ;;  %v6252_v17 = vld [vmem:[#allocation84_spill] sm:$0xff] }
 0x63e   :  { %2303 = vmatpush1.bf16.msra.mxu0 %v6242_v29  ;;  %2344 = vmatpush1.bf16.msra.mxu1 %v6243_v27 }
 0x63f   :  { %2380 = vmatprep.subr.bf16.mxu0 %v6244_v35  ;;  %2421 = vmatprep.subr.bf16.mxu1 %v6245_v63 }
 0x6b4   :  { %v2093_v25 = vpop.f32.mrb[52].mxu0  ;;  %v2134_v18 = vpop.f32.mrb[52].mxu1 }
 0x6b5   :  { %v2094_v36 = vadd.f32 %v2093_v25, %v6246_v32  ;;  %v2095_v45 = vpop.f32.mrb[53].mxu0  ;;  %v2136_v43 = vpop.f32.mrb[53].mxu1  ;;  %v2135_v2 = vadd.f32 %v2134_v18, %v6248_v0 }
 0x6b6   :  { %v2096_v51 = vadd.f32 %v2095_v45, %v6247_v34  ;;  %v2097_v52 = vpop.f32.mrb[54].mxu0  ;;  %v2138_v56 = vpop.f32.mrb[54].mxu1  ;;  %v2137_v4 = vadd.f32 %v2136_v43, %v6249_v3  ;;  %v6254_v43 = vld [vmem:[#allocation86_spill] sm:$0xff] }
 0x6b7   :  { %v2141_v57 = vmul.f32 0.5, %v2094_v36  ;;  %v2098_v59 = vpop.f32.mrb[55].mxu0  ;;  %v2139_v41 = vpop.f32.mrb[55].mxu1  ;;  %v6253_v36 = vld [vmem:[#allocation85_spill] sm:$0xff] }
 0x6b8   :  { %v2145_v61 = vmul.f32 0.5, %v2096_v51  ;;  %v2150_v31 = vmul.f32 0.5, %v2137_v4 }
 0x6b9   :  { %3412 = vtanh.f32 %v2141_v57 }
 0x6ba   :  { %3414 = vtanh.f32 %v2145_v61 }
 0x6bb   :  { %3416 = vtanh.f32 %v2135_v2 }
 0x6bc   :  { %3418 = vtanh.f32 %v2150_v31 }
 0x6c3   :  { %v3413_v26 = vpop.eup %3412 }
 0x6c4   :  { %v3415_v5 = vpop.eup %3414  ;;  %v2143_v7 = vmul.f32 0.5, %v3413_v26 }
 0x6c5   :  { %v2147_v9 = vmul.f32 0.5, %v3415_v5  ;;  %v3417_v11 = vpop.eup %3416 }
 0x6c6   :  { %v2144_v10 = vadd.f32 0.5, %v2143_v7  ;;  %v3419_v20 = vpop.eup %3418 }
 0x6c7   :  { %v2148_v1 = vadd.f32 0.5, %v2147_v9  ;;  %v2152_v22 = vmul.f32 0.5, %v3419_v20 }
 0x6c8   :  { %v2155_v21 = vmul.f32 %v3417_v11, %v2144_v10 }
 0x6c9   :  { %v2154_v19 = vmul.f32 %v2148_v1, %v6250_v33  ;;  %v2153_v18 = vadd.f32 0.5, %v2152_v22 }
 0x6cb   :  { %v5112_v30 = vadd.f32 %v2155_v21, %v2154_v19 }
 0x6cd   :  { %3420 = vtanh.f32 %v5112_v30 }
 0x6d4   :  { %v2201_v54 = vpop.f32.mrb[56].mxu0  ;;  %v2242_v28 = vpop.f32.mrb[56].mxu1 }
 0x6d5   :  { %v2249_v24 = vadd.f32 %v2201_v54, %v6251_v16  ;;  %v2251_v29 = vadd.f32 %v2242_v28, %v6252_v17  ;;  %v2203_v27 = vpop.f32.mrb[57].mxu0  ;;  %v2244_v25 = vpop.f32.mrb[57].mxu1 }
 0x6d6   :  { %v2250_v45 = vadd.f32 %v2203_v27, %v6253_v36  ;;  %v2252_v51 = vadd.f32 %v2244_v25, %v6254_v43  ;;  %v2205_v52 = vpop.f32.mrb[58].mxu0  ;;  %v2246_v56 = vpop.f32.mrb[58].mxu1  ;;  %v6257_v27 = vld [vmem:[#allocation75_spill] sm:$0xff]  ;;  %v6258_v25 = vld [vmem:[#allocation76_spill] sm:$0xff]  ;;  %v6260_v36 = vld [vmem:[#allocation78_spill] sm:$0xff] }
 0x6d7   :  { %v3421_v57 = vpop.eup %3420  ;;  %v2253_v59 = vmul.f32 0.5, %v2249_v24  ;;  %v2206_v41 = vpop.f32.mrb[59].mxu0  ;;  %v5153_v43 = vld [vmem:[#allocation6 + $0xe0] ss:$16 sps:$4 sm:$0xff]   ;;  %v5159_v52 = vld [vmem:[#allocation8 + $0x4] ss:$16 sps:$4 sm:$0xff]  }
 0x6d8   :  { %v2247_v61 = vpop.f32.mrb[59].mxu1  ;;  %v2257_v2 = vmul.f32 0.5, %v2250_v45  ;;  %v2158_v4 = vmul.f32 %v3421_v57, %v2153_v18  ;;  %v2262_v26 = vmul.f32 0.5, %v2252_v51  ;;  %v6259_v18 = vld [vmem:[#allocation77_spill] sm:$0xff]  ;;  %v5156_v51 = vld [vmem:[#allocation6 + $0xe8] ss:$16 sps:$4 sm:$0xff]  }
 0x6d9   :  { %3422 = vtanh.f32 %v2253_v59  ;;  %v6261_v45 = vld [vmem:[#allocation25_spill] sm:$0xff]  ;;  %v5162_v56 = vld [vmem:[#allocation8 + $0xc] ss:$16 sps:$4 sm:$0xff]   ;;  %v5168_v59 = vld [vmem:[#allocation8 + $0x8] ss:$16 sps:$4 sm:$0xff]  }
 0x6da   :  { %3424 = vtanh.f32 %v2257_v2  ;;  %v2159_v31 = vpack.c.bf16 %v2158_v4, %v2158_v4  ;;  %v5165_v57 = vld [vmem:[#allocation8] ss:$16 sps:$4 sm:$0xff]   ;;  %v5171_v41 = vld [vmem:[#allocation8 + $0x24] ss:$16 sps:$4 sm:$0xff]   ;;  %v5174_v61 = vld [vmem:[#allocation8 + $0x2c] ss:$16 sps:$4 sm:$0xff]  }
 0x6db   :  { %3426 = vtanh.f32 %v2251_v29  ;;  %v6256_v29 = vld [vmem:[#allocation24_spill] sm:$0xff]  ;;  %v5177_v2 = vld [vmem:[#allocation8 + $0x20] ss:$16 sps:$4 sm:$0xff]  }
 0x6dc   :  { %2304 = vmatprep.mubr.bf16.mxu0 %v2159_v31  ;;  %2345 = vmatprep.mubr.bf16.mxu1 %v2159_v31  ;;  %3428 = vtanh.f32 %v2262_v26  ;;  %v5180_v4 = vld [vmem:[#allocation8 + $0x28] ss:$16 sps:$4 sm:$0xff]   ;;  %v5183_v31 = vld [vmem:[#allocation8 + $0x44] ss:$16 sps:$4 sm:$0xff]   ;;  %v5186_v26 = vld [vmem:[#allocation8 + $0x4c] ss:$16 sps:$4 sm:$0xff]  }
 0x6e3   :  { %v3423_v5 = vpop.eup %3422 }
 0x6e4   :  { %v3425_v7 = vpop.eup %3424  ;;  %v2255_v9 = vmul.f32 0.5, %v3423_v5  ;;  %v5189_v5 = vld [vmem:[#allocation8 + $0x40] ss:$16 sps:$4 sm:$0xff]  }
 0x6e5   :  { %v2259_v10 = vmul.f32 0.5, %v3425_v7  ;;  %v3427_v1 = vpop.eup %3426  ;;  %6262 = vst [vmem:[#allocation26_spill] sm:$0xff] %v5189_v5  ;;  %v5192_v7 = vld [vmem:[#allocation8 + $0x48] ss:$16 sps:$4 sm:$0xff]  }
 0x6e6   :  { %v2256_v11 = vadd.f32 0.5, %v2255_v9  ;;  %v3429_v22 = vpop.eup %3428  ;;  %6263 = vst [vmem:[#allocation27_spill] sm:$0xff] %v5192_v7  ;;  %v5195_v9 = vld [vmem:[#allocation8 + $0x64] ss:$16 sps:$4 sm:$0xff]  }
 0x6e7   :  { %v2260_v21 = vadd.f32 0.5, %v2259_v10  ;;  %v2264_v54 = vmul.f32 0.5, %v3429_v22  ;;  %6264 = vst [vmem:[#allocation28_spill] sm:$0xff] %v5195_v9  ;;  %v5198_v10 = vld [vmem:[#allocation8 + $0x6c] ss:$16 sps:$4 sm:$0xff]  }
 0x6e8   :  { %v2267_v33 = vmul.f32 %v3427_v1, %v2256_v11  ;;  %6265 = vst [vmem:[#allocation29_spill] sm:$0xff] %v5198_v10  ;;  %v5201_v11 = vld [vmem:[#allocation8 + $0x60] ss:$16 sps:$4 sm:$0xff]   ;;  %v5204_v1 = vld [vmem:[#allocation8 + $0x68] ss:$16 sps:$4 sm:$0xff]  }
 0x6e9   :  { %v2266_v19 = vmul.f32 %v2260_v21, %v4944_v55  ;;  %v2265_v28 = vadd.f32 0.5, %v2264_v54  ;;  %v6255_v55 = vld [vmem:[#allocation23_spill] sm:$0xff]  ;;  %6266 = vst [vmem:[#allocation30_spill] sm:$0xff] %v5201_v11  ;;  %6267 = vst [vmem:[#allocation31_spill] sm:$0xff] %v5204_v1  ;;  %v5216_v22 = vld [vmem:[#allocation8 + $0x88] ss:$16 sps:$4 sm:$0xff]  }
 0x6ea   :  { %v5207_v21 = vld [vmem:[#allocation8 + $0x84] ss:$16 sps:$4 sm:$0xff]   ;;  %6271 = vst [vmem:[#allocation35_spill] sm:$0xff] %v5216_v22 }
 0x6eb   :  { %v5120_v20 = vadd.f32 %v2267_v33, %v2266_v19  ;;  %6268 = vst [vmem:[#allocation32_spill] sm:$0xff] %v5207_v21  ;;  %v5210_v33 = vld [vmem:[#allocation8 + $0x8c] ss:$16 sps:$4 sm:$0xff]   ;;  %v5213_v19 = vld [vmem:[#allocation8 + $0x80] ss:$16 sps:$4 sm:$0xff]  }
 0x6ec   :  { %6269 = vst [vmem:[#allocation33_spill] sm:$0xff] %v5210_v33  ;;  %6270 = vst [vmem:[#allocation34_spill] sm:$0xff] %v5213_v19  ;;  %v5219_v54 = vld [vmem:[#allocation8 + $0xa4] ss:$16 sps:$4 sm:$0xff]  }
 0x6ed   :  { %3430 = vtanh.f32 %v5120_v20  ;;  %6272 = vst [vmem:[#allocation36_spill] sm:$0xff] %v5219_v54 }
 0x6f7   :  { %v3431_v16 = vpop.eup %3430 }
 0x6f8   :  { %v2270_v24 = vmul.f32 %v3431_v16, %v2265_v28  ;;  %v5222_v28 = vld [vmem:[#allocation8 + $0xac] ss:$16 sps:$4 sm:$0xff]   ;;  %v5225_v16 = vld [vmem:[#allocation8 + $0xa0] ss:$16 sps:$4 sm:$0xff]  }
 0x6f9   :  { %6273 = vst [vmem:[#allocation37_spill] sm:$0xff] %v5222_v28  ;;  %6274 = vst [vmem:[#allocation38_spill] sm:$0xff] %v5225_v16 }
 0x6fa   :  { %v2271_v17 = vpack.c.bf16 %v2270_v24, %v2270_v24  ;;  %v5228_v24 = vld [vmem:[#allocation8 + $0xa8] ss:$16 sps:$4 sm:$0xff]  }
 0x6fb   :  { %6275 = vst [vmem:[#allocation39_spill] sm:$0xff] %v5228_v24 }
 0x6fc   :  { %2305 = vmatmul.mubr.bf16.vlgmr.msra.gmra.mrb[60].mxu0 %v2271_v17  ;;  %2346 = vmatmul.mubr.bf16.vlgmr.msra.gmra.mrb[60].mxu1 %v2271_v17 }
 0x6fd   :  { %2381 = vmatpush1.bf16.msra.mxu0 %v4951_v42  ;;  %2422 = vmatpush1.bf16.msra.mxu1 %v4954_v44 }
 0x6fe   :  { %2382 = vmatprep.subr.bf16.mxu0 %v4957_v48  ;;  %2423 = vmatprep.subr.bf16.mxu1 %v4960_v37 }
 0x6ff   :  { %2412 = vmatprep.mubr.bf16.mxu0 %v5963_v23  ;;  %2453 = vmatprep.mubr.bf16.mxu1 %v5963_v23 }
 0x701   :  { %2383 = vmatpush1.bf16.msra.mxu0 %v4965_v40  ;;  %2424 = vmatpush1.bf16.msra.mxu1 %v4968_v47 }
 0x702   :  { %2384 = vmatprep.subr.bf16.mxu0 %v4971_v58  ;;  %2425 = vmatprep.subr.bf16.mxu1 %v4974_v46 }
 0x705   :  { %2385 = vmatpush1.bf16.msra.mxu0 %v4977_v49  ;;  %2426 = vmatpush1.bf16.msra.mxu1 %v4980_v6 }
 0x706   :  { %2386 = vmatprep.subr.bf16.mxu0 %v4983_v14  ;;  %2427 = vmatprep.subr.bf16.mxu1 %v4986_v13 }
 0x709   :  { %2387 = vmatpush1.bf16.msra.mxu0 %v4989_v15  ;;  %2428 = vmatpush1.bf16.msra.mxu1 %v4992_v62 }
 0x70a   :  { %2388 = vmatprep.subr.bf16.mxu0 %v4995_v39  ;;  %2429 = vmatprep.subr.bf16.mxu1 %v6255_v55 }
 0x70d   :  { %2389 = vmatpush1.bf16.msra.mxu0 %v6256_v29  ;;  %2430 = vmatpush1.bf16.msra.mxu1 %v6257_v27 }
 0x70e   :  { %2390 = vmatprep.subr.bf16.mxu0 %v6258_v25  ;;  %2431 = vmatprep.subr.bf16.mxu1 %v6259_v18 }
 0x711   :  { %2391 = vmatpush1.bf16.msra.mxu0 %v6260_v36  ;;  %2432 = vmatpush1.bf16.msra.mxu1 %v6261_v45 }
 0x712   :  { %2392 = vmatprep.subr.bf16.mxu0 %v5019_v60  ;;  %2433 = vmatprep.subr.bf16.mxu1 %v5022_v12 }
 0x715   :  { %2393 = vmatpush1.bf16.msra.mxu0 %v5025_v38  ;;  %2434 = vmatpush1.bf16.msra.mxu1 %v5028_v50 }
 0x716   :  { %2394 = vmatprep.subr.bf16.mxu0 %v5031_v8  ;;  %2435 = vmatprep.subr.bf16.mxu1 %v5034_v53 }
 0x719   :  { %2395 = vmatpush1.bf16.msra.mxu0 %v5153_v43  ;;  %2436 = vmatpush1.bf16.msra.mxu1 %v5156_v51 }
 0x71a   :  { %2485 = vmatprep.subr.bf16.mxu0 %v5159_v52  ;;  %2526 = vmatprep.subr.bf16.mxu1 %v5162_v56 }
 0x71c   :  { %2413 = vmatmul.mubr.bf16.vlgmr.msra.gmra.mrb[64].mxu0 %v2271_v17  ;;  %2454 = vmatmul.mubr.bf16.vlgmr.msra.gmra.mrb[64].mxu1 %v2271_v17  ;;  %v5231_v17 = vld [vmem:[#allocation8 + $0xc4] ss:$16 sps:$4 sm:$0xff]  }
 0x71d   :  { %2486 = vmatpush1.bf16.msra.mxu0 %v5165_v57  ;;  %2527 = vmatpush1.bf16.msra.mxu1 %v5168_v59  ;;  %6276 = vst [vmem:[#allocation66_spill] sm:$0xff] %v5231_v17 }
 0x71e   :  { %2487 = vmatprep.subr.bf16.mxu0 %v5171_v41  ;;  %2528 = vmatprep.subr.bf16.mxu1 %v5174_v61 }
 0x721   :  { %2488 = vmatpush1.bf16.msra.mxu0 %v5177_v2  ;;  %2529 = vmatpush1.bf16.msra.mxu1 %v5180_v4 }
 0x722   :  { %2489 = vmatprep.subr.bf16.mxu0 %v5183_v31  ;;  %2530 = vmatprep.subr.bf16.mxu1 %v5186_v26 }
 0x725   :  { %2490 = vmatpush1.bf16.msra.mxu0 %v5189_v5  ;;  %2531 = vmatpush1.bf16.msra.mxu1 %v5192_v7 }
 0x726   :  { %2491 = vmatprep.subr.bf16.mxu0 %v5195_v9  ;;  %2532 = vmatprep.subr.bf16.mxu1 %v5198_v10 }
 0x729   :  { %2492 = vmatpush1.bf16.msra.mxu0 %v5201_v11  ;;  %2533 = vmatpush1.bf16.msra.mxu1 %v5204_v1 }
 0x72a   :  { %2493 = vmatprep.subr.bf16.mxu0 %v5207_v21  ;;  %2534 = vmatprep.subr.bf16.mxu1 %v5210_v33 }
 0x72d   :  { %2494 = vmatpush1.bf16.msra.mxu0 %v5213_v19  ;;  %2535 = vmatpush1.bf16.msra.mxu1 %v5216_v22  ;;  %v5234_v22 = vld [vmem:[#allocation8 + $0xcc] ss:$16 sps:$4 sm:$0xff]  }
 0x72e   :  { %2495 = vmatprep.subr.bf16.mxu0 %v5219_v54  ;;  %2536 = vmatprep.subr.bf16.mxu1 %v5222_v28  ;;  %6277 = vst [vmem:[#allocation67_spill] sm:$0xff] %v5234_v22  ;;  %v5237_v54 = vld [vmem:[#allocation8 + $0xc0] ss:$16 sps:$4 sm:$0xff]   ;;  %v5240_v28 = vld [vmem:[#allocation8 + $0xc8] ss:$16 sps:$4 sm:$0xff]  }
 0x72f   :  { %6278 = vst [vmem:[#allocation68_spill] sm:$0xff] %v5237_v54  ;;  %6279 = vst [vmem:[#allocation69_spill] sm:$0xff] %v5240_v28 }
 0x731   :  { %2496 = vmatpush1.bf16.msra.mxu0 %v5225_v16  ;;  %2537 = vmatpush1.bf16.msra.mxu1 %v5228_v24  ;;  %v5243_v16 = vld [vmem:[#allocation8 + $0xe4] ss:$16 sps:$4 sm:$0xff]   ;;  %v5246_v24 = vld [vmem:[#allocation8 + $0xec] ss:$16 sps:$4 sm:$0xff]  }
 0x732   :  { %2497 = vmatprep.subr.bf16.mxu0 %v5231_v17  ;;  %2538 = vmatprep.subr.bf16.mxu1 %v5234_v22  ;;  %6280 = vst [vmem:[#allocation70_spill] sm:$0xff] %v5243_v16  ;;  %6281 = vst [vmem:[#allocation40_spill] sm:$0xff] %v5246_v24  ;;  %v5249_v17 = vld [vmem:[#allocation8 + $0xe0] ss:$16 sps:$4 sm:$0xff]   ;;  %v5252_v22 = vld [vmem:[#allocation8 + $0xe8] ss:$16 sps:$4 sm:$0xff]  }
 0x733   :  { %6282 = vst [vmem:[#allocation41_spill] sm:$0xff] %v5249_v17  ;;  %6283 = vst [vmem:[#allocation42_spill] sm:$0xff] %v5252_v22 }
 0x735   :  { %2498 = vmatpush1.bf16.msra.mxu0 %v5237_v54  ;;  %2539 = vmatpush1.bf16.msra.mxu1 %v5240_v28  ;;  %v5255_v54 = vld [vmem:[#allocation8 + $0x104] ss:$16 sps:$4 sm:$0xff]   ;;  %v5258_v28 = vld [vmem:[#allocation8 + $0x10c] ss:$16 sps:$4 sm:$0xff]  }
 0x736   :  { %2499 = vmatprep.subr.bf16.mxu0 %v5243_v16  ;;  %2540 = vmatprep.subr.bf16.mxu1 %v5246_v24  ;;  %6284 = vst [vmem:[#allocation43_spill] sm:$0xff] %v5255_v54  ;;  %6285 = vst [vmem:[#allocation44_spill] sm:$0xff] %v5258_v28  ;;  %v5261_v16 = vld [vmem:[#allocation8 + $0x100] ss:$16 sps:$4 sm:$0xff]   ;;  %v5264_v24 = vld [vmem:[#allocation8 + $0x108] ss:$16 sps:$4 sm:$0xff]  }
 0x737   :  { %6286 = vst [vmem:[#allocation45_spill] sm:$0xff] %v5261_v16  ;;  %6287 = vst [vmem:[#allocation46_spill] sm:$0xff] %v5264_v24 }
 0x739   :  { %2500 = vmatpush1.bf16.msra.mxu0 %v5249_v17  ;;  %2541 = vmatpush1.bf16.msra.mxu1 %v5252_v22  ;;  %v5267_v17 = vld [vmem:[#allocation8 + $0x124] ss:$16 sps:$4 sm:$0xff]   ;;  %v5270_v22 = vld [vmem:[#allocation8 + $0x12c] ss:$16 sps:$4 sm:$0xff]  }
 0x73a   :  { %2501 = vmatprep.subr.bf16.mxu0 %v5255_v54  ;;  %2542 = vmatprep.subr.bf16.mxu1 %v5258_v28  ;;  %6288 = vst [vmem:[#allocation47_spill] sm:$0xff] %v5267_v17  ;;  %6289 = vst [vmem:[#allocation19_spill] sm:$0xff] %v5270_v22  ;;  %v5273_v54 = vld [vmem:[#allocation8 + $0x120] ss:$16 sps:$4 sm:$0xff]   ;;  %v5276_v28 = vld [vmem:[#allocation8 + $0x128] ss:$16 sps:$4 sm:$0xff]  }
 0x73b   :  { %6290 = vst [vmem:[#allocation79_spill] sm:$0xff] %v5273_v54  ;;  %6291 = vst [vmem:[#allocation80_spill] sm:$0xff] %v5276_v28 }
 0x73d   :  { %2502 = vmatpush1.bf16.msra.mxu0 %v5261_v16  ;;  %2543 = vmatpush1.bf16.msra.mxu1 %v5264_v24  ;;  %v5279_v16 = vld [vmem:[#allocation8 + $0x144] ss:$16 sps:$4 sm:$0xff]   ;;  %v5282_v24 = vld [vmem:[#allocation8 + $0x14c] ss:$16 sps:$4 sm:$0xff]  }
 0x73e   :  { %2503 = vmatprep.subr.bf16.mxu0 %v5267_v17  ;;  %2544 = vmatprep.subr.bf16.mxu1 %v5270_v22  ;;  %6292 = vst [vmem:[#allocation81_spill] sm:$0xff] %v5279_v16  ;;  %6293 = vst [vmem:[#allocation82_spill] sm:$0xff] %v5282_v24  ;;  %v5285_v17 = vld [vmem:[#allocation8 + $0x140] ss:$16 sps:$4 sm:$0xff]   ;;  %v5288_v22 = vld [vmem:[#allocation8 + $0x148] ss:$16 sps:$4 sm:$0xff]  }
 0x73f   :  { %6294 = vst [vmem:[#allocation48_spill] sm:$0xff] %v5285_v17  ;;  %6295 = vst [vmem:[#allocation49_spill] sm:$0xff] %v5288_v22 }
 0x741   :  { %2504 = vmatpush1.bf16.msra.mxu0 %v5273_v54  ;;  %2545 = vmatpush1.bf16.msra.mxu1 %v5276_v28  ;;  %v5291_v54 = vld [vmem:[#allocation8 + $0x164] ss:$16 sps:$4 sm:$0xff]   ;;  %v5294_v28 = vld [vmem:[#allocation8 + $0x16c] ss:$16 sps:$4 sm:$0xff]  }
 0x742   :  { %2505 = vmatprep.subr.bf16.mxu0 %v5279_v16  ;;  %2546 = vmatprep.subr.bf16.mxu1 %v5282_v24  ;;  %6296 = vst [vmem:[#allocation50_spill] sm:$0xff] %v5291_v54  ;;  %6297 = vst [vmem:[#allocation51_spill] sm:$0xff] %v5294_v28  ;;  %v5297_v16 = vld [vmem:[#allocation8 + $0x160] ss:$16 sps:$4 sm:$0xff]   ;;  %v5300_v24 = vld [vmem:[#allocation8 + $0x168] ss:$16 sps:$4 sm:$0xff]  }
 0x743   :  { %6298 = vst [vmem:[#allocation52_spill] sm:$0xff] %v5297_v16  ;;  %6299 = vst [vmem:[#allocation53_spill] sm:$0xff] %v5300_v24 }
 0x745   :  { %2506 = vmatpush1.bf16.msra.mxu0 %v5285_v17  ;;  %2547 = vmatpush1.bf16.msra.mxu1 %v5288_v22  ;;  %v5303_v17 = vld [vmem:[#allocation8 + $0x184] ss:$16 sps:$4 sm:$0xff]   ;;  %v5306_v22 = vld [vmem:[#allocation8 + $0x18c] ss:$16 sps:$4 sm:$0xff]  }
 0x746   :  { %2507 = vmatprep.subr.bf16.mxu0 %v5291_v54  ;;  %2548 = vmatprep.subr.bf16.mxu1 %v5294_v28  ;;  %6300 = vst [vmem:[#allocation54_spill] sm:$0xff] %v5303_v17  ;;  %6301 = vst [vmem:[#allocation55_spill] sm:$0xff] %v5306_v22  ;;  %v5309_v54 = vld [vmem:[#allocation8 + $0x180] ss:$16 sps:$4 sm:$0xff]   ;;  %v5312_v28 = vld [vmem:[#allocation8 + $0x188] ss:$16 sps:$4 sm:$0xff]  }
 0x747   :  { %6302 = vst [vmem:[#allocation56_spill] sm:$0xff] %v5309_v54  ;;  %6303 = vst [vmem:[#allocation57_spill] sm:$0xff] %v5312_v28 }
 0x749   :  { %2508 = vmatpush1.bf16.msra.mxu0 %v5297_v16  ;;  %2549 = vmatpush1.bf16.msra.mxu1 %v5300_v24  ;;  %v5315_v16 = vld [vmem:[#allocation8 + $0x1a4] ss:$16 sps:$4 sm:$0xff]   ;;  %v5318_v24 = vld [vmem:[#allocation8 + $0x1ac] ss:$16 sps:$4 sm:$0xff]  }
 0x74a   :  { %2509 = vmatprep.subr.bf16.mxu0 %v5303_v17  ;;  %2550 = vmatprep.subr.bf16.mxu1 %v5306_v22  ;;  %6304 = vst [vmem:[#allocation58_spill] sm:$0xff] %v5315_v16  ;;  %6305 = vst [vmem:[#allocation59_spill] sm:$0xff] %v5318_v24  ;;  %v5321_v17 = vld [vmem:[#allocation8 + $0x1a0] ss:$16 sps:$4 sm:$0xff]   ;;  %v5324_v22 = vld [vmem:[#allocation8 + $0x1a8] ss:$16 sps:$4 sm:$0xff]  }
 0x74b   :  { %6306 = vst [vmem:[#allocation60_spill] sm:$0xff] %v5321_v17  ;;  %6307 = vst [vmem:[#allocation61_spill] sm:$0xff] %v5324_v22 }
 0x74d   :  { %2510 = vmatpush1.bf16.msra.mxu0 %v5309_v54  ;;  %2551 = vmatpush1.bf16.msra.mxu1 %v5312_v28  ;;  %v5327_v54 = vld [vmem:[#allocation8 + $0x1c4] ss:$16 sps:$4 sm:$0xff]   ;;  %v5330_v28 = vld [vmem:[#allocation8 + $0x1cc] ss:$16 sps:$4 sm:$0xff]  }
 0x74e   :  { %2511 = vmatprep.subr.bf16.mxu0 %v5315_v16  ;;  %2552 = vmatprep.subr.bf16.mxu1 %v5318_v24  ;;  %6308 = vst [vmem:[#allocation62_spill] sm:$0xff] %v5327_v54  ;;  %6309 = vst [vmem:[#allocation63_spill] sm:$0xff] %v5330_v28  ;;  %v5333_v16 = vld [vmem:[#allocation8 + $0x1c0] ss:$16 sps:$4 sm:$0xff]   ;;  %v5336_v24 = vld [vmem:[#allocation8 + $0x1c8] ss:$16 sps:$4 sm:$0xff]  }
 0x74f   :  { %6310 = vst [vmem:[#allocation64_spill] sm:$0xff] %v5333_v16  ;;  %6311 = vst [vmem:[#allocation65_spill] sm:$0xff] %v5336_v24 }
 0x751   :  { %2512 = vmatpush1.bf16.msra.mxu0 %v5321_v17  ;;  %2553 = vmatpush1.bf16.msra.mxu1 %v5324_v22  ;;  %v5339_v17 = vld [vmem:[#allocation8 + $0x1e4] ss:$16 sps:$4 sm:$0xff]   ;;  %v5342_v22 = vld [vmem:[#allocation8 + $0x1ec] ss:$16 sps:$4 sm:$0xff]  }
 0x752   :  { %2513 = vmatprep.subr.bf16.mxu0 %v5327_v54  ;;  %2554 = vmatprep.subr.bf16.mxu1 %v5330_v28  ;;  %6312 = vst [vmem:[#allocation11_spill] sm:$0xff] %v5339_v17  ;;  %6313 = vst [vmem:[#allocation12_spill] sm:$0xff] %v5342_v22  ;;  %v5345_v54 = vld [vmem:[#allocation8 + $0x1e0] ss:$16 sps:$4 sm:$0xff]   ;;  %v5348_v28 = vld [vmem:[#allocation8 + $0x1e8] ss:$16 sps:$4 sm:$0xff]  }
 0x753   :  { %6314 = vst [vmem:[#allocation17_spill] sm:$0xff] %v5345_v54  ;;  %6315 = vst [vmem:[#allocation71_spill] sm:$0xff] %v5348_v28 }
 0x755   :  { %2514 = vmatpush1.bf16.msra.mxu0 %v5333_v16  ;;  %2555 = vmatpush1.bf16.msra.mxu1 %v5336_v24 }
 0x756   :  { %2515 = vmatprep.subr.bf16.mxu0 %v5339_v17  ;;  %2556 = vmatprep.subr.bf16.mxu1 %v5342_v22 }
 0x759   :  { %2516 = vmatpush1.bf16.msra.mxu0 %v5345_v54  ;;  %2557 = vmatpush1.bf16.msra.mxu1 %v5348_v28 }
 0x75a   :  { %2593 = vmatprep.subr.bf16.mxu0 %v6244_v35  ;;  %2634 = vmatprep.subr.bf16.mxu1 %v6245_v63 }
 0x7cf   :  { %v2306_v24 = vpop.f32.mrb[60].mxu0  ;;  %v2347_v16 = vpop.f32.mrb[60].mxu1 }
 0x7d0   :  { %v2307_v17 = vadd.f32 %v2306_v24, %v6246_v32  ;;  %v2308_v19 = vpop.f32.mrb[61].mxu0  ;;  %v2349_v33 = vpop.f32.mrb[61].mxu1  ;;  %v2348_v28 = vadd.f32 %v2347_v16, %v6248_v0 }
 0x7d1   :  { %v2309_v22 = vadd.f32 %v2308_v19, %v6247_v34  ;;  %v2310_v21 = vpop.f32.mrb[62].mxu0  ;;  %v2351_v1 = vpop.f32.mrb[62].mxu1  ;;  %v2350_v35 = vadd.f32 %v2349_v33, %v6249_v3  ;;  %v6319_v3 = vld [vmem:[#allocation89_spill] sm:$0xff] }
 0x7d2   :  { %v2354_v11 = vmul.f32 0.5, %v2307_v17  ;;  %v2311_v54 = vpop.f32.mrb[63].mxu0  ;;  %v2352_v10 = vpop.f32.mrb[63].mxu1 }
 0x7d3   :  { %v2358_v9 = vmul.f32 0.5, %v2309_v22  ;;  %v2363_v63 = vmul.f32 0.5, %v2350_v35  ;;  %v6318_v35 = vld [vmem:[#allocation88_spill] sm:$0xff] }
 0x7d4   :  { %3432 = vtanh.f32 %v2354_v11 }
 0x7d5   :  { %3434 = vtanh.f32 %v2358_v9 }
 0x7d6   :  { %3436 = vtanh.f32 %v2348_v28  ;;  %v6317_v28 = vld [vmem:[#allocation87_spill] sm:$0xff] }
 0x7d7   :  { %3438 = vtanh.f32 %v2363_v63 }
 0x7de   :  { %v3433_v7 = vpop.eup %3432 }
 0x7df   :  { %v3435_v24 = vpop.eup %3434  ;;  %v2356_v32 = vmul.f32 0.5, %v3433_v7 }
 0x7e0   :  { %v2360_v5 = vmul.f32 0.5, %v3435_v24  ;;  %v3437_v21 = vpop.eup %3436 }
 0x7e1   :  { %v2357_v19 = vadd.f32 0.5, %v2356_v32  ;;  %v3439_v9 = vpop.eup %3438 }
 0x7e2   :  { %v2361_v1 = vadd.f32 0.5, %v2360_v5  ;;  %v2365_v11 = vmul.f32 0.5, %v3439_v9 }
 0x7e3   :  { %v2368_v17 = vmul.f32 %v3437_v21, %v2357_v19  ;;  %v6320_v19 = vld [vmem:[#allocation90_spill] sm:$0xff] }
 0x7e4   :  { %v2367_v10 = vmul.f32 %v2361_v1, %v5112_v30  ;;  %v2366_v32 = vadd.f32 0.5, %v2365_v11 }
 0x7e6   :  { %v5358_v22 = vadd.f32 %v2368_v17, %v2367_v10 }
 0x7e8   :  { %6316 = vst [vmem:[#allocation72_spill] sm:$0xff] %v5358_v22  ;;  %3440 = vtanh.f32 %v5358_v22 }
 0x7ef   :  { %v2414_v54 = vpop.f32.mrb[64].mxu0  ;;  %v2455_v33 = vpop.f32.mrb[64].mxu1 }
 0x7f0   :  { %v2462_v16 = vadd.f32 %v2414_v54, %v6317_v28  ;;  %v2464_v7 = vadd.f32 %v2455_v33, %v6318_v35  ;;  %v2416_v24 = vpop.f32.mrb[65].mxu0  ;;  %v2457_v63 = vpop.f32.mrb[65].mxu1 }
 0x7f1   :  { %v2463_v5 = vadd.f32 %v2416_v24, %v6319_v3  ;;  %v2465_v21 = vadd.f32 %v2457_v63, %v6320_v19  ;;  %v2418_v30 = vpop.f32.mrb[66].mxu0  ;;  %v2459_v1 = vpop.f32.mrb[66].mxu1 }
 0x7f2   :  { %v3441_v17 = vpop.eup %3440  ;;  %v2466_v10 = vmul.f32 0.5, %v2462_v16  ;;  %v2419_v22 = vpop.f32.mrb[67].mxu0  ;;  %v6363_v1 = vld [vmem:[#allocation58_spill] sm:$0xff] }
 0x7f3   :  { %v2460_v0 = vpop.f32.mrb[67].mxu1  ;;  %v2470_v9 = vmul.f32 0.5, %v2463_v5  ;;  %v2371_v34 = vmul.f32 %v3441_v17, %v2366_v32  ;;  %v2475_v33 = vmul.f32 0.5, %v2465_v21  ;;  %v6364_v17 = vld [vmem:[#allocation59_spill] sm:$0xff] }
 0x7f4   :  { %3442 = vtanh.f32 %v2466_v10  ;;  %v6365_v10 = vld [vmem:[#allocation60_spill] sm:$0xff] }
 0x7f5   :  { %3444 = vtanh.f32 %v2470_v9  ;;  %v2372_v54 = vpack.c.bf16 %v2371_v34, %v2371_v34  ;;  %v6366_v9 = vld [vmem:[#allocation61_spill] sm:$0xff] }
 0x7f6   :  { %3446 = vtanh.f32 %v2464_v7 }
 0x7f7   :  { %2517 = vmatprep.mubr.bf16.mxu0 %v2372_v54  ;;  %2558 = vmatprep.mubr.bf16.mxu1 %v2372_v54  ;;  %3448 = vtanh.f32 %v2475_v33  ;;  %v6367_v54 = vld [vmem:[#allocation62_spill] sm:$0xff]  ;;  %v6368_v33 = vld [vmem:[#allocation63_spill] sm:$0xff] }
 0x7fe   :  { %v3443_v11 = vpop.eup %3442 }
 0x7ff   :  { %v3445_v28 = vpop.eup %3444  ;;  %v2468_v3 = vmul.f32 0.5, %v3443_v11  ;;  %v6369_v11 = vld [vmem:[#allocation64_spill] sm:$0xff] }
 0x800   :  { %v2472_v35 = vmul.f32 0.5, %v3445_v28  ;;  %v3447_v63 = vpop.eup %3446  ;;  %v6370_v28 = vld [vmem:[#allocation65_spill] sm:$0xff] }
 0x801   :  { %v2469_v24 = vadd.f32 0.5, %v2468_v3  ;;  %v3449_v34 = vpop.eup %3448  ;;  %v6371_v3 = vld [vmem:[#allocation11_spill] sm:$0xff] }
 0x802   :  { %v2473_v19 = vadd.f32 0.5, %v2472_v35  ;;  %v2477_v32 = vmul.f32 0.5, %v3449_v34  ;;  %v6372_v35 = vld [vmem:[#allocation12_spill] sm:$0xff] }
 0x803   :  { %v2480_v16 = vmul.f32 %v3447_v63, %v2469_v24  ;;  %v6373_v24 = vld [vmem:[#allocation17_spill] sm:$0xff]  ;;  %v6374_v63 = vld [vmem:[#allocation71_spill] sm:$0xff] }
 0x804   :  { %v2479_v0 = vmul.f32 %v2473_v19, %v5120_v20  ;;  %v2478_v5 = vadd.f32 0.5, %v2477_v32  ;;  %v6343_v20 = vld [vmem:[#allocation43_spill] sm:$0xff] }
 0x806   :  { %v5366_v22 = vadd.f32 %v2480_v16, %v2479_v0  ;;  %v6375_v0 = vld [vmem:[#allocation13_spill] sm:$0xff] }
 0x808   :  { %3450 = vtanh.f32 %v5366_v22 }
 0x812   :  { %v3451_v7 = vpop.eup %3450 }
 0x813   :  { %v2483_v21 = vmul.f32 %v3451_v7, %v2478_v5  ;;  %v6376_v7 = vld [vmem:[#allocation14_spill] sm:$0xff] }
 0x815   :  { %v2484_v30 = vpack.c.bf16 %v2483_v21, %v2483_v21 }
 0x817   :  { %2518 = vmatmul.mubr.bf16.vlgmr.msra.gmra.mrb[68].mxu0 %v2484_v30  ;;  %2559 = vmatmul.mubr.bf16.vlgmr.msra.gmra.mrb[68].mxu1 %v2484_v30 }
 0x818   :  { %2594 = vmatpush1.bf16.msra.mxu0 %v4951_v42  ;;  %2635 = vmatpush1.bf16.msra.mxu1 %v4954_v44  ;;  %v6322_v42 = vld [vmem:[#allocation27_spill] sm:$0xff]  ;;  %v6323_v44 = vld [vmem:[#allocation28_spill] sm:$0xff] }
 0x819   :  { %2595 = vmatprep.subr.bf16.mxu0 %v4957_v48  ;;  %2636 = vmatprep.subr.bf16.mxu1 %v4960_v37  ;;  %v6324_v48 = vld [vmem:[#allocation29_spill] sm:$0xff]  ;;  %v6325_v37 = vld [vmem:[#allocation30_spill] sm:$0xff] }
 0x81a   :  { %2625 = vmatprep.mubr.bf16.mxu0 %v5963_v23  ;;  %2666 = vmatprep.mubr.bf16.mxu1 %v5963_v23  ;;  %v6321_v23 = vld [vmem:[#allocation26_spill] sm:$0xff] }
 0x81c   :  { %2596 = vmatpush1.bf16.msra.mxu0 %v4965_v40  ;;  %2637 = vmatpush1.bf16.msra.mxu1 %v4968_v47  ;;  %v6326_v40 = vld [vmem:[#allocation31_spill] sm:$0xff]  ;;  %v6327_v47 = vld [vmem:[#allocation32_spill] sm:$0xff] }
 0x81d   :  { %2597 = vmatprep.subr.bf16.mxu0 %v4971_v58  ;;  %2638 = vmatprep.subr.bf16.mxu1 %v4974_v46  ;;  %v6328_v58 = vld [vmem:[#allocation33_spill] sm:$0xff]  ;;  %v6329_v46 = vld [vmem:[#allocation34_spill] sm:$0xff] }
 0x820   :  { %2598 = vmatpush1.bf16.msra.mxu0 %v4977_v49  ;;  %2639 = vmatpush1.bf16.msra.mxu1 %v4980_v6  ;;  %v6330_v49 = vld [vmem:[#allocation35_spill] sm:$0xff]  ;;  %v6331_v6 = vld [vmem:[#allocation36_spill] sm:$0xff] }
 0x821   :  { %2599 = vmatprep.subr.bf16.mxu0 %v4983_v14  ;;  %2640 = vmatprep.subr.bf16.mxu1 %v4986_v13  ;;  %v6332_v14 = vld [vmem:[#allocation37_spill] sm:$0xff]  ;;  %v6333_v13 = vld [vmem:[#allocation38_spill] sm:$0xff] }
 0x824   :  { %2600 = vmatpush1.bf16.msra.mxu0 %v4989_v15  ;;  %2641 = vmatpush1.bf16.msra.mxu1 %v4992_v62  ;;  %v6334_v15 = vld [vmem:[#allocation39_spill] sm:$0xff]  ;;  %v6335_v62 = vld [vmem:[#allocation66_spill] sm:$0xff] }
 0x825   :  { %2601 = vmatprep.subr.bf16.mxu0 %v4995_v39  ;;  %2642 = vmatprep.subr.bf16.mxu1 %v6255_v55  ;;  %v6336_v39 = vld [vmem:[#allocation67_spill] sm:$0xff]  ;;  %v6344_v55 = vld [vmem:[#allocation44_spill] sm:$0xff] }
 0x828   :  { %2602 = vmatpush1.bf16.msra.mxu0 %v6256_v29  ;;  %2643 = vmatpush1.bf16.msra.mxu1 %v6257_v27  ;;  %v6345_v29 = vld [vmem:[#allocation45_spill] sm:$0xff]  ;;  %v6346_v27 = vld [vmem:[#allocation46_spill] sm:$0xff] }
 0x829   :  { %2603 = vmatprep.subr.bf16.mxu0 %v6258_v25  ;;  %2644 = vmatprep.subr.bf16.mxu1 %v6259_v18  ;;  %v6347_v25 = vld [vmem:[#allocation47_spill] sm:$0xff] }
 0x82a   :  { %v6348_v18 = vld [vmem:[#allocation19_spill] sm:$0xff] }
 0x82c   :  { %2604 = vmatpush1.bf16.msra.mxu0 %v6260_v36  ;;  %2645 = vmatpush1.bf16.msra.mxu1 %v6261_v45  ;;  %v6349_v36 = vld [vmem:[#allocation79_spill] sm:$0xff]  ;;  %v6350_v45 = vld [vmem:[#allocation80_spill] sm:$0xff] }
 0x82d   :  { %2605 = vmatprep.subr.bf16.mxu0 %v5019_v60  ;;  %2646 = vmatprep.subr.bf16.mxu1 %v5022_v12  ;;  %v6338_v60 = vld [vmem:[#allocation69_spill] sm:$0xff]  ;;  %v6339_v12 = vld [vmem:[#allocation70_spill] sm:$0xff] }
 0x830   :  { %2606 = vmatpush1.bf16.msra.mxu0 %v5025_v38  ;;  %2647 = vmatpush1.bf16.msra.mxu1 %v5028_v50  ;;  %v6340_v38 = vld [vmem:[#allocation40_spill] sm:$0xff]  ;;  %v6341_v50 = vld [vmem:[#allocation41_spill] sm:$0xff] }
 0x831   :  { %2607 = vmatprep.subr.bf16.mxu0 %v5031_v8  ;;  %2648 = vmatprep.subr.bf16.mxu1 %v5034_v53  ;;  %v6337_v53 = vld [vmem:[#allocation68_spill] sm:$0xff]  ;;  %v6342_v8 = vld [vmem:[#allocation42_spill] sm:$0xff] }
 0x834   :  { %2608 = vmatpush1.bf16.msra.mxu0 %v5153_v43  ;;  %2649 = vmatpush1.bf16.msra.mxu1 %v5156_v51  ;;  %v6351_v43 = vld [vmem:[#allocation81_spill] sm:$0xff]  ;;  %v6352_v51 = vld [vmem:[#allocation82_spill] sm:$0xff] }
 0x835   :  { %2698 = vmatprep.subr.bf16.mxu0 %v5159_v52  ;;  %2739 = vmatprep.subr.bf16.mxu1 %v5162_v56  ;;  %v6353_v52 = vld [vmem:[#allocation48_spill] sm:$0xff]  ;;  %v6354_v56 = vld [vmem:[#allocation49_spill] sm:$0xff] }
 0x837   :  { %2626 = vmatmul.mubr.bf16.vlgmr.msra.gmra.mrb[72].mxu0 %v2484_v30  ;;  %2667 = vmatmul.mubr.bf16.vlgmr.msra.gmra.mrb[72].mxu1 %v2484_v30 }
 0x838   :  { %2699 = vmatpush1.bf16.msra.mxu0 %v5165_v57  ;;  %2740 = vmatpush1.bf16.msra.mxu1 %v5168_v59  ;;  %v6355_v57 = vld [vmem:[#allocation50_spill] sm:$0xff]  ;;  %v6356_v59 = vld [vmem:[#allocation51_spill] sm:$0xff] }
 0x839   :  { %2700 = vmatprep.subr.bf16.mxu0 %v5171_v41  ;;  %2741 = vmatprep.subr.bf16.mxu1 %v5174_v61  ;;  %v6357_v41 = vld [vmem:[#allocation52_spill] sm:$0xff]  ;;  %v6358_v61 = vld [vmem:[#allocation53_spill] sm:$0xff] }
 0x83c   :  { %2701 = vmatpush1.bf16.msra.mxu0 %v5177_v2  ;;  %2742 = vmatpush1.bf16.msra.mxu1 %v5180_v4  ;;  %v6359_v2 = vld [vmem:[#allocation54_spill] sm:$0xff]  ;;  %v6360_v4 = vld [vmem:[#allocation55_spill] sm:$0xff] }
 0x83d   :  { %2702 = vmatprep.subr.bf16.mxu0 %v5183_v31  ;;  %2743 = vmatprep.subr.bf16.mxu1 %v5186_v26  ;;  %v6361_v31 = vld [vmem:[#allocation56_spill] sm:$0xff]  ;;  %v6362_v26 = vld [vmem:[#allocation57_spill] sm:$0xff] }
 0x840   :  { %2703 = vmatpush1.bf16.msra.mxu0 %v6321_v23  ;;  %2744 = vmatpush1.bf16.msra.mxu1 %v6322_v42 }
 0x841   :  { %2704 = vmatprep.subr.bf16.mxu0 %v6323_v44  ;;  %2745 = vmatprep.subr.bf16.mxu1 %v6324_v48 }
 0x844   :  { %2705 = vmatpush1.bf16.msra.mxu0 %v6325_v37  ;;  %2746 = vmatpush1.bf16.msra.mxu1 %v6326_v40  ;;  %v6377_v40 = vld [vmem:[#allocation15_spill] sm:$0xff] }
 0x845   :  { %2706 = vmatprep.subr.bf16.mxu0 %v6327_v47  ;;  %2747 = vmatprep.subr.bf16.mxu1 %v6328_v58  ;;  %v6378_v58 = vld [vmem:[#allocation16_spill] sm:$0xff] }
 0x848   :  { %2707 = vmatpush1.bf16.msra.mxu0 %v6329_v46  ;;  %2748 = vmatpush1.bf16.msra.mxu1 %v6330_v49 }
 0x849   :  { %2708 = vmatprep.subr.bf16.mxu0 %v6331_v6  ;;  %2749 = vmatprep.subr.bf16.mxu1 %v6332_v14 }
 0x84c   :  { %2709 = vmatpush1.bf16.msra.mxu0 %v6333_v13  ;;  %2750 = vmatpush1.bf16.msra.mxu1 %v6334_v15 }
 0x84d   :  { %2710 = vmatprep.subr.bf16.mxu0 %v6335_v62  ;;  %2751 = vmatprep.subr.bf16.mxu1 %v6336_v39 }
 0x850   :  { %2711 = vmatpush1.bf16.msra.mxu0 %v6337_v53  ;;  %2752 = vmatpush1.bf16.msra.mxu1 %v6338_v60 }
 0x851   :  { %2712 = vmatprep.subr.bf16.mxu0 %v6339_v12  ;;  %2753 = vmatprep.subr.bf16.mxu1 %v6340_v38  ;;  %v6379_v12 = vld [vmem:[#allocation72_spill] sm:$0xff] }
 0x854   :  { %2713 = vmatpush1.bf16.msra.mxu0 %v6341_v50  ;;  %2754 = vmatpush1.bf16.msra.mxu1 %v6342_v8 }
 0x855   :  { %2714 = vmatprep.subr.bf16.mxu0 %v6343_v20  ;;  %2755 = vmatprep.subr.bf16.mxu1 %v6344_v55 }
 0x858   :  { %2715 = vmatpush1.bf16.msra.mxu0 %v6345_v29  ;;  %2756 = vmatpush1.bf16.msra.mxu1 %v6346_v27  ;;  %v6380_v27 = vld [vmem:[#allocation91_spill] sm:$0xff] }
 0x859   :  { %2716 = vmatprep.subr.bf16.mxu0 %v6347_v25  ;;  %2757 = vmatprep.subr.bf16.mxu1 %v6348_v18  ;;  %v6381_v18 = vld [vmem:[#allocation92_spill] sm:$0xff] }
 0x85c   :  { %2717 = vmatpush1.bf16.msra.mxu0 %v6349_v36  ;;  %2758 = vmatpush1.bf16.msra.mxu1 %v6350_v45 }
 0x85d   :  { %2718 = vmatprep.subr.bf16.mxu0 %v6351_v43  ;;  %2759 = vmatprep.subr.bf16.mxu1 %v6352_v51 }
 0x860   :  { %2719 = vmatpush1.bf16.msra.mxu0 %v6353_v52  ;;  %2760 = vmatpush1.bf16.msra.mxu1 %v6354_v56  ;;  %v6382_v52 = vld [vmem:[#allocation93_spill] sm:$0xff] }
 0x861   :  { %2720 = vmatprep.subr.bf16.mxu0 %v6355_v57  ;;  %2761 = vmatprep.subr.bf16.mxu1 %v6356_v59  ;;  %v6383_v57 = vld [vmem:[#allocation94_spill] sm:$0xff] }
 0x864   :  { %2721 = vmatpush1.bf16.msra.mxu0 %v6357_v41  ;;  %2762 = vmatpush1.bf16.msra.mxu1 %v6358_v61 }
 0x865   :  { %2722 = vmatprep.subr.bf16.mxu0 %v6359_v2  ;;  %2763 = vmatprep.subr.bf16.mxu1 %v6360_v4 }
 0x868   :  { %2723 = vmatpush1.bf16.msra.mxu0 %v6361_v31  ;;  %2764 = vmatpush1.bf16.msra.mxu1 %v6362_v26 }
 0x869   :  { %2724 = vmatprep.subr.bf16.mxu0 %v6363_v1  ;;  %2765 = vmatprep.subr.bf16.mxu1 %v6364_v17 }
 0x86c   :  { %2725 = vmatpush1.bf16.msra.mxu0 %v6365_v10  ;;  %2766 = vmatpush1.bf16.msra.mxu1 %v6366_v9 }
 0x86d   :  { %2726 = vmatprep.subr.bf16.mxu0 %v6367_v54  ;;  %2767 = vmatprep.subr.bf16.mxu1 %v6368_v33 }
 0x870   :  { %2727 = vmatpush1.bf16.msra.mxu0 %v6369_v11  ;;  %2768 = vmatpush1.bf16.msra.mxu1 %v6370_v28 }
 0x871   :  { %2728 = vmatprep.subr.bf16.mxu0 %v6371_v3  ;;  %2769 = vmatprep.subr.bf16.mxu1 %v6372_v35 }
 0x874   :  { %2729 = vmatpush1.bf16.msra.mxu0 %v6373_v24  ;;  %2770 = vmatpush1.bf16.msra.mxu1 %v6374_v63 }
 0x8ea   :  { %v2519_v19 = vpop.f32.mrb[68].mxu0  ;;  %v2560_v16 = vpop.f32.mrb[68].mxu1 }
 0x8eb   :  { %v2520_v34 = vadd.f32 %v2519_v19, %v6375_v0  ;;  %v2521_v32 = vpop.f32.mrb[69].mxu0  ;;  %v2562_v5 = vpop.f32.mrb[69].mxu1  ;;  %v2561_v47 = vadd.f32 %v2560_v16, %v6377_v40 }
 0x8ec   :  { %v2522_v21 = vadd.f32 %v2521_v32, %v6376_v7  ;;  %v2523_v30 = vpop.f32.mrb[70].mxu0  ;;  %v2564_v23 = vpop.f32.mrb[70].mxu1  ;;  %v2563_v46 = vadd.f32 %v2562_v5, %v6378_v58 }
 0x8ed   :  { %v2567_v42 = vmul.f32 0.5, %v2520_v34  ;;  %v2524_v44 = vpop.f32.mrb[71].mxu0  ;;  %v2565_v48 = vpop.f32.mrb[71].mxu1 }
 0x8ee   :  { %v2571_v37 = vmul.f32 0.5, %v2522_v21  ;;  %v2576_v49 = vmul.f32 0.5, %v2563_v46  ;;  %v2801_v44 = vld [vmem:[%s5540_s6 + $0x8] sm:$0xff] }
 0x8ef   :  { %3452 = vtanh.f32 %v2567_v42  ;;  %v2800_v42 = vld [vmem:[%s5540_s6] sm:$0xff] }
 0x8f0   :  { %3454 = vtanh.f32 %v2571_v37  ;;  %v3094_v48 = vpack.c.bf16 %v2801_v44, %v2800_v42  ;;  %v2802_v37 = vld [vmem:[%s5540_s6 + $0x10] sm:$0xff] }
 0x8f1   :  { %3456 = vtanh.f32 %v2561_v47  ;;  %v2803_v47 = vld [vmem:[%s5540_s6 + $0x18] sm:$0xff] }
 0x8f2   :  { %3458 = vtanh.f32 %v2576_v49  ;;  %v3097_v46 = vpack.c.bf16 %v2803_v47, %v2802_v37  ;;  %v2804_v49 = vld [vmem:[%s5540_s6 + $0x20] sm:$0xff] }
 0x8f9   :  { %v3453_v6 = vpop.eup %3452 }
 0x8fa   :  { %v3455_v14 = vpop.eup %3454  ;;  %v2569_v13 = vmul.f32 0.5, %v3453_v6  ;;  %v2805_v6 = vld [vmem:[%s5540_s6 + $0x28] sm:$0xff] }
 0x8fb   :  { %v2573_v15 = vmul.f32 0.5, %v3455_v14  ;;  %v3457_v39 = vpop.eup %3456  ;;  %v3100_v14 = vpack.c.bf16 %v2805_v6, %v2804_v49 }
 0x8fc   :  { %v2570_v62 = vadd.f32 0.5, %v2569_v13  ;;  %v3459_v8 = vpop.eup %3458  ;;  %v2806_v13 = vld [vmem:[%s5540_s6 + $0x30] sm:$0xff] }
 0x8fd   :  { %v2574_v53 = vadd.f32 0.5, %v2573_v15  ;;  %v2578_v20 = vmul.f32 0.5, %v3459_v8  ;;  %v2807_v15 = vld [vmem:[%s5540_s6 + $0x38] sm:$0xff] }
 0x8fe   :  { %v2581_v60 = vmul.f32 %v3457_v39, %v2570_v62  ;;  %v3103_v62 = vpack.c.bf16 %v2807_v15, %v2806_v13  ;;  %v2808_v39 = vld [vmem:[%s5540_s6 + $0x40] sm:$0xff] }
 0x8ff   :  { %v2580_v38 = vmul.f32 %v2574_v53, %v6379_v12  ;;  %v2579_v51 = vadd.f32 0.5, %v2578_v20  ;;  %v2809_v53 = vld [vmem:[%s5540_s6 + $0x48] sm:$0xff]  ;;  %v2810_v12 = vld [vmem:[%s5540_s6 + $0x50] sm:$0xff]  ;;  %v2812_v20 = vld [vmem:[%s5540_s6 + $0x60] sm:$0xff] }
 0x901   :  { %v5470_v50 = vadd.f32 %v2581_v60, %v2580_v38  ;;  %v3106_v60 = vpack.c.bf16 %v2809_v53, %v2808_v39  ;;  %v2811_v38 = vld [vmem:[%s5540_s6 + $0x58] sm:$0xff] }
 0x902   :  { %v3109_v8 = vpack.c.bf16 %v2811_v38, %v2810_v12 }
 0x903   :  { %3460 = vtanh.f32 %v5470_v50 }
 0x90a   :  { %v2627_v55 = vpop.f32.mrb[72].mxu0  ;;  %v2668_v29 = vpop.f32.mrb[72].mxu1 }
 0x90b   :  { %v2675_v25 = vadd.f32 %v2627_v55, %v6380_v27  ;;  %v2677_v36 = vadd.f32 %v2668_v29, %v6381_v18  ;;  %v2629_v45 = vpop.f32.mrb[73].mxu0  ;;  %v2670_v43 = vpop.f32.mrb[73].mxu1  ;;  %v2813_v55 = vld [vmem:[%s5540_s6 + $0x68] sm:$0xff]  ;;  %v2814_v27 = vld [vmem:[%s5540_s6 + $0x70] sm:$0xff] }
 0x90c   :  { %v2676_v56 = vadd.f32 %v2629_v45, %v6382_v52  ;;  %v2678_v59 = vadd.f32 %v2670_v43, %v6383_v57  ;;  %v2631_v41 = vpop.f32.mrb[74].mxu0  ;;  %v2672_v61 = vpop.f32.mrb[74].mxu1  ;;  %v3112_v29 = vpack.c.bf16 %v2813_v55, %v2812_v20 }
 0x90d   :  { %v3461_v2 = vpop.eup %3460  ;;  %v2679_v4 = vmul.f32 0.5, %v2675_v25  ;;  %v2632_v31 = vpop.f32.mrb[75].mxu0  ;;  %v2815_v25 = vld [vmem:[%s5540_s6 + $0x78] sm:$0xff] }
 0x90e   :  { %v2673_v26 = vpop.f32.mrb[75].mxu1  ;;  %v2683_v1 = vmul.f32 0.5, %v2676_v56  ;;  %v2584_v17 = vmul.f32 %v3461_v2, %v2579_v51  ;;  %v2688_v9 = vmul.f32 0.5, %v2678_v59  ;;  %v3115_v18 = vpack.c.bf16 %v2815_v25, %v2814_v27 }
 0x90f   :  { %3462 = vtanh.f32 %v2679_v4 }
 0x910   :  { %3464 = vtanh.f32 %v2683_v1  ;;  %v2585_v10 = vpack.c.bf16 %v2584_v17, %v2584_v17 }
 0x911   :  { %3466 = vtanh.f32 %v2677_v36  ;;  %v3752_v36 = vmov 0.0  }
 0x912   :  { %2730 = vmatprep.mubr.bf16.mxu0 %v2585_v10  ;;  %2771 = vmatprep.mubr.bf16.mxu1 %v2585_v10  ;;  %3468 = vtanh.f32 %v2688_v9 }
 0x919   :  { %v3463_v54 = vpop.eup %3462 }
 0x91a   :  { %v3465_v33 = vpop.eup %3464  ;;  %v2681_v11 = vmul.f32 0.5, %v3463_v54 }
 0x91b   :  { %v2685_v28 = vmul.f32 0.5, %v3465_v33  ;;  %v3467_v35 = vpop.eup %3466 }
 0x91c   :  { %v2682_v3 = vadd.f32 0.5, %v2681_v11  ;;  %v3469_v34 = vpop.eup %3468 }
 0x91d   :  { %v2686_v24 = vadd.f32 0.5, %v2685_v28  ;;  %v2690_v32 = vmul.f32 0.5, %v3469_v34 }
 0x91e   :  { %v2693_v63 = vmul.f32 %v3467_v35, %v2682_v3 }
 0x91f   :  { %v2692_v19 = vmul.f32 %v2686_v24, %v5366_v22  ;;  %v2691_v5 = vadd.f32 0.5, %v2690_v32  ;;  %v3750_v22 = vmov 0.0|0.0  }
 0x920   :  { %3093 = vmatprep.subr.bf16.mxu0 %v3750_v22 }
 0x921   :  { %v2694_v16 = vadd.f32 %v2693_v63, %v2692_v19 }
 0x923   :  { %3470 = vtanh.f32 %v2694_v16 }
 0x92d   :  { %v3471_v21 = vpop.eup %3470 }
 0x92e   :  { %v2696_v30 = vmul.f32 %v3471_v21, %v2691_v5 }
 0x930   :  { %v2697_v23 = vpack.c.bf16 %v2696_v30, %v2696_v30 }
 0x932   :  { %2731 = vmatmul.mubr.bf16.vlgmr.msra.gmra.mrb[76].mxu0 %v2697_v23  ;;  %2772 = vmatmul.mubr.bf16.vlgmr.msra.gmra.mrb[76].mxu1 %v2697_v23 }
 0x933   :  { %3095 = vmatpush3.bf16.msra.mxu0 %v3094_v48  ;;  %3090 = vmatprep.mubr.msk.f32.mxu0 %vm3751_vm0, %v3752_v36 }
 0x934   :  { %3096 = vmatprep.subr.bf16.mxu0 %v3750_v22 }
 0x937   :  { %3098 = vmatpush3.bf16.msra.mxu0 %v3097_v46 }
 0x938   :  { %3099 = vmatprep.subr.bf16.mxu0 %v3750_v22 }
 0x93b   :  { %3101 = vmatpush3.bf16.msra.mxu0 %v3100_v14 }
 0x93c   :  { %3102 = vmatprep.subr.bf16.mxu0 %v3750_v22 }
 0x93f   :  { %3104 = vmatpush3.bf16.msra.mxu0 %v3103_v62 }
 0x940   :  { %3105 = vmatprep.subr.bf16.mxu0 %v3750_v22 }
 0x943   :  { %3107 = vmatpush3.bf16.msra.mxu0 %v3106_v60 }
 0x944   :  { %3108 = vmatprep.subr.bf16.mxu0 %v3750_v22 }
 0x947   :  { %3110 = vmatpush3.bf16.msra.mxu0 %v3109_v8 }
 0x948   :  { %3111 = vmatprep.subr.bf16.mxu0 %v3750_v22 }
 0x94b   :  { %3113 = vmatpush3.bf16.msra.mxu0 %v3112_v29 }
 0x94c   :  { %3114 = vmatprep.subr.bf16.mxu0 %v3750_v22 }
 0x94f   :  { %3116 = vmatpush3.bf16.msra.mxu0 %v3115_v18 }
 0xa05   :  { %v2732_v45 = vpop.f32.mrb[76].mxu0  ;;  %v2773_v43 = vpop.f32.mrb[76].mxu1 }
 0xa06   :  { %v2733_v51 = vadd.f32 %v2732_v45, %v6375_v0  ;;  %v2734_v52 = vpop.f32.mrb[77].mxu0  ;;  %v2775_v56 = vpop.f32.mrb[77].mxu1  ;;  %v2774_v26 = vadd.f32 %v2773_v43, %v6377_v40 }
 0xa07   :  { %v2735_v57 = vadd.f32 %v2734_v52, %v6376_v7  ;;  %v2736_v59 = vpop.f32.mrb[78].mxu0  ;;  %v2777_v41 = vpop.f32.mrb[78].mxu1  ;;  %v2776_v1 = vadd.f32 %v2775_v56, %v6378_v58  ;;  %v3040_v58 = vld [vmem:[#allocation3] ss:$0 sm:$0xff] }
 0xa08   :  { %v2780_v61 = vmul.f32 0.5, %v2733_v51  ;;  %v2737_v2 = vpop.f32.mrb[79].mxu0  ;;  %v2778_v4 = vpop.f32.mrb[79].mxu1 }
 0xa09   :  { %v2784_v31 = vmul.f32 0.5, %v2735_v57  ;;  %v2789_v17 = vmul.f32 0.5, %v2776_v1 }
 0xa0a   :  { %3472 = vtanh.f32 %v2780_v61 }
 0xa0b   :  { %3474 = vtanh.f32 %v2784_v31 }
 0xa0c   :  { %3476 = vtanh.f32 %v2774_v26 }
 0xa0d   :  { %3478 = vtanh.f32 %v2789_v17 }
 0xa14   :  { %v3473_v10 = vpop.eup %3472 }
 0xa15   :  { %v3475_v0 = vpop.eup %3474  ;;  %v2782_v9 = vmul.f32 0.5, %v3473_v10 }
 0xa16   :  { %v2786_v54 = vmul.f32 0.5, %v3475_v0  ;;  %v3477_v33 = vpop.eup %3476 }
 0xa17   :  { %v2783_v7 = vadd.f32 0.5, %v2782_v9  ;;  %v3479_v24 = vpop.eup %3478 }
 0xa18   :  { %v2787_v11 = vadd.f32 0.5, %v2786_v54  ;;  %v2791_v40 = vmul.f32 0.5, %v3479_v24 }
 0xa19   :  { %v2794_v28 = vmul.f32 %v3477_v33, %v2783_v7 }
 0xa1a   :  { %v2793_v3 = vmul.f32 %v2787_v11, %v5470_v50  ;;  %v2792_v63 = vadd.f32 0.5, %v2791_v40 }
 0xa1c   :  { %v2795_v35 = vadd.f32 %v2794_v28, %v2793_v3 }
 0xa1e   :  { %3480 = vtanh.f32 %v2795_v35 }
 0xa28   :  { %v3481_v19 = vpop.eup %3480 }
 0xa29   :  { %v2797_v16 = vmul.f32 %v3481_v19, %v2792_v63 }
 0xa2b   :  { %3091 = vmatmul.mubr.f32.vlgmr.msra.gmra.mrb[80].mxu0 %v2797_v16 }
 0xafe   :  { %v2889_v34 = vpop.f32.mrb[80].mxu0 }
 0xaff   :  { %v2890_v32 = vadd.f32 %v3040_v58, %v2889_v34  ;;  %v3092_v5 = vpop.f32.mrb[81].mxu0 }
 0xb01   :  { %2894 = vst.msk [vmem:[%s5542_s8] sm:$0xff] %vm2893_vm1, %v2890_v32 }
 0xb02   :  { %2899 = vsyncpa [#allocation5], 1 }
 0xb03   :  { %2900 = vsyncpa [#allocation7], 1 }

</bundles_post_ra>
